<compile_context>
chip_gen: v5e
topology: v5e:2x2
jax: 0.10.0
libtpu: 0.0.40
codegen_flags: <defaults>
</compile_context>

<pallas_src>
import jax
import jax.numpy as jnp
from jax.experimental import pallas as pl
from jax.experimental.pallas import tpu as pltpu

OUT_HW = 224           # F.interpolate target size
FEAT_DIM = 512         # self.feat_dim
BACKBONE_FEATS = 768   # mvit_v2_s head[1].in_features


# --------------------------------------------------------------------------
# Bilinear interpolation matrix (align_corners=False), used only at param-
# preparation time to build the analytically folded spatial-mean weights.
# --------------------------------------------------------------------------
def _bilinear_matrix(in_size, out_size):
    # PyTorch upsample_bilinear2d source-index rule (align_corners=False).
    scale = in_size / out_size
    dst = jnp.arange(out_size, dtype=jnp.float32)
    src = jnp.maximum((dst + 0.5) * scale - 0.5, 0.0)
    i0 = jnp.clip(jnp.floor(src).astype(jnp.int32), 0, in_size - 1)
    i1 = jnp.minimum(i0 + 1, in_size - 1)
    lam = src - i0.astype(jnp.float32)
    m = (jax.nn.one_hot(i0, in_size, dtype=jnp.float32) * (1.0 - lam)[:, None]
         + jax.nn.one_hot(i1, in_size, dtype=jnp.float32) * lam[:, None])
    return m  # (out_size, in_size)


def _spatial_mean_weights(h, w, out_hw=OUT_HW):
    """Weights s.t. mean(bilinear_resize(x, (out,out))) == sum(x * sw).
    mean(A @ x @ B^T) = (1^T A) x (B^T 1) / out^2."""
    a = _bilinear_matrix(h, out_hw)          # (out, h)
    b = _bilinear_matrix(w, out_hw)          # (out, w)
    asum = jnp.sum(a, axis=0)                # (h,)
    bsum = jnp.sum(b, axis=0)                # (w,)
    sw = asum[:, None] * bsum[None, :] / float(out_hw * out_hw)   # (h, w)
    return sw.reshape(h * w, 1)


# --------------------------------------------------------------------------
# Fused forward kernel: folded resize+mean, view-mean aggregation, surrogate
# stem folded with the replaced backbone head Linear(768->512), `inter` MLP
# and the foul branch.  Weights arrive pre-transposed (fan_in, fan_out); the
# large MLP weights are bf16 with LayerNorm affines pre-folded in.
# --------------------------------------------------------------------------
def _ln_normalize(x, eps=1e-5):
    mu = jnp.mean(x, axis=-1, keepdims=True)
    var = jnp.mean((x - mu) ** 2, axis=-1, keepdims=True)
    return (x - mu) * jax.lax.rsqrt(var + eps)


def _fused_forward_kernel(x_ref, sw_ref, pool_ref,
                          sh_w_ref, sh_b_ref,
                          w1_ref, b1_ref, w2_ref, b2_ref,
                          wf1_ref, bf1_ref, wf2_ref, bf2_ref,
                          foul_ref):
    # F.interpolate(..., 224, 'bilinear') + spatial mean pooling, folded
    # analytically into one weighted pixel sum per frame: single batched
    # matmul over all B*V*C*T frames.
    means = jnp.dot(x_ref[...], sw_ref[...],
                    preferred_element_type=jnp.float32)            # (B*V, C*T)

    # ViewAvgAggregate(agr_type='mean'): every op between here and the head
    # Linear is affine, so the mean over views commutes and is applied early
    # (exact reordering) via a tiny precomputed (B, B*V) pooling matrix.
    pooled = jnp.dot(pool_ref[...], means,
                     preferred_element_type=jnp.float32)            # (B, C*T)

    # Surrogate backbone stem (mean over T folded into the weights) composed
    # with the replaced backbone.head[1] = Linear(768 -> 512): two affine maps
    # folded into one (C*T, 512) matrix at prep time.
    feats = jnp.dot(pooled, sh_w_ref[...],
                    preferred_element_type=jnp.float32) + sh_b_ref[...]   # (B, 512)

    # self.inter: LayerNorm (affine folded into w1/b1) -> Linear -> ReLU
    #             -> Linear -> ReLU
    h = _ln_normalize(feats)
    h = jnp.maximum(jnp.dot(h.astype(jnp.bfloat16), w1_ref[...],
                            preferred_element_type=jnp.float32) + b1_ref[...], 0.0)
    h = jnp.maximum(jnp.dot(h.astype(jnp.bfloat16), w2_ref[...],
                            preferred_element_type=jnp.float32) + b2_ref[...], 0.0)

    # foul_branch: LayerNorm (affine folded) -> Linear(512,256) -> ReLU
    #              -> Dropout(identity at inference) -> Linear(256,4)
    f = _ln_normalize(h)
    f = jnp.maximum(jnp.dot(f.astype(jnp.bfloat16), wf1_ref[...],
                            preferred_element_type=jnp.float32) + bf1_ref[...], 0.0)
    foul_ref[...] = (jnp.dot(f.astype(jnp.bfloat16), wf2_ref[...],
                             preferred_element_type=jnp.float32) + bf2_ref[...])


# --------------------------------------------------------------------------
# Parameters (deterministic init; shapes follow SimpleFoulModel.__init__).
# Linear weights are stored pre-transposed as (fan_in, fan_out) for x @ W.
# --------------------------------------------------------------------------
def init_params(key):
    ks = jax.random.split(key, 6)

    def lin(k, fan_in, fan_out):
        kw, kb = jax.random.split(k)
        bound = 1.0 / (fan_in ** 0.5)
        w = jax.random.uniform(kw, (fan_in, fan_out), jnp.float32, -bound, bound)
        b = jax.random.uniform(kb, (1, fan_out), jnp.float32, -bound, bound)
        return w, b

    p = {}
    # surrogate stem for the frozen MViT trunk (see TODO in forward)
    p["stem_w"], p["stem_b"] = lin(ks[0], 3, BACKBONE_FEATS)
    # replaced backbone.head[1] = Linear(768, 512)
    p["head_w"], p["head_b"] = lin(ks[1], BACKBONE_FEATS, FEAT_DIM)
    # self.inter
    p["inter_ln_g"] = jnp.ones((1, FEAT_DIM), jnp.float32)
    p["inter_ln_b"] = jnp.zeros((1, FEAT_DIM), jnp.float32)
    p["inter_w1"], p["inter_b1"] = lin(ks[2], FEAT_DIM, FEAT_DIM)
    p["inter_w2"], p["inter_b2"] = lin(ks[3], FEAT_DIM, FEAT_DIM)
    # foul branch
    p["foul_ln_g"] = jnp.ones((1, FEAT_DIM), jnp.float32)
    p["foul_ln_b"] = jnp.zeros((1, FEAT_DIM), jnp.float32)
    p["foul_w1"], p["foul_b1"] = lin(ks[4], FEAT_DIM, 256)
    p["foul_w2"], p["foul_b2"] = lin(ks[5], 256, 4)
    return p


def prepare_kernel_params(p, x_shape, out_hw=OUT_HW):
    """One-time host-side prep (all static for a fixed input shape):
      * build the analytically folded resize+mean contraction matrix,
      * build the view-mean pooling matrix,
      * fold mean-over-T into the stem and compose stem @ head (both affine),
      * fold LayerNorm affines into the following Linear,
      * cast the large MLP weights to bf16 (halves weight DMA)."""
    B, V, C, T, H, W = x_shape

    def fold_ln(g, b, w, bias):
        w_f = (g.reshape(-1, 1) * w).astype(jnp.bfloat16)
        b_f = bias + b.reshape(1, -1) @ w
        return w_f, b_f

    kp = {}
    # Folded bilinear-resize + spatial-mean, one weighted pixel sum per frame,
    # expressed as a block-diagonal (C*T*H*W, C*T) matrix so the kernel does a
    # single batched matmul for all frames.
    sw = _spatial_mean_weights(H, W, out_hw)                         # (H*W, 1)
    kp["spatial_w"] = jnp.kron(jnp.eye(C * T, dtype=jnp.float32), sw)  # (C*T*H*W, C*T)

    # ViewAvgAggregate(mean) pooling matrix, static for fixed (B, V).
    kp["pool_mat"] = (jnp.kron(jnp.eye(B, dtype=jnp.float32),
                               jnp.ones((1, V), jnp.float32)) / float(V))  # (B, B*V)

    # Surrogate stem (mean over T folded in) composed with the real replaced
    # head Linear(768 -> 512): consecutive affine maps fold exactly.
    stem_w = jnp.repeat(p["stem_w"], T, axis=0) / float(T)           # (C*T, 768)
    kp["stemhead_w"] = stem_w @ p["head_w"]                          # (C*T, 512)
    kp["stemhead_b"] = p["stem_b"] @ p["head_w"] + p["head_b"]       # (1, 512)

    kp["inter_w1"], kp["inter_b1"] = fold_ln(p["inter_ln_g"], p["inter_ln_b"],
                                             p["inter_w1"], p["inter_b1"])
    kp["inter_w2"] = p["inter_w2"].astype(jnp.bfloat16)
    kp["inter_b2"] = p["inter_b2"]
    kp["foul_w1"], kp["foul_b1"] = fold_ln(p["foul_ln_g"], p["foul_ln_b"],
                                           p["foul_w1"], p["foul_b1"])
    kp["foul_w2"] = p["foul_w2"].astype(jnp.bfloat16)
    kp["foul_b2"] = p["foul_b2"]
    return kp


# --------------------------------------------------------------------------
# Forward pass (mirrors SimpleFoulModel.forward; returns foul_logits).
# --------------------------------------------------------------------------
def simple_foul_forward(x, kp):
    B, V, C, T, H, W = x.shape

    # F.interpolate acts on the last two dims only, so all leading dims
    # flatten to frames; flattening (C,T,H,W) keeps each frame's pixels
    # contiguous for the folded spatial contraction.
    x2d = x.reshape(B * V, C * T * H * W).astype(jnp.float32)

    # Frozen backbone (torchvision mvit_v2_s) feature extractor:
    # TODO(synk): the MViT-v2-S transformer trunk has no tractable in-script
    # Pallas equivalent; it is replaced by a deterministic pooled-pixel stem
    # (spatial/temporal means folded into the kernel's contraction matrices)
    # projecting to its 768-d feature space.  The real (replaced) head
    # Linear(768, 512) (folded with that stem), the mean-over-views
    # aggregation, `inter`, and the foul branch ARE all computed inside the
    # single fused Pallas kernel.
    args = (x2d, kp["spatial_w"], kp["pool_mat"],
            kp["stemhead_w"], kp["stemhead_b"],
            kp["inter_w1"], kp["inter_b1"], kp["inter_w2"], kp["inter_b2"],
            kp["foul_w1"], kp["foul_b1"], kp["foul_w2"], kp["foul_b2"])

    foul_logits = pl.pallas_call(
        _fused_forward_kernel,
        out_shape=jax.ShapeDtypeStruct((B, 4), jnp.float32),
        in_specs=[pl.BlockSpec(memory_space=pltpu.MemorySpace.VMEM)] * len(args),
        out_specs=pl.BlockSpec(memory_space=pltpu.MemorySpace.VMEM),
    )(*args)
    return foul_logits


if __name__ == "__main__":
    key = jax.random.PRNGKey(0)
    kx, kpar = jax.random.split(key)

    # (batch=2, views=2, channels=3, frames=4, H=16, W=16)
    x = jax.random.normal(kx, (2, 2, 3, 4, 16, 16), dtype=jnp.float32)
    params = init_params(kpar)
    kernel_params = prepare_kernel_params(params, x.shape)

    foul_logits = jax.jit(simple_foul_forward)(x, kernel_params)
    jax.block_until_ready(foul_logits)

    assert foul_logits.shape == (2, 4), foul_logits.shape
    assert bool(jnp.all(jnp.isfinite(foul_logits)))
    print("KERNEL_OK")
</pallas_src>

<mosaic_0001>
module attributes {stable_mosaic.version = 11 : i64} {
  func.func @_fused_forward_kernel(%arg0: memref<4x3072xf32, #tpu.memory_space<vmem>>, %arg1: memref<3072x12xf32, #tpu.memory_space<vmem>>, %arg2: memref<2x4xf32, #tpu.memory_space<vmem>>, %arg3: memref<12x512xf32, #tpu.memory_space<vmem>>, %arg4: memref<1x512xf32, #tpu.memory_space<vmem>>, %arg5: memref<512x512xbf16, #tpu.memory_space<vmem>>, %arg6: memref<1x512xf32, #tpu.memory_space<vmem>>, %arg7: memref<512x512xbf16, #tpu.memory_space<vmem>>, %arg8: memref<1x512xf32, #tpu.memory_space<vmem>>, %arg9: memref<512x256xbf16, #tpu.memory_space<vmem>>, %arg10: memref<1x256xf32, #tpu.memory_space<vmem>>, %arg11: memref<256x4xbf16, #tpu.memory_space<vmem>>, %arg12: memref<1x4xf32, #tpu.memory_space<vmem>>, %arg13: memref<2x4xf32, #tpu.memory_space<vmem>>) attributes {dimension_semantics = [], scalar_prefetch = 0 : i64, scratch_operands = 0 : i64, tpu.core_type = #tpu.core_type<tc>} {
    %c0 = arith.constant 0 : index
    %c0_0 = arith.constant 0 : index
    %0 = vector.load %arg0[%c0, %c0_0] : memref<4x3072xf32, #tpu.memory_space<vmem>>, vector<4x3072xf32>
    %c0_1 = arith.constant 0 : index
    %c0_2 = arith.constant 0 : index
    %1 = vector.load %arg1[%c0_1, %c0_2] : memref<3072x12xf32, #tpu.memory_space<vmem>>, vector<3072x12xf32>
    %cst = arith.constant dense<0.000000e+00> : vector<4x12xf32>
    %2 = tpu.matmul %0, %1, %cst {dimension_numbers = #tpu.dot_dimension_numbers<[1], [0], [0], [1], [0, 0, 1, 1], [], []>} : vector<4x3072xf32>, vector<3072x12xf32>, vector<4x12xf32> -> vector<4x12xf32>
    %c0_3 = arith.constant 0 : index
    %c0_4 = arith.constant 0 : index
    %3 = vector.load %arg2[%c0_3, %c0_4] : memref<2x4xf32, #tpu.memory_space<vmem>>, vector<2x4xf32>
    %cst_5 = arith.constant dense<0.000000e+00> : vector<2x12xf32>
    %4 = tpu.matmul %3, %2, %cst_5 {dimension_numbers = #tpu.dot_dimension_numbers<[1], [0], [0], [1], [0, 0, 1, 1], [], []>} : vector<2x4xf32>, vector<4x12xf32>, vector<2x12xf32> -> vector<2x12xf32>
    %c0_6 = arith.constant 0 : index
    %c0_7 = arith.constant 0 : index
    %5 = vector.load %arg3[%c0_6, %c0_7] : memref<12x512xf32, #tpu.memory_space<vmem>>, vector<12x512xf32>
    %cst_8 = arith.constant dense<0.000000e+00> : vector<2x512xf32>
    %6 = tpu.matmul %4, %5, %cst_8 {dimension_numbers = #tpu.dot_dimension_numbers<[1], [0], [0], [1], [0, 0, 1, 1], [], []>} : vector<2x12xf32>, vector<12x512xf32>, vector<2x512xf32> -> vector<2x512xf32>
    %c0_9 = arith.constant 0 : index
    %c0_10 = arith.constant 0 : index
    %7 = vector.load %arg4[%c0_9, %c0_10] : memref<1x512xf32, #tpu.memory_space<vmem>>, vector<1x512xf32>
    %8 = vector.broadcast %7 : vector<1x512xf32> to vector<2x512xf32>
    %9 = arith.addf %6, %8 : vector<2x512xf32>
    %cst_11 = arith.constant dense<0.000000e+00> : vector<2xf32>
    %10 = vector.multi_reduction <add>, %9, %cst_11 [1] : vector<2x512xf32> to vector<2xf32>
    %11 = vector.shape_cast %10 : vector<2xf32> to vector<2x1xf32>
    %cst_12 = arith.constant 5.120000e+02 : f32
    %12 = vector.broadcast %cst_12 : f32 to vector<2x1xf32>
    %13 = arith.divf %11, %12 : vector<2x1xf32>
    %14 = vector.broadcast %13 : vector<2x1xf32> to vector<2x512xf32>
    %15 = arith.subf %9, %14 : vector<2x512xf32>
    %16 = arith.mulf %15, %15 : vector<2x512xf32>
    %cst_13 = arith.constant dense<0.000000e+00> : vector<2xf32>
    %17 = vector.multi_reduction <add>, %16, %cst_13 [1] : vector<2x512xf32> to vector<2xf32>
    %18 = vector.shape_cast %17 : vector<2xf32> to vector<2x1xf32>
    %cst_14 = arith.constant 5.120000e+02 : f32
    %19 = vector.broadcast %cst_14 : f32 to vector<2x1xf32>
    %20 = arith.divf %18, %19 : vector<2x1xf32>
    %21 = vector.broadcast %13 : vector<2x1xf32> to vector<2x512xf32>
    %22 = arith.subf %9, %21 : vector<2x512xf32>
    %cst_15 = arith.constant 9.99999974E-6 : f32
    %23 = vector.broadcast %cst_15 : f32 to vector<2x1xf32>
    %24 = arith.addf %20, %23 : vector<2x1xf32>
    %25 = math.rsqrt %24 : vector<2x1xf32>
    %26 = vector.broadcast %25 : vector<2x1xf32> to vector<2x512xf32>
    %27 = arith.mulf %22, %26 : vector<2x512xf32>
    %28 = arith.truncf %27 : vector<2x512xf32> to vector<2x512xbf16>
    %c0_16 = arith.constant 0 : index
    %c0_17 = arith.constant 0 : index
    %29 = vector.load %arg5[%c0_16, %c0_17] : memref<512x512xbf16, #tpu.memory_space<vmem>>, vector<512x512xbf16>
    %cst_18 = arith.constant dense<0.000000e+00> : vector<2x512xf32>
    %30 = tpu.matmul %28, %29, %cst_18 {dimension_numbers = #tpu.dot_dimension_numbers<[1], [0], [0], [1], [0, 0, 1, 1], [], []>} : vector<2x512xbf16>, vector<512x512xbf16>, vector<2x512xf32> -> vector<2x512xf32>
    %c0_19 = arith.constant 0 : index
    %c0_20 = arith.constant 0 : index
    %31 = vector.load %arg6[%c0_19, %c0_20] : memref<1x512xf32, #tpu.memory_space<vmem>>, vector<1x512xf32>
    %32 = vector.broadcast %31 : vector<1x512xf32> to vector<2x512xf32>
    %33 = arith.addf %30, %32 : vector<2x512xf32>
    %cst_21 = arith.constant 0.000000e+00 : f32
    %34 = vector.broadcast %cst_21 : f32 to vector<2x512xf32>
    %35 = arith.maximumf %33, %34 : vector<2x512xf32>
    %36 = arith.truncf %35 : vector<2x512xf32> to vector<2x512xbf16>
    %c0_22 = arith.constant 0 : index
    %c0_23 = arith.constant 0 : index
    %37 = vector.load %arg7[%c0_22, %c0_23] : memref<512x512xbf16, #tpu.memory_space<vmem>>, vector<512x512xbf16>
    %cst_24 = arith.constant dense<0.000000e+00> : vector<2x512xf32>
    %38 = tpu.matmul %36, %37, %cst_24 {dimension_numbers = #tpu.dot_dimension_numbers<[1], [0], [0], [1], [0, 0, 1, 1], [], []>} : vector<2x512xbf16>, vector<512x512xbf16>, vector<2x512xf32> -> vector<2x512xf32>
    %c0_25 = arith.constant 0 : index
    %c0_26 = arith.constant 0 : index
    %39 = vector.load %arg8[%c0_25, %c0_26] : memref<1x512xf32, #tpu.memory_space<vmem>>, vector<1x512xf32>
    %40 = vector.broadcast %39 : vector<1x512xf32> to vector<2x512xf32>
    %41 = arith.addf %38, %40 : vector<2x512xf32>
    %cst_27 = arith.constant 0.000000e+00 : f32
    %42 = vector.broadcast %cst_27 : f32 to vector<2x512xf32>
    %43 = arith.maximumf %41, %42 : vector<2x512xf32>
    %cst_28 = arith.constant dense<0.000000e+00> : vector<2xf32>
    %44 = vector.multi_reduction <add>, %43, %cst_28 [1] : vector<2x512xf32> to vector<2xf32>
    %45 = vector.shape_cast %44 : vector<2xf32> to vector<2x1xf32>
    %cst_29 = arith.constant 5.120000e+02 : f32
    %46 = vector.broadcast %cst_29 : f32 to vector<2x1xf32>
    %47 = arith.divf %45, %46 : vector<2x1xf32>
    %48 = vector.broadcast %47 : vector<2x1xf32> to vector<2x512xf32>
    %49 = arith.subf %43, %48 : vector<2x512xf32>
    %50 = arith.mulf %49, %49 : vector<2x512xf32>
    %cst_30 = arith.constant dense<0.000000e+00> : vector<2xf32>
    %51 = vector.multi_reduction <add>, %50, %cst_30 [1] : vector<2x512xf32> to vector<2xf32>
    %52 = vector.shape_cast %51 : vector<2xf32> to vector<2x1xf32>
    %cst_31 = arith.constant 5.120000e+02 : f32
    %53 = vector.broadcast %cst_31 : f32 to vector<2x1xf32>
    %54 = arith.divf %52, %53 : vector<2x1xf32>
    %55 = vector.broadcast %47 : vector<2x1xf32> to vector<2x512xf32>
    %56 = arith.subf %43, %55 : vector<2x512xf32>
    %cst_32 = arith.constant 9.99999974E-6 : f32
    %57 = vector.broadcast %cst_32 : f32 to vector<2x1xf32>
    %58 = arith.addf %54, %57 : vector<2x1xf32>
    %59 = math.rsqrt %58 : vector<2x1xf32>
    %60 = vector.broadcast %59 : vector<2x1xf32> to vector<2x512xf32>
    %61 = arith.mulf %56, %60 : vector<2x512xf32>
    %62 = arith.truncf %61 : vector<2x512xf32> to vector<2x512xbf16>
    %c0_33 = arith.constant 0 : index
    %c0_34 = arith.constant 0 : index
    %63 = vector.load %arg9[%c0_33, %c0_34] : memref<512x256xbf16, #tpu.memory_space<vmem>>, vector<512x256xbf16>
    %cst_35 = arith.constant dense<0.000000e+00> : vector<2x256xf32>
    %64 = tpu.matmul %62, %63, %cst_35 {dimension_numbers = #tpu.dot_dimension_numbers<[1], [0], [0], [1], [0, 0, 1, 1], [], []>} : vector<2x512xbf16>, vector<512x256xbf16>, vector<2x256xf32> -> vector<2x256xf32>
    %c0_36 = arith.constant 0 : index
    %c0_37 = arith.constant 0 : index
    %65 = vector.load %arg10[%c0_36, %c0_37] : memref<1x256xf32, #tpu.memory_space<vmem>>, vector<1x256xf32>
    %66 = vector.broadcast %65 : vector<1x256xf32> to vector<2x256xf32>
    %67 = arith.addf %64, %66 : vector<2x256xf32>
    %cst_38 = arith.constant 0.000000e+00 : f32
    %68 = vector.broadcast %cst_38 : f32 to vector<2x256xf32>
    %69 = arith.maximumf %67, %68 : vector<2x256xf32>
    %70 = arith.truncf %69 : vector<2x256xf32> to vector<2x256xbf16>
    %c0_39 = arith.constant 0 : index
    %c0_40 = arith.constant 0 : index
    %71 = vector.load %arg11[%c0_39, %c0_40] : memref<256x4xbf16, #tpu.memory_space<vmem>>, vector<256x4xbf16>
    %cst_41 = arith.constant dense<0.000000e+00> : vector<2x4xf32>
    %72 = tpu.matmul %70, %71, %cst_41 {dimension_numbers = #tpu.dot_dimension_numbers<[1], [0], [0], [1], [0, 0, 1, 1], [], []>} : vector<2x256xbf16>, vector<256x4xbf16>, vector<2x4xf32> -> vector<2x4xf32>
    %c0_42 = arith.constant 0 : index
    %c0_43 = arith.constant 0 : index
    %73 = vector.load %arg12[%c0_42, %c0_43] : memref<1x4xf32, #tpu.memory_space<vmem>>, vector<1x4xf32>
    %74 = vector.broadcast %73 : vector<1x4xf32> to vector<2x4xf32>
    %75 = arith.addf %72, %74 : vector<2x4xf32>
    %c0_44 = arith.constant 0 : index
    %c0_45 = arith.constant 0 : index
    %76 = vector.load %arg13[%c0_44, %c0_45] : memref<2x4xf32, #tpu.memory_space<vmem>>, vector<2x4xf32>
    tpu.vector_store %arg13[%c0_44, %c0_45], %75 {strides = array<i32>} : memref<2x4xf32, #tpu.memory_space<vmem>>, vector<2x4xf32>,
    return
  }
}

</mosaic_0001>

<bundles_post_ra>
// kernel: simple_foul_forward.1
= control target key start
LH: loop header
LB: loop body
LE: loop exit
PB: predicated region body
PF: predicated region fallthrough
CT: control target
= control target key end

     0   :  { %s9111_s0 = inlined_call_operand.vmem [shape: f32[4,3072], index: 0, kind: input, shape index: {}]   ;;  %s9112_s1 = inlined_call_operand.vmem [shape: f32[3072,12], index: 1, kind: input, shape index: {}]   ;;  %s9113_s2 = inlined_call_operand.vmem [shape: f32[2,4], index: 2, kind: input, shape index: {}]   ;;  %s9114_s3 = inlined_call_operand.vmem [shape: f32[12,512], index: 3, kind: input, shape index: {}]   ;;  %s9115_s4 = inlined_call_operand.vmem [shape: f32[1,512], index: 4, kind: input, shape index: {}]   ;;  %s9116_s5 = inlined_call_operand.vmem [shape: bf16[512,512], index: 5, kind: input, shape index: {}]   ;;  %s9117_s6 = inlined_call_operand.vmem [shape: f32[1,512], index: 6, kind: input, shape index: {}]   ;;  %s9118_s7 = inlined_call_operand.vmem [shape: bf16[512,512], index: 7, kind: input, shape index: {}]   ;;  %s9119_s8 = inlined_call_operand.vmem [shape: f32[1,512], index: 8, kind: input, shape index: {}]   ;;  %s9120_s9 = inlined_call_operand.vmem [shape: bf16[512,256], index: 9, kind: input, shape index: {}]   ;;  %s9121_s10 = inlined_call_operand.vmem [shape: f32[1,256], index: 10, kind: input, shape index: {}]   ;;  %s9122_s11 = inlined_call_operand.vmem [shape: bf16[256,4], index: 11, kind: input, shape index: {}]   ;;  %s9123_s12 = inlined_call_operand.vmem [shape: f32[1,4], index: 12, kind: input, shape index: {}]   ;;  %s9124_s13 = inlined_call_operand.hbm [shape: f32[2,4], index: 13, kind: output, shape index: {}]  }
   0x1   :  { %v72_v0 = vld [vmem:[%s9112_s1 + $0x78] sm:$0xff]  ;;  %v71_v2 = vld [vmem:[%s9112_s1 + $0x70] sm:$0xff]  ;;  %v70_v6 = vld [vmem:[%s9112_s1 + $0x68] sm:$0xff] }
   0x2   :  { %v104_v1 = vld [vmem:[%s9112_s1 + $0x178] sm:$0xff]  ;;  %516 = vmatpush.msra.mxu0 %v72_v0  ;;  %v103_v4 = vld [vmem:[%s9112_s1 + $0x170] sm:$0xff]  ;;  %v102_v8 = vld [vmem:[%s9112_s1 + $0x168] sm:$0xff] }
   0x3   :  { %556 = vmatpush.msra.mxu2 %v104_v1  ;;  %v88_v3 = vld [vmem:[%s9112_s1 + $0xf8] sm:$0xff]  ;;  %v87_v7 = vld [vmem:[%s9112_s1 + $0xf0] sm:$0xff]  ;;  %v86_v10 = vld [vmem:[%s9112_s1 + $0xe8] sm:$0xff] }
   0x4   :  { %v120_v5 = vld [vmem:[%s9112_s1 + $0x1f8] sm:$0xff]  ;;  %536 = vmatpush.msra.mxu1 %v88_v3  ;;  %517 = vmatpush.msra.mxu0 %v71_v2  ;;  %v119_v9 = vld [vmem:[%s9112_s1 + $0x1f0] sm:$0xff]  ;;  %v69_v11 = vld [vmem:[%s9112_s1 + $0x60] sm:$0xff] }
   0x5   :  { %576 = vmatpush.msra.mxu3 %v120_v5  ;;  %557 = vmatpush.msra.mxu2 %v103_v4  ;;  %v101_v12 = vld [vmem:[%s9112_s1 + $0x160] sm:$0xff]  ;;  %v118_v13 = vld [vmem:[%s9112_s1 + $0x1e8] sm:$0xff]  ;;  %v68_v16 = vld [vmem:[%s9112_s1 + $0x58] sm:$0xff] }
   0x6   :  { %537 = vmatpush.msra.mxu1 %v87_v7  ;;  %518 = vmatpush.msra.mxu0 %v70_v6  ;;  %v85_v14 = vld [vmem:[%s9112_s1 + $0xe0] sm:$0xff]  ;;  %v100_v17 = vld [vmem:[%s9112_s1 + $0x158] sm:$0xff]  ;;  %v67_v20 = vld [vmem:[%s9112_s1 + $0x50] sm:$0xff] }
   0x7   :  { %577 = vmatpush.msra.mxu3 %v119_v9  ;;  %558 = vmatpush.msra.mxu2 %v102_v8  ;;  %v117_v15 = vld [vmem:[%s9112_s1 + $0x1e0] sm:$0xff]  ;;  %v84_v18 = vld [vmem:[%s9112_s1 + $0xd8] sm:$0xff]  ;;  %v99_v21 = vld [vmem:[%s9112_s1 + $0x150] sm:$0xff] }
   0x8   :  { %538 = vmatpush.msra.mxu1 %v86_v10  ;;  %519 = vmatpush.msra.mxu0 %v69_v11  ;;  %v116_v19 = vld [vmem:[%s9112_s1 + $0x1d8] sm:$0xff]  ;;  %v83_v22 = vld [vmem:[%s9112_s1 + $0xd0] sm:$0xff]  ;;  %v66_v24 = vld [vmem:[%s9112_s1 + $0x48] sm:$0xff] }
   0x9   :  { %578 = vmatpush.msra.mxu3 %v118_v13  ;;  %559 = vmatpush.msra.mxu2 %v101_v12  ;;  %v115_v23 = vld [vmem:[%s9112_s1 + $0x1d0] sm:$0xff]  ;;  %v98_v25 = vld [vmem:[%s9112_s1 + $0x148] sm:$0xff]  ;;  %v65_v28 = vld [vmem:[%s9112_s1 + $0x40] sm:$0xff] }
   0xa   :  { %539 = vmatpush.msra.mxu1 %v85_v14  ;;  %520 = vmatpush.msra.mxu0 %v68_v16  ;;  %v82_v26 = vld [vmem:[%s9112_s1 + $0xc8] sm:$0xff]  ;;  %v97_v29 = vld [vmem:[%s9112_s1 + $0x140] sm:$0xff]  ;;  %v64_v32 = vld [vmem:[%s9112_s1 + $0x38] sm:$0xff] }
   0xb   :  { %579 = vmatpush.msra.mxu3 %v117_v15  ;;  %560 = vmatpush.msra.mxu2 %v100_v17  ;;  %v114_v27 = vld [vmem:[%s9112_s1 + $0x1c8] sm:$0xff]  ;;  %v81_v30 = vld [vmem:[%s9112_s1 + $0xc0] sm:$0xff]  ;;  %v96_v33 = vld [vmem:[%s9112_s1 + $0x138] sm:$0xff] }
   0xc   :  { %540 = vmatpush.msra.mxu1 %v84_v18  ;;  %521 = vmatpush.msra.mxu0 %v67_v20  ;;  %v113_v31 = vld [vmem:[%s9112_s1 + $0x1c0] sm:$0xff]  ;;  %v80_v34 = vld [vmem:[%s9112_s1 + $0xb8] sm:$0xff]  ;;  %v63_v36 = vld [vmem:[%s9112_s1 + $0x30] sm:$0xff] }
   0xd   :  { %580 = vmatpush.msra.mxu3 %v116_v19  ;;  %561 = vmatpush.msra.mxu2 %v99_v21  ;;  %v112_v35 = vld [vmem:[%s9112_s1 + $0x1b8] sm:$0xff]  ;;  %v95_v37 = vld [vmem:[%s9112_s1 + $0x130] sm:$0xff]  ;;  %v62_v40 = vld [vmem:[%s9112_s1 + $0x28] sm:$0xff] }
   0xe   :  { %541 = vmatpush.msra.mxu1 %v83_v22  ;;  %522 = vmatpush.msra.mxu0 %v66_v24  ;;  %v79_v38 = vld [vmem:[%s9112_s1 + $0xb0] sm:$0xff]  ;;  %v94_v41 = vld [vmem:[%s9112_s1 + $0x128] sm:$0xff]  ;;  %v61_v44 = vld [vmem:[%s9112_s1 + $0x20] sm:$0xff] }
   0xf   :  { %581 = vmatpush.msra.mxu3 %v115_v23  ;;  %562 = vmatpush.msra.mxu2 %v98_v25  ;;  %v111_v39 = vld [vmem:[%s9112_s1 + $0x1b0] sm:$0xff]  ;;  %v78_v42 = vld [vmem:[%s9112_s1 + $0xa8] sm:$0xff]  ;;  %v93_v45 = vld [vmem:[%s9112_s1 + $0x120] sm:$0xff] }
  0x10   :  { %542 = vmatpush.msra.mxu1 %v82_v26  ;;  %523 = vmatpush.msra.mxu0 %v65_v28  ;;  %v110_v43 = vld [vmem:[%s9112_s1 + $0x1a8] sm:$0xff]  ;;  %v77_v46 = vld [vmem:[%s9112_s1 + $0xa0] sm:$0xff]  ;;  %v60_v48 = vld [vmem:[%s9112_s1 + $0x18] sm:$0xff] }
  0x11   :  { %582 = vmatpush.msra.mxu3 %v114_v27  ;;  %563 = vmatpush.msra.mxu2 %v97_v29  ;;  %v109_v47 = vld [vmem:[%s9112_s1 + $0x1a0] sm:$0xff]  ;;  %v92_v49 = vld [vmem:[%s9112_s1 + $0x118] sm:$0xff]  ;;  %v59_v52 = vld [vmem:[%s9112_s1 + $0x10] sm:$0xff] }
  0x12   :  { %543 = vmatpush.msra.mxu1 %v81_v30  ;;  %524 = vmatpush.msra.mxu0 %v64_v32  ;;  %v76_v50 = vld [vmem:[%s9112_s1 + $0x98] sm:$0xff]  ;;  %v91_v53 = vld [vmem:[%s9112_s1 + $0x110] sm:$0xff]  ;;  %v58_v56 = vld [vmem:[%s9112_s1 + $0x8] sm:$0xff] }
  0x13   :  { %583 = vmatpush.msra.mxu3 %v113_v31  ;;  %564 = vmatpush.msra.mxu2 %v96_v33  ;;  %v108_v51 = vld [vmem:[%s9112_s1 + $0x198] sm:$0xff]  ;;  %v75_v54 = vld [vmem:[%s9112_s1 + $0x90] sm:$0xff]  ;;  %v90_v57 = vld [vmem:[%s9112_s1 + $0x108] sm:$0xff] }
  0x14   :  { %544 = vmatpush.msra.mxu1 %v80_v34  ;;  %525 = vmatpush.msra.mxu0 %v63_v36  ;;  %v107_v55 = vld [vmem:[%s9112_s1 + $0x190] sm:$0xff]  ;;  %v74_v58 = vld [vmem:[%s9112_s1 + $0x88] sm:$0xff]  ;;  %v57_v60 = vld [vmem:[%s9112_s1] sm:$0xff] }
  0x15   :  { %584 = vmatpush.msra.mxu3 %v112_v35  ;;  %565 = vmatpush.msra.mxu2 %v95_v37  ;;  %v106_v59 = vld [vmem:[%s9112_s1 + $0x188] sm:$0xff]  ;;  %v89_v61 = vld [vmem:[%s9112_s1 + $0x100] sm:$0xff]  ;;  %v136_v62 = vld [vmem:[%s9112_s1 + $0x278] sm:$0xff] }
  0x16   :  { %545 = vmatpush.msra.mxu1 %v79_v38  ;;  %526 = vmatpush.msra.mxu0 %v62_v40  ;;  %v168_v63 = vld [vmem:[%s9112_s1 + $0x378] sm:$0xff]  ;;  %v73_v0 = vld [vmem:[%s9112_s1 + $0x80] sm:$0xff]  ;;  %v135_v2 = vld [vmem:[%s9112_s1 + $0x270] sm:$0xff] }
  0x17   :  { %585 = vmatpush.msra.mxu3 %v111_v39  ;;  %566 = vmatpush.msra.mxu2 %v94_v41  ;;  %v105_v1 = vld [vmem:[%s9112_s1 + $0x180] sm:$0xff]  ;;  %v152_v3 = vld [vmem:[%s9112_s1 + $0x2f8] sm:$0xff]  ;;  %v167_v4 = vld [vmem:[%s9112_s1 + $0x370] sm:$0xff] }
  0x18   :  { %546 = vmatpush.msra.mxu1 %v78_v42  ;;  %527 = vmatpush.msra.mxu0 %v61_v44  ;;  %v184_v5 = vld [vmem:[%s9112_s1 + $0x3f8] sm:$0xff]  ;;  %v134_v6 = vld [vmem:[%s9112_s1 + $0x268] sm:$0xff]  ;;  %v151_v7 = vld [vmem:[%s9112_s1 + $0x2f0] sm:$0xff] }
  0x19   :  { %586 = vmatpush.msra.mxu3 %v110_v43  ;;  %567 = vmatpush.msra.mxu2 %v93_v45  ;;  %v166_v8 = vld [vmem:[%s9112_s1 + $0x368] sm:$0xff]  ;;  %v183_v9 = vld [vmem:[%s9112_s1 + $0x3f0] sm:$0xff]  ;;  %v133_v10 = vld [vmem:[%s9112_s1 + $0x260] sm:$0xff] }
  0x1a   :  { %547 = vmatpush.msra.mxu1 %v77_v46  ;;  %528 = vmatpush.msra.mxu0 %v60_v48  ;;  %v150_v11 = vld [vmem:[%s9112_s1 + $0x2e8] sm:$0xff]  ;;  %v165_v12 = vld [vmem:[%s9112_s1 + $0x360] sm:$0xff]  ;;  %v132_v14 = vld [vmem:[%s9112_s1 + $0x258] sm:$0xff] }
  0x1b   :  { %587 = vmatpush.msra.mxu3 %v109_v47  ;;  %568 = vmatpush.msra.mxu2 %v92_v49  ;;  %v182_v13 = vld [vmem:[%s9112_s1 + $0x3e8] sm:$0xff]  ;;  %v149_v15 = vld [vmem:[%s9112_s1 + $0x2e0] sm:$0xff]  ;;  %v164_v16 = vld [vmem:[%s9112_s1 + $0x358] sm:$0xff] }
  0x1c   :  { %548 = vmatpush.msra.mxu1 %v76_v50  ;;  %529 = vmatpush.msra.mxu0 %v59_v52  ;;  %v181_v17 = vld [vmem:[%s9112_s1 + $0x3e0] sm:$0xff]  ;;  %v131_v18 = vld [vmem:[%s9112_s1 + $0x250] sm:$0xff]  ;;  %v148_v19 = vld [vmem:[%s9112_s1 + $0x2d8] sm:$0xff] }
  0x1d   :  { %588 = vmatpush.msra.mxu3 %v108_v51  ;;  %569 = vmatpush.msra.mxu2 %v91_v53  ;;  %v163_v20 = vld [vmem:[%s9112_s1 + $0x350] sm:$0xff]  ;;  %v180_v21 = vld [vmem:[%s9112_s1 + $0x3d8] sm:$0xff]  ;;  %v46_v22 = vld [vmem:[%s9111_s0 + $0x8] sm:$0xff] }
  0x1e   :  { %549 = vmatpush.msra.mxu1 %v75_v54  ;;  %530 = vmatpush.msra.mxu0 %v58_v56  ;;  %v130_v23 = vld [vmem:[%s9112_s1 + $0x248] sm:$0xff]  ;;  %v147_v24 = vld [vmem:[%s9112_s1 + $0x2d0] sm:$0xff]  ;;  %455 = vst [vmem:[#allocation1 + $0x10] ss:$2 sm:$0xff] %v46_v22  ;;  %v129_v27 = vld [vmem:[%s9112_s1 + $0x240] sm:$0xff] }
  0x1f   :  { %589 = vmatpush.msra.mxu3 %v107_v55  ;;  %570 = vmatpush.msra.mxu2 %v90_v57  ;;  %v162_v25 = vld [vmem:[%s9112_s1 + $0x348] sm:$0xff]  ;;  %v179_v26 = vld [vmem:[%s9112_s1 + $0x3d0] sm:$0xff]  ;;  %v45_v28 = vld [vmem:[%s9111_s0] sm:$0xff] }
  0x20   :  { %550 = vmatpush.msra.mxu1 %v74_v58  ;;  %531 = vmatpush.msra.mxu0 %v57_v60  ;;  %v146_v29 = vld [vmem:[%s9112_s1 + $0x2c8] sm:$0xff]  ;;  %v161_v30 = vld [vmem:[%s9112_s1 + $0x340] sm:$0xff]  ;;  %453 = vst [vmem:[#allocation1] ss:$2 sm:$0xff] %v45_v28  ;;  %v128_v32 = vld [vmem:[%s9112_s1 + $0x238] sm:$0xff] }
  0x21   :  { %590 = vmatpush.msra.mxu3 %v106_v59  ;;  %571 = vmatpush.msra.mxu2 %v89_v61  ;;  %v178_v31 = vld [vmem:[%s9112_s1 + $0x3c8] sm:$0xff]  ;;  %v145_v33 = vld [vmem:[%s9112_s1 + $0x2c0] sm:$0xff]  ;;  %v160_v34 = vld [vmem:[%s9112_s1 + $0x338] sm:$0xff] }
  0x22   :  { %596 = vmatpush.msrb.mxu0 %v136_v62  ;;  %551 = vmatpush.msra.mxu1 %v73_v0  ;;  %v177_v35 = vld [vmem:[%s9112_s1 + $0x3c0] sm:$0xff]  ;;  %v127_v36 = vld [vmem:[%s9112_s1 + $0x230] sm:$0xff]  ;;  %v144_v37 = vld [vmem:[%s9112_s1 + $0x2b8] sm:$0xff] }
  0x23   :  { %636 = vmatpush.msrb.mxu2 %v168_v63  ;;  %591 = vmatpush.msra.mxu3 %v105_v1  ;;  %v159_v38 = vld [vmem:[%s9112_s1 + $0x330] sm:$0xff]  ;;  %v176_v39 = vld [vmem:[%s9112_s1 + $0x3b8] sm:$0xff]  ;;  %v50_v40 = vld [vmem:[%s9111_s0 + $0x28] sm:$0xff] }
  0x24   :  { %597 = vmatpush.msrb.mxu0 %v135_v2  ;;  %616 = vmatpush.msrb.mxu1 %v152_v3  ;;  %v126_v41 = vld [vmem:[%s9112_s1 + $0x228] sm:$0xff]  ;;  %v143_v42 = vld [vmem:[%s9112_s1 + $0x2b0] sm:$0xff]  ;;  %v49_v43 = vld [vmem:[%s9111_s0 + $0x20] sm:$0xff] }
  0x25   :  { %637 = vmatpush.msrb.mxu2 %v167_v4  ;;  %656 = vmatpush.msrb.mxu3 %v184_v5  ;;  %v6020_v44 = vld.sshfl [vmem:[#allocation1 + $0x10] sm:$0xff pattern:$0x75316420]  ;;  %v6022_v45 = vld.sshfl [vmem:[#allocation1 + $0x18] sm:$0xff pattern:$0x75316420] }
  0x26   :  { %598 = vmatpush.msrb.mxu0 %v134_v6  ;;  %617 = vmatpush.msrb.mxu1 %v151_v7  ;;  %v158_v46 = vld [vmem:[%s9112_s1 + $0x328] sm:$0xff]  ;;  %v175_v47 = vld [vmem:[%s9112_s1 + $0x3b0] sm:$0xff]  ;;  %469 = vst [vmem:[#allocation1 + $0x10] ss:$2 sm:$0xff] %v50_v40  ;;  %v48_v48 = vld [vmem:[%s9111_s0 + $0x18] sm:$0xff] }
  0x27   :  { %638 = vmatpush.msrb.mxu2 %v166_v8  ;;  %657 = vmatpush.msrb.mxu3 %v183_v9  ;;  %v6033_v49 = vld.sshfl [vmem:[#allocation1] sm:$0xff pattern:$0x75316420]  ;;  %v6035_v50 = vld.sshfl [vmem:[#allocation1 + $0x8] sm:$0xff pattern:$0x75316420] }
  0x28   :  { %599 = vmatpush.msrb.mxu0 %v133_v10  ;;  %618 = vmatpush.msrb.mxu1 %v150_v11  ;;  %v125_v51 = vld [vmem:[%s9112_s1 + $0x220] sm:$0xff]  ;;  %v142_v52 = vld [vmem:[%s9112_s1 + $0x2a8] sm:$0xff]  ;;  %468 = vst [vmem:[#allocation1] ss:$2 sm:$0xff] %v49_v43  ;;  %v47_v53 = vld [vmem:[%s9111_s0 + $0x10] sm:$0xff] }
  0x29   :  { %639 = vmatpush.msrb.mxu2 %v165_v12  ;;  %658 = vmatpush.msrb.mxu3 %v182_v13  ;;  %v157_v54 = vld [vmem:[%s9112_s1 + $0x320] sm:$0xff]  ;;  %v174_v55 = vld [vmem:[%s9112_s1 + $0x3a8] sm:$0xff]  ;;  %459 = vst [vmem:[#allocation1 + $0x30] ss:$2 sm:$0xff] %v48_v48  ;;  %v124_v56 = vld [vmem:[%s9112_s1 + $0x218] sm:$0xff] }
  0x2a   :  { %600 = vmatpush.msrb.mxu0 %v132_v14  ;;  %619 = vmatpush.msrb.mxu1 %v149_v15  ;;  %v141_v57 = vld [vmem:[%s9112_s1 + $0x2a0] sm:$0xff]  ;;  %457 = vst [vmem:[#allocation1 + $0x20] ss:$2 sm:$0xff] %v47_v53  ;;  %v156_v58 = vld [vmem:[%s9112_s1 + $0x318] sm:$0xff]  ;;  %v123_v60 = vld [vmem:[%s9112_s1 + $0x210] sm:$0xff] }
  0x2b   :  { %640 = vmatpush.msrb.mxu2 %v164_v16  ;;  %659 = vmatpush.msrb.mxu3 %v181_v17  ;;  %v173_v59 = vld [vmem:[%s9112_s1 + $0x3a0] sm:$0xff]  ;;  %v140_v61 = vld [vmem:[%s9112_s1 + $0x298] sm:$0xff]  ;;  %v155_v62 = vld [vmem:[%s9112_s1 + $0x310] sm:$0xff] }
  0x2c   :  { %601 = vmatpush.msrb.mxu0 %v131_v18  ;;  %620 = vmatpush.msrb.mxu1 %v148_v19  ;;  %v172_v63 = vld [vmem:[%s9112_s1 + $0x398] sm:$0xff]  ;;  %v122_v0 = vld [vmem:[%s9112_s1 + $0x208] sm:$0xff]  ;;  %v139_v1 = vld [vmem:[%s9112_s1 + $0x290] sm:$0xff] }
  0x2d   :  { %641 = vmatpush.msrb.mxu2 %v163_v20  ;;  %660 = vmatpush.msrb.mxu3 %v180_v21  ;;  %v154_v2 = vld [vmem:[%s9112_s1 + $0x308] sm:$0xff]  ;;  %v52_v3 = vld [vmem:[%s9111_s0 + $0x38] sm:$0xff]  ;;  %v171_v4 = vld [vmem:[%s9112_s1 + $0x390] sm:$0xff] }
  0x2e   :  { %602 = vmatpush.msrb.mxu0 %v130_v23  ;;  %621 = vmatpush.msrb.mxu1 %v147_v24  ;;  %v121_v5 = vld [vmem:[%s9112_s1 + $0x200] sm:$0xff]  ;;  %v51_v6 = vld [vmem:[%s9111_s0 + $0x30] sm:$0xff]  ;;  %v138_v9 = vld [vmem:[%s9112_s1 + $0x288] sm:$0xff] }
  0x2f   :  { %642 = vmatpush.msrb.mxu2 %v162_v25  ;;  %661 = vmatpush.msrb.mxu3 %v179_v26  ;;  %v153_v10 = vld [vmem:[%s9112_s1 + $0x300] sm:$0xff]  ;;  %v170_v11 = vld [vmem:[%s9112_s1 + $0x388] sm:$0xff]  ;;  %v200_v14 = vld [vmem:[%s9112_s1 + $0x478] sm:$0xff] }
  0x30   :  { %603 = vmatpush.msrb.mxu0 %v129_v27  ;;  %622 = vmatpush.msrb.mxu1 %v146_v29  ;;  %v466_v7 = vld.sshfl [vmem:[#allocation1 + $0x30] sm:$0xff pattern:$0x75316420]  ;;  %v6097_v8 = vld.sshfl [vmem:[#allocation1 + $0x38] sm:$0xff pattern:$0x75316420] }
  0x31   :  { %643 = vmatpush.msrb.mxu2 %v161_v30  ;;  %662 = vmatpush.msrb.mxu3 %v178_v31  ;;  %471 = vst [vmem:[#allocation1 + $0x30] ss:$2 sm:$0xff] %v52_v3  ;;  %v464_v12 = vld.sshfl [vmem:[#allocation1 + $0x20] sm:$0xff pattern:$0x75316420]  ;;  %v232_v15 = vld [vmem:[%s9112_s1 + $0x578] sm:$0xff] }
  0x32   :  { %604 = vmatpush.msrb.mxu0 %v128_v32  ;;  %623 = vmatpush.msrb.mxu1 %v145_v33  ;;  %v6108_v13 = vld.sshfl [vmem:[#allocation1 + $0x28] sm:$0xff pattern:$0x75316420]  ;;  %v137_v16 = vld [vmem:[%s9112_s1 + $0x280] sm:$0xff]  ;;  %v199_v18 = vld [vmem:[%s9112_s1 + $0x470] sm:$0xff] }
  0x33   :  { %644 = vmatpush.msrb.mxu2 %v160_v34  ;;  %663 = vmatpush.msrb.mxu3 %v177_v35  ;;  %470 = vst [vmem:[#allocation1 + $0x20] ss:$2 sm:$0xff] %v51_v6  ;;  %v169_v17 = vld [vmem:[%s9112_s1 + $0x380] sm:$0xff]  ;;  %v216_v19 = vld [vmem:[%s9112_s1 + $0x4f8] sm:$0xff]  ;;  %v231_v20 = vld [vmem:[%s9112_s1 + $0x570] sm:$0xff] }
  0x34   :  { %605 = vmatpush.msrb.mxu0 %v127_v36  ;;  %624 = vmatpush.msrb.mxu1 %v144_v37  ;;  %v248_v21 = vld [vmem:[%s9112_s1 + $0x5f8] sm:$0xff]  ;;  %v198_v22 = vld [vmem:[%s9112_s1 + $0x468] sm:$0xff]  ;;  %v215_v23 = vld [vmem:[%s9112_s1 + $0x4f0] sm:$0xff] }
  0x35   :  { %645 = vmatpush.msrb.mxu2 %v159_v38  ;;  %664 = vmatpush.msrb.mxu3 %v176_v39  ;;  %v230_v24 = vld [vmem:[%s9112_s1 + $0x568] sm:$0xff]  ;;  %v247_v25 = vld [vmem:[%s9112_s1 + $0x5f0] sm:$0xff]  ;;  %v197_v26 = vld [vmem:[%s9112_s1 + $0x460] sm:$0xff] }
  0x36   :  { %606 = vmatpush.msrb.mxu0 %v126_v41  ;;  %625 = vmatpush.msrb.mxu1 %v143_v42  ;;  %v214_v27 = vld [vmem:[%s9112_s1 + $0x4e8] sm:$0xff]  ;;  %v229_v28 = vld [vmem:[%s9112_s1 + $0x560] sm:$0xff]  ;;  %v196_v30 = vld [vmem:[%s9112_s1 + $0x458] sm:$0xff] }
  0x37   :  { %646 = vmatpush.msrb.mxu2 %v158_v46  ;;  %665 = vmatpush.msrb.mxu3 %v175_v47  ;;  %v246_v29 = vld [vmem:[%s9112_s1 + $0x5e8] sm:$0xff]  ;;  %v213_v31 = vld [vmem:[%s9112_s1 + $0x4e0] sm:$0xff]  ;;  %v6170_v33 = vld.sshfl [vmem:[#allocation1 + $0x10] sm:$0xff pattern:$0x75316420] }
  0x38   :  { %607 = vmatpush.msrb.mxu0 %v125_v51  ;;  %626 = vmatpush.msrb.mxu1 %v142_v52  ;;  %v6168_v32 = vld.sshfl [vmem:[#allocation1] sm:$0xff pattern:$0x75316420]  ;;  %v228_v34 = vld [vmem:[%s9112_s1 + $0x558] sm:$0xff]  ;;  %v54_v37 = vld [vmem:[%s9111_s0 + $0x48] sm:$0xff] }
  0x39   :  { %647 = vmatpush.msrb.mxu2 %v157_v54  ;;  %666 = vmatpush.msrb.mxu3 %v174_v55  ;;  %v53_v35 = vld [vmem:[%s9111_s0 + $0x40] sm:$0xff]  ;;  %v6178_v36 = vld.sshfl [vmem:[#allocation1 + $0x8] sm:$0xff pattern:$0x75316420]  ;;  %v195_v40 = vld [vmem:[%s9112_s1 + $0x450] sm:$0xff] }
  0x3a   :  { %608 = vmatpush.msrb.mxu0 %v124_v56  ;;  %627 = vmatpush.msrb.mxu1 %v141_v57  ;;  %480 = vst [vmem:[#allocation1] ss:$2 sm:$0xff] %v53_v35  ;;  %v6183_v38 = vld.sshfl [vmem:[#allocation1 + $0x18] sm:$0xff pattern:$0x75316420]  ;;  %v245_v39 = vld [vmem:[%s9112_s1 + $0x5e0] sm:$0xff] }
  0x3b   :  { %648 = vmatpush.msrb.mxu2 %v156_v58  ;;  %667 = vmatpush.msrb.mxu3 %v173_v59  ;;  %481 = vst [vmem:[#allocation1 + $0x10] ss:$2 sm:$0xff] %v54_v37  ;;  %v212_v41 = vld [vmem:[%s9112_s1 + $0x4d8] sm:$0xff]  ;;  %v227_v42 = vld [vmem:[%s9112_s1 + $0x550] sm:$0xff]  ;;  %v226_v46 = vld [vmem:[%s9112_s1 + $0x548] sm:$0xff] }
  0x3c   :  { %609 = vmatpush.msrb.mxu0 %v123_v60  ;;  %628 = vmatpush.msrb.mxu1 %v140_v61  ;;  %v244_v43 = vld [vmem:[%s9112_s1 + $0x5d8] sm:$0xff]  ;;  %v243_v47 = vld [vmem:[%s9112_s1 + $0x5d0] sm:$0xff]  ;;  %v193_v48 = vld [vmem:[%s9112_s1 + $0x440] sm:$0xff] }
  0x3d   :  { %649 = vmatpush.msrb.mxu2 %v155_v62  ;;  %668 = vmatpush.msrb.mxu3 %v172_v63  ;;  %v242_v51 = vld [vmem:[%s9112_s1 + $0x5c8] sm:$0xff]  ;;  %v192_v52 = vld [vmem:[%s9112_s1 + $0x438] sm:$0xff]  ;;  %v209_v53 = vld [vmem:[%s9112_s1 + $0x4c0] sm:$0xff] }
  0x3e   :  { %610 = vmatpush.msrb.mxu0 %v122_v0  ;;  %629 = vmatpush.msrb.mxu1 %v139_v1 }
  0x3f   :  { %650 = vmatpush.msrb.mxu2 %v154_v2  ;;  %669 = vmatpush.msrb.mxu3 %v171_v4 }
  0x40   :  { %572 = vmatmul.f32.vlgmr.msra.gmra.mxu2 %v6020_v44  ;;  %611 = vmatpush.msrb.mxu0 %v121_v5  ;;  %v194_v44 = vld [vmem:[%s9112_s1 + $0x448] sm:$0xff] }
  0x41   :  { %630 = vmatpush.msrb.mxu1 %v138_v9  ;;  %651 = vmatpush.msrb.mxu2 %v153_v10 }
  0x42   :  { %670 = vmatpush.msrb.mxu3 %v170_v11  ;;  %532 = vmatmul.f32.vlgmr.msra.gmra.mxu0 %v6033_v49  ;;  %v210_v49 = vld [vmem:[%s9112_s1 + $0x4c8] sm:$0xff] }
  0x43   :  { %592 = vmatmul.f32.vlgmr.msra.gmra.mxu3 %v6022_v45  ;;  %676 = vmatpush.msra.mxu0 %v200_v14  ;;  %v211_v45 = vld [vmem:[%s9112_s1 + $0x4d0] sm:$0xff] }
  0x44   :  { %716 = vmatpush.msra.mxu2 %v232_v15  ;;  %631 = vmatpush.msrb.mxu1 %v137_v16 }
  0x45   :  { %671 = vmatpush.msrb.mxu3 %v169_v17  ;;  %552 = vmatmul.f32.vlgmr.msra.gmra.mxu1 %v6035_v50  ;;  %v225_v50 = vld [vmem:[%s9112_s1 + $0x540] sm:$0xff] }
  0x46   :  { %677 = vmatpush.msra.mxu0 %v199_v18  ;;  %696 = vmatpush.msra.mxu1 %v216_v19 }
  0x47   :  { %717 = vmatpush.msra.mxu2 %v231_v20  ;;  %736 = vmatpush.msra.mxu3 %v248_v21 }
  0x48   :  { %678 = vmatpush.msra.mxu0 %v198_v22  ;;  %697 = vmatpush.msra.mxu1 %v215_v23 }
  0x49   :  { %718 = vmatpush.msra.mxu2 %v230_v24  ;;  %737 = vmatpush.msra.mxu3 %v247_v25 }
  0x4a   :  { %652 = vmatmul.f32.vlgmr.msrb.gmra.mxu2 %v466_v7  ;;  %679 = vmatpush.msra.mxu0 %v197_v26 }
  0x4b   :  { %698 = vmatpush.msra.mxu1 %v214_v27  ;;  %719 = vmatpush.msra.mxu2 %v229_v28 }
  0x4c   :  { %738 = vmatpush.msra.mxu3 %v246_v29  ;;  %612 = vmatmul.f32.vlgmr.msrb.gmra.mxu0 %v464_v12 }
  0x4d   :  { %672 = vmatmul.f32.vlgmr.msrb.gmra.mxu3 %v6097_v8  ;;  %680 = vmatpush.msra.mxu0 %v196_v30 }
  0x4e   :  { %699 = vmatpush.msra.mxu1 %v213_v31  ;;  %720 = vmatpush.msra.mxu2 %v228_v34 }
  0x4f   :  { %739 = vmatpush.msra.mxu3 %v245_v39  ;;  %632 = vmatmul.f32.vlgmr.msrb.gmra.mxu1 %v6108_v13 }
  0x50   :  { %681 = vmatpush.msra.mxu0 %v195_v40  ;;  %700 = vmatpush.msra.mxu1 %v212_v41 }
  0x51   :  { %721 = vmatpush.msra.mxu2 %v227_v42  ;;  %740 = vmatpush.msra.mxu3 %v244_v43 }
  0x52   :  { %682 = vmatpush.msra.mxu0 %v194_v44  ;;  %701 = vmatpush.msra.mxu1 %v211_v45 }
  0x53   :  { %722 = vmatpush.msra.mxu2 %v226_v46  ;;  %741 = vmatpush.msra.mxu3 %v243_v47 }
  0x54   :  { %18 = vsyncpa [#allocation3], 0  ;;  %683 = vmatpush.msra.mxu0 %v193_v48  ;;  %702 = vmatpush.msra.mxu1 %v210_v49  ;;  %v224_v54 = vld [vmem:[%s9112_s1 + $0x538] sm:$0xff]  ;;  %v241_v55 = vld [vmem:[%s9112_s1 + $0x5c0] sm:$0xff]  ;;  %vm1001_vm0 = vcmask 1043456   ;;  %vm997_vm1 = vcmask 31744  }
  0x55   :  { %723 = vmatpush.msra.mxu2 %v225_v50  ;;  %742 = vmatpush.msra.mxu3 %v242_v51  ;;  %v191_v56 = vld [vmem:[%s9112_s1 + $0x430] sm:$0xff]  ;;  %v208_v57 = vld [vmem:[%s9112_s1 + $0x4b8] sm:$0xff]  ;;  %v190_v60 = vld [vmem:[%s9112_s1 + $0x428] sm:$0xff]  ;;  %vm1043_vm2 = vcmask 97280   ;;  %vm1139_vm3 = vcmask 1041408   ;;  %s3890_s17 = sshll.u32 %s9124_s13, 4  ;;  %s3891_s17 = int_to_ptr.hbm [resolvable:$true] %s3890_s17 }
  0x56   :  { %684 = vmatpush.msra.mxu0 %v192_v52  ;;  %703 = vmatpush.msra.mxu1 %v209_v53  ;;  %v223_v58 = vld [vmem:[%s9112_s1 + $0x530] sm:$0xff]  ;;  %v240_v59 = vld [vmem:[%s9112_s1 + $0x5b8] sm:$0xff]  ;;  %v222_v62 = vld [vmem:[%s9112_s1 + $0x528] sm:$0xff]  ;;  %vm3881_vm11 = vcmask 25600  }
  0x57   :  { %724 = vmatpush.msra.mxu2 %v224_v54  ;;  %743 = vmatpush.msra.mxu3 %v241_v55  ;;  %v207_v61 = vld [vmem:[%s9112_s1 + $0x4b0] sm:$0xff]  ;;  %v189_v0 = vld [vmem:[%s9112_s1 + $0x420] sm:$0xff]  ;;  %v206_v1 = vld [vmem:[%s9112_s1 + $0x4a8] sm:$0xff] }
  0x58   :  { %685 = vmatpush.msra.mxu0 %v191_v56  ;;  %704 = vmatpush.msra.mxu1 %v208_v57  ;;  %v239_v63 = vld [vmem:[%s9112_s1 + $0x5b0] sm:$0xff]  ;;  %v221_v2 = vld [vmem:[%s9112_s1 + $0x520] sm:$0xff]  ;;  %v238_v3 = vld [vmem:[%s9112_s1 + $0x5a8] sm:$0xff] }
  0x59   :  { %725 = vmatpush.msra.mxu2 %v223_v58  ;;  %744 = vmatpush.msra.mxu3 %v240_v59  ;;  %v188_v4 = vld [vmem:[%s9112_s1 + $0x418] sm:$0xff]  ;;  %v205_v5 = vld [vmem:[%s9112_s1 + $0x4a0] sm:$0xff]  ;;  %v187_v8 = vld [vmem:[%s9112_s1 + $0x410] sm:$0xff] }
  0x5a   :  { %686 = vmatpush.msra.mxu0 %v190_v60  ;;  %705 = vmatpush.msra.mxu1 %v207_v61  ;;  %v220_v6 = vld [vmem:[%s9112_s1 + $0x518] sm:$0xff]  ;;  %v237_v7 = vld [vmem:[%s9112_s1 + $0x5a0] sm:$0xff]  ;;  %v219_v10 = vld [vmem:[%s9112_s1 + $0x510] sm:$0xff] }
  0x5b   :  { %726 = vmatpush.msra.mxu2 %v222_v62  ;;  %745 = vmatpush.msra.mxu3 %v239_v63  ;;  %v204_v9 = vld [vmem:[%s9112_s1 + $0x498] sm:$0xff]  ;;  %v186_v12 = vld [vmem:[%s9112_s1 + $0x408] sm:$0xff]  ;;  %v203_v13 = vld [vmem:[%s9112_s1 + $0x490] sm:$0xff] }
  0x5c   :  { %687 = vmatpush.msra.mxu0 %v189_v0  ;;  %706 = vmatpush.msra.mxu1 %v206_v1  ;;  %v236_v11 = vld [vmem:[%s9112_s1 + $0x598] sm:$0xff]  ;;  %v218_v14 = vld [vmem:[%s9112_s1 + $0x508] sm:$0xff]  ;;  %v235_v15 = vld [vmem:[%s9112_s1 + $0x590] sm:$0xff] }
  0x5d   :  { %727 = vmatpush.msra.mxu2 %v221_v2  ;;  %746 = vmatpush.msra.mxu3 %v238_v3  ;;  %v185_v16 = vld [vmem:[%s9112_s1 + $0x400] sm:$0xff]  ;;  %v202_v17 = vld [vmem:[%s9112_s1 + $0x488] sm:$0xff]  ;;  %v264_v20 = vld [vmem:[%s9112_s1 + $0x678] sm:$0xff] }
  0x5e   :  { %688 = vmatpush.msra.mxu0 %v188_v4  ;;  %707 = vmatpush.msra.mxu1 %v205_v5  ;;  %v217_v18 = vld [vmem:[%s9112_s1 + $0x500] sm:$0xff]  ;;  %v234_v19 = vld [vmem:[%s9112_s1 + $0x588] sm:$0xff]  ;;  %v296_v21 = vld [vmem:[%s9112_s1 + $0x778] sm:$0xff] }
  0x5f   :  { %728 = vmatpush.msra.mxu2 %v220_v6  ;;  %747 = vmatpush.msra.mxu3 %v237_v7  ;;  %v201_v22 = vld [vmem:[%s9112_s1 + $0x480] sm:$0xff]  ;;  %v263_v24 = vld [vmem:[%s9112_s1 + $0x670] sm:$0xff]  ;;  %v280_v25 = vld [vmem:[%s9112_s1 + $0x6f8] sm:$0xff] }
  0x60   :  { %689 = vmatpush.msra.mxu0 %v187_v8  ;;  %708 = vmatpush.msra.mxu1 %v204_v9  ;;  %v233_v23 = vld [vmem:[%s9112_s1 + $0x580] sm:$0xff]  ;;  %v295_v26 = vld [vmem:[%s9112_s1 + $0x770] sm:$0xff]  ;;  %v312_v27 = vld [vmem:[%s9112_s1 + $0x7f8] sm:$0xff] }
  0x61   :  { %729 = vmatpush.msra.mxu2 %v219_v10  ;;  %748 = vmatpush.msra.mxu3 %v236_v11  ;;  %v262_v28 = vld [vmem:[%s9112_s1 + $0x668] sm:$0xff]  ;;  %v279_v29 = vld [vmem:[%s9112_s1 + $0x6f0] sm:$0xff]  ;;  %v6380_v39 = vld.sshfl [vmem:[#allocation1 + $0x38] sm:$0xff pattern:$0x75316420] }
  0x62   :  { %690 = vmatpush.msra.mxu0 %v186_v12  ;;  %709 = vmatpush.msra.mxu1 %v203_v13  ;;  %v294_v30 = vld [vmem:[%s9112_s1 + $0x768] sm:$0xff]  ;;  %v311_v31 = vld [vmem:[%s9112_s1 + $0x7f0] sm:$0xff]  ;;  %v293_v40 = vld [vmem:[%s9112_s1 + $0x760] sm:$0xff] }
  0x63   :  { %730 = vmatpush.msra.mxu2 %v218_v14  ;;  %749 = vmatpush.msra.mxu3 %v235_v15  ;;  %v6367_v34 = vld.sshfl [vmem:[#allocation1 + $0x30] sm:$0xff pattern:$0x75316420]  ;;  %v278_v35 = vld [vmem:[%s9112_s1 + $0x6e8] sm:$0xff]  ;;  %v260_v42 = vld [vmem:[%s9112_s1 + $0x658] sm:$0xff] }
  0x64   :  { %691 = vmatpush.msra.mxu0 %v185_v16  ;;  %710 = vmatpush.msra.mxu1 %v202_v17  ;;  %v6375_v37 = vld.sshfl [vmem:[#allocation1 + $0x28] sm:$0xff pattern:$0x75316420]  ;;  %v277_v43 = vld [vmem:[%s9112_s1 + $0x6e0] sm:$0xff]  ;;  %v292_v44 = vld [vmem:[%s9112_s1 + $0x758] sm:$0xff] }
  0x65   :  { %731 = vmatpush.msra.mxu2 %v217_v18  ;;  %750 = vmatpush.msra.mxu3 %v234_v19  ;;  %v310_v41 = vld [vmem:[%s9112_s1 + $0x7e8] sm:$0xff]  ;;  %v309_v45 = vld [vmem:[%s9112_s1 + $0x7e0] sm:$0xff]  ;;  %v259_v46 = vld [vmem:[%s9112_s1 + $0x650] sm:$0xff] }
  0x66   :  { %692 = vmatmul.f32.vlgmr.msra.gmra.mxu0 %v6168_v32  ;;  %732 = vmatmul.f32.vlgmr.msra.gmra.mxu2 %v6170_v33  ;;  %v261_v32 = vld [vmem:[%s9112_s1 + $0x660] sm:$0xff]  ;;  %v276_v47 = vld [vmem:[%s9112_s1 + $0x6d8] sm:$0xff]  ;;  %v291_v48 = vld [vmem:[%s9112_s1 + $0x750] sm:$0xff] }
  0x67   :  { %756 = vmatpush.msrb.mxu0 %v264_v20  ;;  %796 = vmatpush.msrb.mxu2 %v296_v21  ;;  %v6365_v33 = vld.sshfl [vmem:[#allocation1 + $0x20] sm:$0xff pattern:$0x75316420]  ;;  %v308_v49 = vld [vmem:[%s9112_s1 + $0x7d8] sm:$0xff]  ;;  %v258_v50 = vld [vmem:[%s9112_s1 + $0x648] sm:$0xff] }
  0x68   :  { %711 = vmatpush.msra.mxu1 %v201_v22  ;;  %751 = vmatpush.msra.mxu3 %v233_v23  ;;  %v275_v51 = vld [vmem:[%s9112_s1 + $0x6d0] sm:$0xff]  ;;  %v290_v52 = vld [vmem:[%s9112_s1 + $0x748] sm:$0xff]  ;;  %v257_v54 = vld [vmem:[%s9112_s1 + $0x640] sm:$0xff] }
  0x69   :  { %712 = vmatmul.f32.vlgmr.msra.gmra.mxu1 %v6178_v36  ;;  %752 = vmatmul.f32.vlgmr.msra.gmra.mxu3 %v6183_v38  ;;  %v55_v36 = vld [vmem:[%s9111_s0 + $0x50] sm:$0xff]  ;;  %v56_v38 = vld [vmem:[%s9111_s0 + $0x58] sm:$0xff]  ;;  %v274_v55 = vld [vmem:[%s9112_s1 + $0x6c8] sm:$0xff] }
  0x6a   :  { %757 = vmatpush.msrb.mxu0 %v263_v24  ;;  %776 = vmatpush.msrb.mxu1 %v280_v25  ;;  %482 = vst [vmem:[#allocation1 + $0x20] ss:$2 sm:$0xff] %v55_v36  ;;  %v307_v53 = vld [vmem:[%s9112_s1 + $0x7d0] sm:$0xff]  ;;  %v289_v56 = vld [vmem:[%s9112_s1 + $0x740] sm:$0xff]  ;;  %v306_v57 = vld [vmem:[%s9112_s1 + $0x7c8] sm:$0xff] }
  0x6b   :  { %797 = vmatpush.msrb.mxu2 %v295_v26  ;;  %816 = vmatpush.msrb.mxu3 %v312_v27  ;;  %483 = vst [vmem:[#allocation1 + $0x30] ss:$2 sm:$0xff] %v56_v38  ;;  %v256_v58 = vld [vmem:[%s9112_s1 + $0x638] sm:$0xff]  ;;  %v273_v59 = vld [vmem:[%s9112_s1 + $0x6c0] sm:$0xff]  ;;  %v255_v62 = vld [vmem:[%s9112_s1 + $0x630] sm:$0xff] }
  0x6c   :  { %758 = vmatpush.msrb.mxu0 %v262_v28  ;;  %777 = vmatpush.msrb.mxu1 %v279_v29  ;;  %v288_v60 = vld [vmem:[%s9112_s1 + $0x738] sm:$0xff]  ;;  %v305_v61 = vld [vmem:[%s9112_s1 + $0x7c0] sm:$0xff]  ;;  %v287_v0 = vld [vmem:[%s9112_s1 + $0x730] sm:$0xff] }
  0x6d   :  { %798 = vmatpush.msrb.mxu2 %v294_v30  ;;  %817 = vmatpush.msrb.mxu3 %v311_v31  ;;  %v272_v63 = vld [vmem:[%s9112_s1 + $0x6b8] sm:$0xff]  ;;  %v254_v2 = vld [vmem:[%s9112_s1 + $0x628] sm:$0xff]  ;;  %v271_v3 = vld [vmem:[%s9112_s1 + $0x6b0] sm:$0xff] }
  0x6e   :  { %759 = vmatpush.msrb.mxu0 %v261_v32  ;;  %778 = vmatpush.msrb.mxu1 %v278_v35  ;;  %v304_v1 = vld [vmem:[%s9112_s1 + $0x7b8] sm:$0xff]  ;;  %v286_v4 = vld [vmem:[%s9112_s1 + $0x728] sm:$0xff]  ;;  %v303_v5 = vld [vmem:[%s9112_s1 + $0x7b0] sm:$0xff] }
  0x6f   :  { %799 = vmatpush.msrb.mxu2 %v293_v40  ;;  %818 = vmatpush.msrb.mxu3 %v310_v41  ;;  %v253_v6 = vld [vmem:[%s9112_s1 + $0x620] sm:$0xff]  ;;  %v270_v7 = vld [vmem:[%s9112_s1 + $0x6a8] sm:$0xff]  ;;  %v252_v10 = vld [vmem:[%s9112_s1 + $0x618] sm:$0xff] }
  0x70   :  { %760 = vmatpush.msrb.mxu0 %v260_v42  ;;  %779 = vmatpush.msrb.mxu1 %v277_v43  ;;  %v285_v8 = vld [vmem:[%s9112_s1 + $0x720] sm:$0xff]  ;;  %v302_v9 = vld [vmem:[%s9112_s1 + $0x7a8] sm:$0xff]  ;;  %v284_v12 = vld [vmem:[%s9112_s1 + $0x718] sm:$0xff] }
  0x71   :  { %800 = vmatpush.msrb.mxu2 %v292_v44  ;;  %819 = vmatpush.msrb.mxu3 %v309_v45  ;;  %v269_v11 = vld [vmem:[%s9112_s1 + $0x6a0] sm:$0xff]  ;;  %v251_v14 = vld [vmem:[%s9112_s1 + $0x610] sm:$0xff]  ;;  %v268_v15 = vld [vmem:[%s9112_s1 + $0x698] sm:$0xff] }
  0x72   :  { %761 = vmatpush.msrb.mxu0 %v259_v46  ;;  %780 = vmatpush.msrb.mxu1 %v276_v47  ;;  %v301_v13 = vld [vmem:[%s9112_s1 + $0x7a0] sm:$0xff]  ;;  %v283_v16 = vld [vmem:[%s9112_s1 + $0x710] sm:$0xff]  ;;  %v300_v17 = vld [vmem:[%s9112_s1 + $0x798] sm:$0xff] }
  0x73   :  { %801 = vmatpush.msrb.mxu2 %v291_v48  ;;  %820 = vmatpush.msrb.mxu3 %v308_v49  ;;  %v250_v18 = vld [vmem:[%s9112_s1 + $0x608] sm:$0xff]  ;;  %v267_v19 = vld [vmem:[%s9112_s1 + $0x690] sm:$0xff]  ;;  %v249_v22 = vld [vmem:[%s9112_s1 + $0x600] sm:$0xff] }
  0x74   :  { %762 = vmatpush.msrb.mxu0 %v258_v50  ;;  %781 = vmatpush.msrb.mxu1 %v275_v51  ;;  %v282_v20 = vld [vmem:[%s9112_s1 + $0x708] sm:$0xff]  ;;  %v299_v21 = vld [vmem:[%s9112_s1 + $0x790] sm:$0xff]  ;;  %v281_v24 = vld [vmem:[%s9112_s1 + $0x700] sm:$0xff] }
  0x75   :  { %802 = vmatpush.msrb.mxu2 %v290_v52  ;;  %821 = vmatpush.msrb.mxu3 %v307_v53  ;;  %v266_v23 = vld [vmem:[%s9112_s1 + $0x688] sm:$0xff]  ;;  %v328_v26 = vld [vmem:[%s9112_s1 + $0x878] sm:$0xff]  ;;  %v265_v28 = vld [vmem:[%s9112_s1 + $0x680] sm:$0xff] }
  0x76   :  { %763 = vmatpush.msrb.mxu0 %v257_v54  ;;  %782 = vmatpush.msrb.mxu1 %v274_v55  ;;  %v298_v25 = vld [vmem:[%s9112_s1 + $0x788] sm:$0xff]  ;;  %v360_v27 = vld [vmem:[%s9112_s1 + $0x978] sm:$0xff]  ;;  %v297_v29 = vld [vmem:[%s9112_s1 + $0x780] sm:$0xff] }
  0x77   :  { %803 = vmatpush.msrb.mxu2 %v289_v56  ;;  %822 = vmatpush.msrb.mxu3 %v306_v57  ;;  %v327_v30 = vld [vmem:[%s9112_s1 + $0x870] sm:$0xff]  ;;  %v344_v31 = vld [vmem:[%s9112_s1 + $0x8f8] sm:$0xff]  ;;  %v358_v36 = vld [vmem:[%s9112_s1 + $0x968] sm:$0xff] }
  0x78   :  { %764 = vmatpush.msrb.mxu0 %v256_v58  ;;  %783 = vmatpush.msrb.mxu1 %v273_v59  ;;  %v359_v32 = vld [vmem:[%s9112_s1 + $0x970] sm:$0xff]  ;;  %v325_v38 = vld [vmem:[%s9112_s1 + $0x860] sm:$0xff]  ;;  %v374_v41 = vld [vmem:[%s9112_s1 + $0x9e8] sm:$0xff] }
  0x79   :  { %804 = vmatpush.msrb.mxu2 %v288_v60  ;;  %823 = vmatpush.msrb.mxu3 %v305_v61  ;;  %v343_v35 = vld [vmem:[%s9112_s1 + $0x8f0] sm:$0xff]  ;;  %v357_v40 = vld [vmem:[%s9112_s1 + $0x960] sm:$0xff]  ;;  %v324_v42 = vld [vmem:[%s9112_s1 + $0x858] sm:$0xff] }
  0x7a   :  { %765 = vmatpush.msrb.mxu0 %v255_v62  ;;  %784 = vmatpush.msrb.mxu1 %v272_v63  ;;  %v341_v43 = vld [vmem:[%s9112_s1 + $0x8e0] sm:$0xff]  ;;  %v356_v44 = vld [vmem:[%s9112_s1 + $0x958] sm:$0xff]  ;;  %v323_v46 = vld [vmem:[%s9112_s1 + $0x850] sm:$0xff] }
  0x7b   :  { %805 = vmatpush.msrb.mxu2 %v287_v0  ;;  %824 = vmatpush.msrb.mxu3 %v304_v1  ;;  %v373_v45 = vld [vmem:[%s9112_s1 + $0x9e0] sm:$0xff]  ;;  %v340_v47 = vld [vmem:[%s9112_s1 + $0x8d8] sm:$0xff]  ;;  %v355_v48 = vld [vmem:[%s9112_s1 + $0x950] sm:$0xff] }
  0x7c   :  { %766 = vmatpush.msrb.mxu0 %v254_v2  ;;  %785 = vmatpush.msrb.mxu1 %v271_v3  ;;  %v372_v49 = vld [vmem:[%s9112_s1 + $0x9d8] sm:$0xff]  ;;  %v322_v50 = vld [vmem:[%s9112_s1 + $0x848] sm:$0xff]  ;;  %v339_v51 = vld [vmem:[%s9112_s1 + $0x8d0] sm:$0xff] }
  0x7d   :  { %806 = vmatpush.msrb.mxu2 %v286_v4  ;;  %825 = vmatpush.msrb.mxu3 %v303_v5  ;;  %v354_v52 = vld [vmem:[%s9112_s1 + $0x948] sm:$0xff]  ;;  %v371_v53 = vld [vmem:[%s9112_s1 + $0x9d0] sm:$0xff]  ;;  %v321_v54 = vld [vmem:[%s9112_s1 + $0x840] sm:$0xff] }
  0x7e   :  { %767 = vmatpush.msrb.mxu0 %v253_v6  ;;  %786 = vmatpush.msrb.mxu1 %v270_v7  ;;  %v338_v55 = vld [vmem:[%s9112_s1 + $0x8c8] sm:$0xff]  ;;  %v353_v56 = vld [vmem:[%s9112_s1 + $0x940] sm:$0xff]  ;;  %v320_v58 = vld [vmem:[%s9112_s1 + $0x838] sm:$0xff] }
  0x7f   :  { %807 = vmatpush.msrb.mxu2 %v285_v8  ;;  %826 = vmatpush.msrb.mxu3 %v302_v9  ;;  %v370_v57 = vld [vmem:[%s9112_s1 + $0x9c8] sm:$0xff]  ;;  %v337_v59 = vld [vmem:[%s9112_s1 + $0x8c0] sm:$0xff]  ;;  %v352_v60 = vld [vmem:[%s9112_s1 + $0x938] sm:$0xff] }
  0x80   :  { %768 = vmatpush.msrb.mxu0 %v252_v10  ;;  %787 = vmatpush.msrb.mxu1 %v269_v11  ;;  %v369_v61 = vld [vmem:[%s9112_s1 + $0x9c0] sm:$0xff]  ;;  %v319_v62 = vld [vmem:[%s9112_s1 + $0x830] sm:$0xff]  ;;  %v336_v63 = vld [vmem:[%s9112_s1 + $0x8b8] sm:$0xff] }
  0x81   :  { %808 = vmatpush.msrb.mxu2 %v284_v12  ;;  %827 = vmatpush.msrb.mxu3 %v301_v13  ;;  %v351_v0 = vld [vmem:[%s9112_s1 + $0x930] sm:$0xff]  ;;  %v368_v1 = vld [vmem:[%s9112_s1 + $0x9b8] sm:$0xff]  ;;  %v318_v2 = vld [vmem:[%s9112_s1 + $0x828] sm:$0xff] }
  0x82   :  { %769 = vmatpush.msrb.mxu0 %v251_v14  ;;  %788 = vmatpush.msrb.mxu1 %v268_v15  ;;  %v335_v3 = vld [vmem:[%s9112_s1 + $0x8b0] sm:$0xff]  ;;  %v350_v4 = vld [vmem:[%s9112_s1 + $0x928] sm:$0xff]  ;;  %v317_v6 = vld [vmem:[%s9112_s1 + $0x820] sm:$0xff] }
  0x83   :  { %809 = vmatpush.msrb.mxu2 %v283_v16  ;;  %828 = vmatpush.msrb.mxu3 %v300_v17  ;;  %v367_v5 = vld [vmem:[%s9112_s1 + $0x9b0] sm:$0xff]  ;;  %v334_v7 = vld [vmem:[%s9112_s1 + $0x8a8] sm:$0xff]  ;;  %v349_v8 = vld [vmem:[%s9112_s1 + $0x920] sm:$0xff] }
  0x84   :  { %770 = vmatpush.msrb.mxu0 %v250_v18  ;;  %789 = vmatpush.msrb.mxu1 %v267_v19  ;;  %v366_v9 = vld [vmem:[%s9112_s1 + $0x9a8] sm:$0xff]  ;;  %v316_v10 = vld [vmem:[%s9112_s1 + $0x818] sm:$0xff]  ;;  %v333_v11 = vld [vmem:[%s9112_s1 + $0x8a0] sm:$0xff] }
  0x85   :  { %810 = vmatpush.msrb.mxu2 %v282_v20  ;;  %829 = vmatpush.msrb.mxu3 %v299_v21  ;;  %v348_v12 = vld [vmem:[%s9112_s1 + $0x918] sm:$0xff]  ;;  %v365_v13 = vld [vmem:[%s9112_s1 + $0x9a0] sm:$0xff]  ;;  %v315_v14 = vld [vmem:[%s9112_s1 + $0x810] sm:$0xff] }
  0x86   :  { %771 = vmatpush.msrb.mxu0 %v249_v22  ;;  %790 = vmatpush.msrb.mxu1 %v266_v23  ;;  %v332_v15 = vld [vmem:[%s9112_s1 + $0x898] sm:$0xff]  ;;  %v347_v16 = vld [vmem:[%s9112_s1 + $0x910] sm:$0xff]  ;;  %v314_v18 = vld [vmem:[%s9112_s1 + $0x808] sm:$0xff] }
  0x87   :  { %811 = vmatpush.msrb.mxu2 %v281_v24  ;;  %830 = vmatpush.msrb.mxu3 %v298_v25  ;;  %v364_v17 = vld [vmem:[%s9112_s1 + $0x998] sm:$0xff]  ;;  %v331_v19 = vld [vmem:[%s9112_s1 + $0x890] sm:$0xff]  ;;  %v346_v20 = vld [vmem:[%s9112_s1 + $0x908] sm:$0xff] }
  0x88   :  { %772 = vmatmul.f32.vlgmr.msrb.gmra.mxu0 %v6365_v33  ;;  %812 = vmatmul.f32.vlgmr.msrb.gmra.mxu2 %v6367_v34  ;;  %v376_v33 = vld [vmem:[%s9112_s1 + $0x9f8] sm:$0xff]  ;;  %v326_v34 = vld [vmem:[%s9112_s1 + $0x868] sm:$0xff]  ;;  %v363_v21 = vld [vmem:[%s9112_s1 + $0x990] sm:$0xff] }
  0x89   :  { %836 = vmatpush.msra.mxu0 %v328_v26  ;;  %876 = vmatpush.msra.mxu2 %v360_v27  ;;  %v313_v22 = vld [vmem:[%s9112_s1 + $0x800] sm:$0xff]  ;;  %v330_v23 = vld [vmem:[%s9112_s1 + $0x888] sm:$0xff]  ;;  %v486_v27 = vld.sshfl [vmem:[#allocation1 + $0x10] sm:$0xff pattern:$0x75316420] }
  0x8a   :  { %791 = vmatpush.msrb.mxu1 %v265_v28  ;;  %831 = vmatpush.msrb.mxu3 %v297_v29  ;;  %v345_v24 = vld [vmem:[%s9112_s1 + $0x900] sm:$0xff]  ;;  %v362_v25 = vld [vmem:[%s9112_s1 + $0x988] sm:$0xff]  ;;  %v392_v28 = vld [vmem:[%s9112_s1 + $0xa78] sm:$0xff] }
  0x8b   :  { %792 = vmatmul.f32.vlgmr.msrb.gmra.mxu1 %v6375_v37  ;;  %832 = vmatmul.f32.vlgmr.msrb.gmra.mxu3 %v6380_v39  ;;  %v375_v37 = vld [vmem:[%s9112_s1 + $0x9f0] sm:$0xff]  ;;  %v342_v39 = vld [vmem:[%s9112_s1 + $0x8e8] sm:$0xff]  ;;  %v484_v26 = vld.sshfl [vmem:[#allocation1] sm:$0xff pattern:$0x75316420] }
  0x8c   :  { %837 = vmatpush.msra.mxu0 %v327_v30  ;;  %856 = vmatpush.msra.mxu1 %v344_v31  ;;  %v424_v29 = vld [vmem:[%s9112_s1 + $0xb78] sm:$0xff]  ;;  %v329_v30 = vld [vmem:[%s9112_s1 + $0x880] sm:$0xff] }
  0x8d   :  { %877 = vmatpush.msra.mxu2 %v359_v32  ;;  %896 = vmatpush.msra.mxu3 %v376_v33  ;;  %v361_v31 = vld [vmem:[%s9112_s1 + $0x980] sm:$0xff]  ;;  %v485_v32 = vld.sshfl [vmem:[#allocation1 + $0x8] sm:$0xff pattern:$0x75316420] }
  0x8e   :  { %838 = vmatpush.msra.mxu0 %v326_v34  ;;  %857 = vmatpush.msra.mxu1 %v343_v35  ;;  %v487_v33 = vld.sshfl [vmem:[#allocation1 + $0x18] sm:$0xff pattern:$0x75316420]  ;;  %v391_v34 = vld [vmem:[%s9112_s1 + $0xa70] sm:$0xff] }
  0x8f   :  { %878 = vmatpush.msra.mxu2 %v358_v36  ;;  %897 = vmatpush.msra.mxu3 %v375_v37  ;;  %v408_v35 = vld [vmem:[%s9112_s1 + $0xaf8] sm:$0xff]  ;;  %v423_v36 = vld [vmem:[%s9112_s1 + $0xb70] sm:$0xff] }
  0x90   :  { %839 = vmatpush.msra.mxu0 %v325_v38  ;;  %858 = vmatpush.msra.mxu1 %v342_v39  ;;  %v440_v37 = vld [vmem:[%s9112_s1 + $0xbf8] sm:$0xff]  ;;  %v390_v38 = vld [vmem:[%s9112_s1 + $0xa68] sm:$0xff]  ;;  %v407_v39 = vld [vmem:[%s9112_s1 + $0xaf0] sm:$0xff] }
  0x91   :  { %879 = vmatpush.msra.mxu2 %v357_v40  ;;  %898 = vmatpush.msra.mxu3 %v374_v41  ;;  %v422_v40 = vld [vmem:[%s9112_s1 + $0xb68] sm:$0xff]  ;;  %v439_v41 = vld [vmem:[%s9112_s1 + $0xbf0] sm:$0xff] }
  0x92   :  { %840 = vmatpush.msra.mxu0 %v324_v42  ;;  %859 = vmatpush.msra.mxu1 %v341_v43  ;;  %v389_v42 = vld [vmem:[%s9112_s1 + $0xa60] sm:$0xff]  ;;  %v406_v43 = vld [vmem:[%s9112_s1 + $0xae8] sm:$0xff] }
  0x93   :  { %880 = vmatpush.msra.mxu2 %v356_v44  ;;  %899 = vmatpush.msra.mxu3 %v373_v45  ;;  %v421_v44 = vld [vmem:[%s9112_s1 + $0xb60] sm:$0xff]  ;;  %v438_v45 = vld [vmem:[%s9112_s1 + $0xbe8] sm:$0xff] }
  0x94   :  { %841 = vmatpush.msra.mxu0 %v323_v46  ;;  %860 = vmatpush.msra.mxu1 %v340_v47  ;;  %v388_v46 = vld [vmem:[%s9112_s1 + $0xa58] sm:$0xff]  ;;  %v405_v47 = vld [vmem:[%s9112_s1 + $0xae0] sm:$0xff] }
  0x95   :  { %881 = vmatpush.msra.mxu2 %v355_v48  ;;  %900 = vmatpush.msra.mxu3 %v372_v49  ;;  %v420_v48 = vld [vmem:[%s9112_s1 + $0xb58] sm:$0xff]  ;;  %v437_v49 = vld [vmem:[%s9112_s1 + $0xbe0] sm:$0xff] }
  0x96   :  { %842 = vmatpush.msra.mxu0 %v322_v50  ;;  %861 = vmatpush.msra.mxu1 %v339_v51  ;;  %v387_v50 = vld [vmem:[%s9112_s1 + $0xa50] sm:$0xff]  ;;  %v404_v51 = vld [vmem:[%s9112_s1 + $0xad8] sm:$0xff] }
  0x97   :  { %882 = vmatpush.msra.mxu2 %v354_v52  ;;  %901 = vmatpush.msra.mxu3 %v371_v53  ;;  %v419_v52 = vld [vmem:[%s9112_s1 + $0xb50] sm:$0xff]  ;;  %v436_v53 = vld [vmem:[%s9112_s1 + $0xbd8] sm:$0xff] }
  0x98   :  { %843 = vmatpush.msra.mxu0 %v321_v54  ;;  %862 = vmatpush.msra.mxu1 %v338_v55  ;;  %v386_v54 = vld [vmem:[%s9112_s1 + $0xa48] sm:$0xff]  ;;  %v403_v55 = vld [vmem:[%s9112_s1 + $0xad0] sm:$0xff] }
  0x99   :  { %883 = vmatpush.msra.mxu2 %v353_v56  ;;  %902 = vmatpush.msra.mxu3 %v370_v57  ;;  %v418_v56 = vld [vmem:[%s9112_s1 + $0xb48] sm:$0xff]  ;;  %v435_v57 = vld [vmem:[%s9112_s1 + $0xbd0] sm:$0xff] }
  0x9a   :  { %844 = vmatpush.msra.mxu0 %v320_v58  ;;  %863 = vmatpush.msra.mxu1 %v337_v59  ;;  %v385_v58 = vld [vmem:[%s9112_s1 + $0xa40] sm:$0xff]  ;;  %v402_v59 = vld [vmem:[%s9112_s1 + $0xac8] sm:$0xff] }
  0x9b   :  { %884 = vmatpush.msra.mxu2 %v352_v60  ;;  %903 = vmatpush.msra.mxu3 %v369_v61  ;;  %v417_v60 = vld [vmem:[%s9112_s1 + $0xb40] sm:$0xff]  ;;  %v434_v61 = vld [vmem:[%s9112_s1 + $0xbc8] sm:$0xff] }
  0x9c   :  { %845 = vmatpush.msra.mxu0 %v319_v62  ;;  %864 = vmatpush.msra.mxu1 %v336_v63  ;;  %v384_v62 = vld [vmem:[%s9112_s1 + $0xa38] sm:$0xff]  ;;  %v401_v63 = vld [vmem:[%s9112_s1 + $0xac0] sm:$0xff] }
  0x9d   :  { %885 = vmatpush.msra.mxu2 %v351_v0  ;;  %904 = vmatpush.msra.mxu3 %v368_v1  ;;  %v416_v0 = vld [vmem:[%s9112_s1 + $0xb38] sm:$0xff]  ;;  %v433_v1 = vld [vmem:[%s9112_s1 + $0xbc0] sm:$0xff] }
  0x9e   :  { %846 = vmatpush.msra.mxu0 %v318_v2  ;;  %865 = vmatpush.msra.mxu1 %v335_v3  ;;  %v383_v2 = vld [vmem:[%s9112_s1 + $0xa30] sm:$0xff]  ;;  %v400_v3 = vld [vmem:[%s9112_s1 + $0xab8] sm:$0xff] }
  0x9f   :  { %886 = vmatpush.msra.mxu2 %v350_v4  ;;  %905 = vmatpush.msra.mxu3 %v367_v5  ;;  %v415_v4 = vld [vmem:[%s9112_s1 + $0xb30] sm:$0xff]  ;;  %v432_v5 = vld [vmem:[%s9112_s1 + $0xbb8] sm:$0xff] }
  0xa0   :  { %847 = vmatpush.msra.mxu0 %v317_v6  ;;  %866 = vmatpush.msra.mxu1 %v334_v7  ;;  %v382_v6 = vld [vmem:[%s9112_s1 + $0xa28] sm:$0xff]  ;;  %v399_v7 = vld [vmem:[%s9112_s1 + $0xab0] sm:$0xff] }
  0xa1   :  { %887 = vmatpush.msra.mxu2 %v349_v8  ;;  %906 = vmatpush.msra.mxu3 %v366_v9  ;;  %v414_v8 = vld [vmem:[%s9112_s1 + $0xb28] sm:$0xff]  ;;  %v431_v9 = vld [vmem:[%s9112_s1 + $0xbb0] sm:$0xff] }
  0xa2   :  { %848 = vmatpush.msra.mxu0 %v316_v10  ;;  %867 = vmatpush.msra.mxu1 %v333_v11  ;;  %v381_v10 = vld [vmem:[%s9112_s1 + $0xa20] sm:$0xff]  ;;  %v398_v11 = vld [vmem:[%s9112_s1 + $0xaa8] sm:$0xff] }
  0xa3   :  { %888 = vmatpush.msra.mxu2 %v348_v12  ;;  %907 = vmatpush.msra.mxu3 %v365_v13  ;;  %v413_v12 = vld [vmem:[%s9112_s1 + $0xb20] sm:$0xff]  ;;  %v430_v13 = vld [vmem:[%s9112_s1 + $0xba8] sm:$0xff] }
  0xa4   :  { %849 = vmatpush.msra.mxu0 %v315_v14  ;;  %868 = vmatpush.msra.mxu1 %v332_v15  ;;  %v380_v14 = vld [vmem:[%s9112_s1 + $0xa18] sm:$0xff]  ;;  %v397_v15 = vld [vmem:[%s9112_s1 + $0xaa0] sm:$0xff] }
  0xa5   :  { %889 = vmatpush.msra.mxu2 %v347_v16  ;;  %908 = vmatpush.msra.mxu3 %v364_v17  ;;  %v412_v16 = vld [vmem:[%s9112_s1 + $0xb18] sm:$0xff]  ;;  %v429_v17 = vld [vmem:[%s9112_s1 + $0xba0] sm:$0xff] }
  0xa6   :  { %850 = vmatpush.msra.mxu0 %v314_v18  ;;  %869 = vmatpush.msra.mxu1 %v331_v19  ;;  %v379_v18 = vld [vmem:[%s9112_s1 + $0xa10] sm:$0xff]  ;;  %v396_v19 = vld [vmem:[%s9112_s1 + $0xa98] sm:$0xff] }
  0xa7   :  { %890 = vmatpush.msra.mxu2 %v346_v20  ;;  %909 = vmatpush.msra.mxu3 %v363_v21  ;;  %v411_v20 = vld [vmem:[%s9112_s1 + $0xb10] sm:$0xff]  ;;  %v428_v21 = vld [vmem:[%s9112_s1 + $0xb98] sm:$0xff] }
  0xa8   :  { %851 = vmatpush.msra.mxu0 %v313_v22  ;;  %870 = vmatpush.msra.mxu1 %v330_v23  ;;  %v378_v22 = vld [vmem:[%s9112_s1 + $0xa08] sm:$0xff]  ;;  %v395_v23 = vld [vmem:[%s9112_s1 + $0xa90] sm:$0xff] }
  0xa9   :  { %891 = vmatpush.msra.mxu2 %v345_v24  ;;  %910 = vmatpush.msra.mxu3 %v362_v25  ;;  %v410_v24 = vld [vmem:[%s9112_s1 + $0xb08] sm:$0xff]  ;;  %v427_v25 = vld [vmem:[%s9112_s1 + $0xb90] sm:$0xff] }
  0xaa   :  { %852 = vmatmul.f32.vlgmr.msra.gmra.mxu0 %v484_v26  ;;  %892 = vmatmul.f32.vlgmr.msra.gmra.mxu2 %v486_v27  ;;  %v377_v26 = vld [vmem:[%s9112_s1 + $0xa00] sm:$0xff]  ;;  %v394_v27 = vld [vmem:[%s9112_s1 + $0xa88] sm:$0xff] }
  0xab   :  { %916 = vmatpush.msrb.mxu0 %v392_v28  ;;  %956 = vmatpush.msrb.mxu2 %v424_v29  ;;  %v409_v28 = vld [vmem:[%s9112_s1 + $0xb00] sm:$0xff]  ;;  %v426_v29 = vld [vmem:[%s9112_s1 + $0xb88] sm:$0xff] }
  0xac   :  { %871 = vmatpush.msra.mxu1 %v329_v30  ;;  %911 = vmatpush.msra.mxu3 %v361_v31  ;;  %v488_v30 = vld.sshfl [vmem:[#allocation1 + $0x20] sm:$0xff pattern:$0x75316420]  ;;  %v490_v31 = vld.sshfl [vmem:[#allocation1 + $0x30] sm:$0xff pattern:$0x75316420] }
  0xad   :  { %872 = vmatmul.f32.vlgmr.msra.gmra.mxu1 %v485_v32  ;;  %912 = vmatmul.f32.vlgmr.msra.gmra.mxu3 %v487_v33  ;;  %v393_v32 = vld [vmem:[%s9112_s1 + $0xa80] sm:$0xff] }
  0xae   :  { %917 = vmatpush.msrb.mxu0 %v391_v34  ;;  %936 = vmatpush.msrb.mxu1 %v408_v35  ;;  %v425_v33 = vld [vmem:[%s9112_s1 + $0xb80] sm:$0xff]  ;;  %v489_v34 = vld.sshfl [vmem:[#allocation1 + $0x28] sm:$0xff pattern:$0x75316420] }
  0xaf   :  { %957 = vmatpush.msrb.mxu2 %v423_v36  ;;  %976 = vmatpush.msrb.mxu3 %v440_v37  ;;  %v491_v35 = vld.sshfl [vmem:[#allocation1 + $0x38] sm:$0xff pattern:$0x75316420] }
  0xb0   :  { %918 = vmatpush.msrb.mxu0 %v390_v38  ;;  %937 = vmatpush.msrb.mxu1 %v407_v39 }
  0xb1   :  { %958 = vmatpush.msrb.mxu2 %v422_v40  ;;  %977 = vmatpush.msrb.mxu3 %v439_v41 }
  0xb2   :  { %919 = vmatpush.msrb.mxu0 %v389_v42  ;;  %938 = vmatpush.msrb.mxu1 %v406_v43 }
  0xb3   :  { %959 = vmatpush.msrb.mxu2 %v421_v44  ;;  %978 = vmatpush.msrb.mxu3 %v438_v45 }
  0xb4   :  { %920 = vmatpush.msrb.mxu0 %v388_v46  ;;  %939 = vmatpush.msrb.mxu1 %v405_v47 }
  0xb5   :  { %960 = vmatpush.msrb.mxu2 %v420_v48  ;;  %979 = vmatpush.msrb.mxu3 %v437_v49 }
  0xb6   :  { %921 = vmatpush.msrb.mxu0 %v387_v50  ;;  %940 = vmatpush.msrb.mxu1 %v404_v51 }
  0xb7   :  { %961 = vmatpush.msrb.mxu2 %v419_v52  ;;  %980 = vmatpush.msrb.mxu3 %v436_v53 }
  0xb8   :  { %922 = vmatpush.msrb.mxu0 %v386_v54  ;;  %941 = vmatpush.msrb.mxu1 %v403_v55 }
  0xb9   :  { %962 = vmatpush.msrb.mxu2 %v418_v56  ;;  %981 = vmatpush.msrb.mxu3 %v435_v57 }
  0xba   :  { %923 = vmatpush.msrb.mxu0 %v385_v58  ;;  %942 = vmatpush.msrb.mxu1 %v402_v59 }
  0xbb   :  { %963 = vmatpush.msrb.mxu2 %v417_v60  ;;  %982 = vmatpush.msrb.mxu3 %v434_v61 }
  0xbc   :  { %924 = vmatpush.msrb.mxu0 %v384_v62  ;;  %943 = vmatpush.msrb.mxu1 %v401_v63  ;;  %v1029_v63 = vld [vmem:[%s9114_s3 + $0x20] sm:$0xf] }
  0xbd   :  { %964 = vmatpush.msrb.mxu2 %v416_v0  ;;  %983 = vmatpush.msrb.mxu3 %v433_v1 }
  0xbe   :  { %925 = vmatpush.msrb.mxu0 %v383_v2  ;;  %944 = vmatpush.msrb.mxu1 %v400_v3 }
  0xbf   :  { %965 = vmatpush.msrb.mxu2 %v415_v4  ;;  %984 = vmatpush.msrb.mxu3 %v432_v5  ;;  %v533_v37 = vpop.f32.mrf.mxu0 }
  0xc0   :  { %926 = vmatpush.msrb.mxu0 %v382_v6  ;;  %945 = vmatpush.msrb.mxu1 %v399_v7 }
  0xc1   :  { %966 = vmatpush.msrb.mxu2 %v414_v8  ;;  %985 = vmatpush.msrb.mxu3 %v431_v9 }
  0xc2   :  { %927 = vmatpush.msrb.mxu0 %v381_v10  ;;  %946 = vmatpush.msrb.mxu1 %v398_v11  ;;  %v553_v36 = vpop.f32.mrf.mxu1 }
  0xc3   :  { %967 = vmatpush.msrb.mxu2 %v413_v12  ;;  %986 = vmatpush.msrb.mxu3 %v430_v13  ;;  %v554_v38 = vadd.f32 %v553_v36, %v533_v37  ;;  %v573_v39 = vpop.f32.mrf.mxu2 }
  0xc4   :  { %928 = vmatpush.msrb.mxu0 %v380_v14  ;;  %947 = vmatpush.msrb.mxu1 %v397_v15 }
  0xc5   :  { %968 = vmatpush.msrb.mxu2 %v412_v16  ;;  %987 = vmatpush.msrb.mxu3 %v429_v17  ;;  %v574_v40 = vadd.f32 %v573_v39, %v554_v38 }
  0xc6   :  { %929 = vmatpush.msrb.mxu0 %v379_v18  ;;  %948 = vmatpush.msrb.mxu1 %v396_v19  ;;  %v593_v41 = vpop.f32.mrf.mxu3 }
  0xc7   :  { %969 = vmatpush.msrb.mxu2 %v411_v20  ;;  %988 = vmatpush.msrb.mxu3 %v428_v21  ;;  %v594_v42 = vadd.f32 %v593_v41, %v574_v40  ;;  %v996_v20 = vld [vmem:[%s9113_s2] sm:$0x3]  ;;  %v1030_v21 = vld [vmem:[%s9114_s3 + $0x28] sm:$0xf] }
  0xc8   :  { %930 = vmatpush.msrb.mxu0 %v378_v22  ;;  %949 = vmatpush.msrb.mxu1 %v395_v23  ;;  %v1025_v22 = vld [vmem:[%s9114_s3] sm:$0xff]  ;;  %v1026_v23 = vld [vmem:[%s9114_s3 + $0x8] sm:$0xff] }
  0xc9   :  { %970 = vmatpush.msrb.mxu2 %v410_v24  ;;  %989 = vmatpush.msrb.mxu3 %v427_v25  ;;  %v613_v43 = vpop.f32.mrf.mxu0  ;;  %v1031_v24 = vld [vmem:[%s9114_s3 + $0x30] sm:$0xf]  ;;  %v1032_v25 = vld [vmem:[%s9114_s3 + $0x38] sm:$0xf] }
  0xca   :  { %931 = vmatpush.msrb.mxu0 %v377_v26  ;;  %950 = vmatpush.msrb.mxu1 %v394_v27  ;;  %v614_v44 = vadd.f32 %v613_v43, %v594_v42  ;;  %v1027_v26 = vld [vmem:[%s9114_s3 + $0x10] sm:$0xff]  ;;  %v1028_v27 = vld [vmem:[%s9114_s3 + $0x18] sm:$0xff] }
  0xcb   :  { %971 = vmatpush.msrb.mxu2 %v409_v28  ;;  %990 = vmatpush.msrb.mxu3 %v426_v29 }
  0xcc   :  { %932 = vmatmul.f32.vlgmr.msrb.gmra.mxu0 %v488_v30  ;;  %972 = vmatmul.f32.vlgmr.msrb.gmra.mxu2 %v490_v31  ;;  %v633_v45 = vpop.f32.mrf.mxu1  ;;  %v1033_v30 = vld [vmem:[%s9115_s4] sm:$0xf]  ;;  %s5625_s4 = smov [#allocation2]  }
  0xcd   :  { %951 = vmatpush.msrb.mxu1 %v393_v32  ;;  %991 = vmatpush.msrb.mxu3 %v425_v33  ;;  %v634_v46 = vadd.f32 %v633_v45, %v614_v44  ;;  %v653_v47 = vpop.f32.mrf.mxu2  ;;  %v1035_v31 = vperm.slane %v1033_v30, 0  ;;  %v1036_v33 = vperm.slane %v1033_v30, 1  ;;  %v1038_v36 = vperm.slane %v1033_v30, 3  ;;  %s3888_s1 = sshll.u32 %s5625_s4, 4  ;;  %s3889_s1 = int_to_ptr.vmem [resolvable:$true] %s3888_s1 }
  0xce   :  { %952 = vmatmul.f32.vlgmr.msrb.gmra.mxu1 %v489_v34  ;;  %992 = vmatmul.f32.vlgmr.msrb.gmra.mxu3 %v491_v35  ;;  %v1037_v37 = vperm.slane %v1033_v30, 2  ;;  %v4231_v30 = vld [vmem:[%s9116_s5 + $0x280] sm:$0xf] }
  0xcf   :  { %v654_v48 = vadd.f32 %v653_v47, %v634_v46  ;;  %3901 = vmatpush.msk.msra.mxu3 %vm1001_vm0, %v1029_v63  ;;  %v5379_v63 = vld [vmem:[%s9116_s5 + $0x3ec] sm:$0xf0] }
  0xd0   :  { %v673_v49 = vpop.f32.mrf.mxu3 }
  0xd1   :  { %v674_v51 = vadd.f32 %v673_v49, %v654_v48  ;;  %1074 = vmatpush.msra.mxu3 %v1025_v22  ;;  %v5624_v49 = vmov 512.0  }
  0xd2   :  { %5592 = vrcp.f32 %v5624_v49  ;;  %v4343_v49 = vld [vmem:[%s9116_s5 + $0x360] sm:$0xf] }
  0xd3   :  { %3905 = vmatpush.msk.msrb.mxu3 %vm1001_vm0, %v1031_v24 }
  0xd5   :  { %1114 = vmatpush.msrb.mxu3 %v1027_v26  ;;  %v5271_v26 = vld [vmem:[%s9116_s5 + $0x8c] sm:$0xf0] }
  0xe3   :  { %v693_v50 = vpop.f32.mrf.mxu0 }
  0xe4   :  { %v694_v52 = vadd.f32 %v693_v50, %v674_v51  ;;  %v6977_v50 = vpop.eup %5592 }
  0xe5   :  { %v1150_v51 = vmul.f32 512.0, %v6977_v50  ;;  %vm1154_vm4 = vweird.f32 %v6977_v50 }
  0xe6   :  { %v713_v53 = vpop.f32.mrf.mxu1 }
  0xe7   :  { %v714_v55 = vadd.f32 %v713_v53, %v694_v52  ;;  %v1151_v52 = vsub.f32 1.0, %v1150_v51  ;;  %v4023_v53 = vld [vmem:[%s9116_s5 + $0xe0] sm:$0xf]  ;;  %v5363_v51 = vld [vmem:[%s9116_s5 + $0x36c] sm:$0xf0] }
  0xe9   :  { %v733_v54 = vpop.f32.mrf.mxu2  ;;  %v1152_v22 = vmul.f32 %v6977_v50, %v1151_v52 }
  0xea   :  { %v734_v56 = vadd.f32 %v733_v54, %v714_v55  ;;  %v5283_v54 = vld [vmem:[%s9116_s5 + $0xec] sm:$0xf0]  ;;  %v4151_v55 = vld [vmem:[%s9116_s5 + $0x1e0] sm:$0xf] }
  0xec   :  { %v753_v57 = vpop.f32.mrf.mxu3 }
  0xed   :  { %v754_v59 = vadd.f32 %v753_v57, %v734_v56  ;;  %v4024_v56 = vor.u32 %v5283_v54, %v4023_v53  ;;  %v5315_v57 = vld [vmem:[%s9116_s5 + $0x1ec] sm:$0xf0]  ;;  %v3943_v53 = vld [vmem:[%s9116_s5 + $0x40] sm:$0xf] }
  0xee   :  { %v5263_v54 = vld [vmem:[%s9116_s5 + $0x4c] sm:$0xf0] }
  0xef   :  { %1972 = vmatpush.bf16.msra.mxu1 %v4024_v56 }
 0x105   :  { %v773_v58 = vpop.f32.mrf.mxu0 }
 0x106   :  { %v774_v60 = vadd.f32 %v773_v58, %v754_v59  ;;  %v4279_v58 = vld [vmem:[%s9116_s5 + $0x2e0] sm:$0xf]  ;;  %v5347_v59 = vld [vmem:[%s9116_s5 + $0x2ec] sm:$0xf0] }
 0x108   :  { %v793_v61 = vpop.f32.mrf.mxu1 }
 0x109   :  { %v794_v0 = vadd.f32 %v793_v61, %v774_v60  ;;  %v4152_v60 = vor.u32 %v5315_v57, %v4151_v55  ;;  %v4280_v61 = vor.u32 %v5347_v59, %v4279_v58  ;;  %v4071_v58 = vld [vmem:[%s9116_s5 + $0x140] sm:$0xf]  ;;  %v5295_v59 = vld [vmem:[%s9116_s5 + $0x14c] sm:$0xf0] }
 0x10b   :  { %v813_v62 = vpop.f32.mrf.mxu2  ;;  %1985 = vmatpush.bf16.msra.mxu2 %v4152_v60  ;;  %v4199_v60 = vld [vmem:[%s9116_s5 + $0x240] sm:$0xf] }
 0x10c   :  { %v814_v1 = vadd.f32 %v813_v62, %v794_v0  ;;  %v4407_v62 = vld [vmem:[%s9116_s5 + $0x3e0] sm:$0xf] }
 0x10d   :  { %v4007_v0 = vld [vmem:[%s9116_s5 + $0xc0] sm:$0xf] }
 0x10e   :  { %v833_v2 = vpop.f32.mrf.mxu3 }
 0x10f   :  { %v834_v4 = vadd.f32 %v833_v2, %v814_v1  ;;  %v4408_v1 = vor.u32 %v5379_v63, %v4407_v62  ;;  %v5279_v2 = vld [vmem:[%s9116_s5 + $0xcc] sm:$0xf0]  ;;  %v4327_v62 = vld [vmem:[%s9116_s5 + $0x340] sm:$0xf] }
 0x110   :  { %v5359_v63 = vld [vmem:[%s9116_s5 + $0x34c] sm:$0xf0] }
 0x127   :  { %v853_v3 = vpop.f32.mrf.mxu0 }
 0x128   :  { %v854_v5 = vadd.f32 %v853_v3, %v834_v4  ;;  %v4135_v3 = vld [vmem:[%s9116_s5 + $0x1c0] sm:$0xf]  ;;  %v5311_v4 = vld [vmem:[%s9116_s5 + $0x1cc] sm:$0xf0] }
 0x12a   :  { %v873_v6 = vpop.f32.mrf.mxu1 }
 0x12b   :  { %v874_v8 = vadd.f32 %v873_v6, %v854_v5  ;;  %v4008_v5 = vor.u32 %v5279_v2, %v4007_v0  ;;  %v4136_v6 = vor.u32 %v5311_v4, %v4135_v3  ;;  %v3944_v2 = vor.u32 %v5263_v54, %v3943_v53 }
 0x12c   :  { %v4072_v3 = vor.u32 %v5295_v59, %v4071_v58  ;;  %v5277_v59 = vld [vmem:[%s9116_s5 + $0xc4] sm:$0xf] }
 0x12d   :  { %v893_v7 = vpop.f32.mrf.mxu2  ;;  %1973 = vmatpush.bf16.msra.mxu1 %v4008_v5  ;;  %1986 = vmatpush.bf16.msra.mxu2 %v4136_v6  ;;  %v4328_v5 = vor.u32 %v5359_v63, %v4327_v62  ;;  %v3927_v6 = vld [vmem:[%s9116_s5 + $0x20] sm:$0xf]  ;;  %v4137_v62 = vld [vmem:[%s9116_s5 + $0x1d0] sm:$0xf0]  ;;  %v5341_v63 = vld [vmem:[%s9116_s5 + $0x2c4] sm:$0xf] }
 0x12e   :  { %v894_v9 = vadd.f32 %v893_v7, %v874_v8  ;;  %v4263_v7 = vld [vmem:[%s9116_s5 + $0x2c0] sm:$0xf]  ;;  %v5343_v8 = vld [vmem:[%s9116_s5 + $0x2cc] sm:$0xf0] }
 0x130   :  { %v913_v10 = vpop.f32.mrf.mxu3 }
 0x131   :  { %v914_v11 = vadd.f32 %v913_v10, %v894_v9  ;;  %v4391_v9 = vld [vmem:[%s9116_s5 + $0x3c0] sm:$0xf]  ;;  %v4264_v10 = vor.u32 %v5343_v8, %v4263_v7  ;;  %v5259_v7 = vld [vmem:[%s9116_s5 + $0x2c] sm:$0xf0] }
 0x132   :  { %v4055_v8 = vld [vmem:[%s9116_s5 + $0x120] sm:$0xf] }
 0x149   :  { %v933_v12 = vpop.f32.mrf.mxu0 }
 0x14a   :  { %v934_v13 = vadd.f32 %v933_v12, %v914_v11  ;;  %v5375_v11 = vld [vmem:[%s9116_s5 + $0x3cc] sm:$0xf0]  ;;  %v3991_v12 = vld [vmem:[%s9116_s5 + $0xa0] sm:$0xf] }
 0x14b   :  { %v953_v14 = vpop.f32.mrf.mxu1 }
 0x14c   :  { %v954_v15 = vadd.f32 %v953_v14, %v934_v13  ;;  %v5275_v13 = vld [vmem:[%s9116_s5 + $0xac] sm:$0xf0]  ;;  %v4392_v14 = vor.u32 %v5375_v11, %v4391_v9 }
 0x14f   :  { %v973_v16 = vpop.f32.mrf.mxu2 }
 0x150   :  { %v974_v17 = vadd.f32 %v973_v16, %v954_v15  ;;  %v4119_v15 = vld [vmem:[%s9116_s5 + $0x1a0] sm:$0xf]  ;;  %v5307_v16 = vld [vmem:[%s9116_s5 + $0x1ac] sm:$0xf0] }
 0x151   :  { %v993_v18 = vpop.f32.mrf.mxu3 }
 0x152   :  { %v994_v19 = vadd.f32 %v993_v18, %v974_v17  ;;  %v4247_v17 = vld [vmem:[%s9116_s5 + $0x2a0] sm:$0xf]  ;;  %v3992_v18 = vor.u32 %v5275_v13, %v3991_v12  ;;  %v5291_v13 = vld [vmem:[%s9116_s5 + $0x12c] sm:$0xf0] }
 0x154   :  { %3899 = vmatpush.msk.msra.mxu0 %vm1001_vm0, %v994_v19  ;;  %v5339_v19 = vld [vmem:[%s9116_s5 + $0x2ac] sm:$0xf0]  ;;  %1974 = vmatpush.bf16.msra.mxu1 %v3992_v18  ;;  %v3911_v18 = vld [vmem:[%s9116_s5] sm:$0xf] }
 0x155   :  { %3900 = vmatmul.msk.f32.vlgmr.msra.gmra.mxu0 %vm997_vm1, %v996_v20  ;;  %v4375_v20 = vld [vmem:[%s9116_s5 + $0x3a0] sm:$0xf]  ;;  %v4248_v24 = vor.u32 %v5339_v19, %v4247_v17  ;;  %v3928_v17 = vor.u32 %v5259_v7, %v3927_v6  ;;  %v5255_v19 = vld [vmem:[%s9116_s5 + $0xc] sm:$0xf0]  ;;  %v5273_v6 = vld [vmem:[%s9116_s5 + $0xa4] sm:$0xf] }
 0x156   :  { %3903 = vmatpush.msk.msrb.mxu0 %vm1001_vm0, %v1030_v21  ;;  %v5371_v21 = vld [vmem:[%s9116_s5 + $0x3ac] sm:$0xf0]  ;;  %v3993_v7 = vld [vmem:[%s9116_s5 + $0xb0] sm:$0xf0] }
 0x158   :  { %1094 = vmatpush.msrb.mxu0 %v1026_v23  ;;  %v4120_v23 = vor.u32 %v5307_v16, %v4119_v15 }
 0x15a   :  { %3907 = vmatpush.msk.msra.mxu0 %vm1001_vm0, %v1032_v25  ;;  %v3975_v25 = vld [vmem:[%s9116_s5 + $0x80] sm:$0xf]  ;;  %1987 = vmatpush.bf16.msra.mxu2 %v4120_v23  ;;  %v5287_v23 = vld [vmem:[%s9116_s5 + $0x10c] sm:$0xf0] }
 0x15c   :  { %1134 = vmatpush.msra.mxu0 %v1028_v27  ;;  %v4103_v27 = vld [vmem:[%s9116_s5 + $0x180] sm:$0xf] }
 0x1d2   :  { %v1022_v28 = vpop.f32.mrf.mxu0 }
 0x1d3   :  { %3902 = vmatmul.msk.f32.vlgmr.msra.gmra.mxu3 %vm1043_vm2, %v1022_v28  ;;  %3904 = vmatmul.msk.f32.vlgmr.msrb.gmra.mxu0 %vm1043_vm2, %v1022_v28 }
 0x1d4   :  { %1998 = vmatpush.bf16.msra.mxu3 %v4280_v61  ;;  %2011 = vmatpush.bf16.msrb.mxu0 %v4408_v1  ;;  %v4344_v61 = vor.u32 %v5363_v51, %v4343_v49 }
 0x1d8   :  { %1999 = vmatpush.bf16.msra.mxu3 %v4264_v10  ;;  %2012 = vmatpush.bf16.msrb.mxu0 %v4392_v14  ;;  %v4183_v14 = vld [vmem:[%s9116_s5 + $0x220] sm:$0xf] }
 0x1db   :  { %3906 = vmatmul.msk.f32.vlgmr.msrb.gmra.mxu3 %vm1043_vm2, %v1022_v28  ;;  %3908 = vmatmul.msk.f32.vlgmr.msra.gmra.mxu0 %vm1043_vm2, %v1022_v28  ;;  %v4376_v28 = vor.u32 %v5371_v21, %v4375_v20  ;;  %v4039_v20 = vld [vmem:[%s9116_s5 + $0x100] sm:$0xf]  ;;  %v4056_v21 = vor.u32 %v5291_v13, %v4055_v8  ;;  %v5305_v8 = vld [vmem:[%s9116_s5 + $0x1a4] sm:$0xf]  ;;  %v3996_v13 = vor.u32 %v5273_v6, %v3993_v7 }
 0x1dc   :  { %2000 = vmatpush.bf16.msra.mxu3 %v4248_v24  ;;  %v4167_v24 = vld [vmem:[%s9116_s5 + $0x200] sm:$0xf]  ;;  %v5253_v7 = vld [vmem:[%s9116_s5 + $0x4] sm:$0xf] }
 0x1dd   :  { %2013 = vmatpush.bf16.msrb.mxu0 %v4376_v28 }
 0x250   :  { %v1096_v29 = vpop.f32.mrf.mxu0 }
 0x251   :  { %v6963_v35 = vadd.f32 %v1096_v29, %v1036_v33  ;;  %v5303_v29 = vld [vmem:[%s9116_s5 + $0x18c] sm:$0xf0] }
 0x252   :  { %v5367_v33 = vld [vmem:[%s9116_s5 + $0x38c] sm:$0xf0] }
 0x253   :  { %v1141_v41 = vsel %vm1139_vm3, %v6963_v35, 0.0 }
 0x256   :  { %v1076_v32 = vpop.f32.mrf.mxu3 }
 0x257   :  { %v6961_v34 = vadd.f32 %v1076_v32, %v1035_v31  ;;  %v5335_v31 = vld [vmem:[%s9116_s5 + $0x28c] sm:$0xf0]  ;;  %v4359_v32 = vld [vmem:[%s9116_s5 + $0x380] sm:$0xf] }
 0x258   :  { %v1136_v38 = vpop.f32.mrf.mxu0 }
 0x259   :  { %v1140_v39 = vsel %vm1139_vm3, %v6961_v34, 0.0  ;;  %v6969_v42 = vadd.f32 %v1136_v38, %v1038_v36  ;;  %v3976_v36 = vor.u32 %v5271_v26, %v3975_v25  ;;  %v4104_v38 = vor.u32 %v5303_v29, %v4103_v27  ;;  %v5319_v25 = vld [vmem:[%s9116_s5 + $0x20c] sm:$0xf0] }
 0x25a   :  { %v1142_v44 = vadd.f32 %v1141_v41, %v1140_v39  ;;  %v4232_v39 = vor.u32 %v5335_v31, %v4231_v30  ;;  %v5267_v41 = vld [vmem:[%s9116_s5 + $0x6c] sm:$0xf0]  ;;  %v4295_v30 = vld [vmem:[%s9116_s5 + $0x300] sm:$0xf]  ;;  %v4168_v51 = vor.u32 %v5319_v25, %v4167_v24  ;;  %v4233_v24 = vld [vmem:[%s9116_s5 + $0x290] sm:$0xf0] }
 0x25b   :  { %v1145_v47 = vsel %vm1139_vm3, %v6969_v42, 0.0  ;;  %1975 = vmatpush.bf16.msra.mxu1 %v3976_v36  ;;  %1988 = vmatpush.bf16.msra.mxu2 %v4104_v38  ;;  %v5351_v31 = vld [vmem:[%s9116_s5 + $0x30c] sm:$0xf0]  ;;  %v4025_v36 = vld [vmem:[%s9116_s5 + $0xf0] sm:$0xf0] }
 0x25c   :  { %2001 = vmatpush.bf16.msra.mxu3 %v4232_v39  ;;  %v3912_v39 = vor.u32 %v5255_v19, %v3911_v18  ;;  %v5269_v18 = vld [vmem:[%s9116_s5 + $0x84] sm:$0xf]  ;;  %v3977_v19 = vld [vmem:[%s9116_s5 + $0x90] sm:$0xf0] }
 0x25e   :  { %v1116_v40 = vpop.f32.mrf.mxu3 }
 0x25f   :  { %v6971_v43 = vadd.f32 %v1116_v40, %v1037_v37  ;;  %v1153_v37 = vadd.f32 %v6977_v50, %v1152_v22  ;;  %v3959_v40 = vld [vmem:[%s9116_s5 + $0x60] sm:$0xf] }
 0x260   :  { %v3960_v52 = vor.u32 %v5267_v41, %v3959_v40  ;;  %v4153_v40 = vld [vmem:[%s9116_s5 + $0x1f0] sm:$0xf0]  ;;  %v5345_v41 = vld [vmem:[%s9116_s5 + $0x2e4] sm:$0xf] }
 0x261   :  { %v1143_v45 = vsel %vm1139_vm3, %v6971_v43, 0.0  ;;  %v7110_v55 = vsel %vm1154_vm4, %v6977_v50, %v1153_v37  ;;  %v5327_v50 = vld [vmem:[%s9116_s5 + $0x24c] sm:$0xf0]  ;;  %v5313_v37 = vld [vmem:[%s9116_s5 + $0x1e4] sm:$0xf] }
 0x262   :  { %v1144_v46 = vadd.f32 %v1143_v45, %v1142_v44  ;;  %v4087_v44 = vld [vmem:[%s9116_s5 + $0x160] sm:$0xf]  ;;  %v4360_v45 = vor.u32 %v5367_v33, %v4359_v32  ;;  %1976 = vmatpush.bf16.msra.mxu1 %v3960_v52  ;;  %v4200_v4 = vor.u32 %v5327_v50, %v4199_v60  ;;  %v5281_v33 = vld [vmem:[%s9116_s5 + $0xe4] sm:$0xf]  ;;  %v4296_v52 = vor.u32 %v5351_v31, %v4295_v30  ;;  %v4009_v60 = vld [vmem:[%s9116_s5 + $0xd0] sm:$0xf0] }
 0x263   :  { %v4028_v54 = vor.u32 %v5281_v33, %v4025_v36  ;;  %v4012_v50 = vor.u32 %v5277_v59, %v4009_v60  ;;  %v5265_v30 = vld [vmem:[%s9116_s5 + $0x64] sm:$0xf]  ;;  %v3961_v31 = vld [vmem:[%s9116_s5 + $0x70] sm:$0xf0] }
 0x264   :  { %v1146_v48 = vadd.f32 %v1145_v47, %v1144_v46  ;;  %v5299_v46 = vld [vmem:[%s9116_s5 + $0x16c] sm:$0xf0]  ;;  %v4215_v47 = vld [vmem:[%s9116_s5 + $0x260] sm:$0xf]  ;;  %2014 = vmatpush.bf16.msrb.mxu0 %v4360_v45  ;;  %v4040_v45 = vor.u32 %v5287_v23, %v4039_v20  ;;  %v5301_v20 = vld [vmem:[%s9116_s5 + $0x184] sm:$0xf]  ;;  %v3964_v33 = vor.u32 %v5265_v30, %v3961_v31 }
 0x265   :  { %v4088_v56 = vor.u32 %v5299_v46, %v4087_v44  ;;  %v4281_v46 = vld [vmem:[%s9116_s5 + $0x2f0] sm:$0xf0]  ;;  %v5333_v23 = vld [vmem:[%s9116_s5 + $0x284] sm:$0xf]  ;;  %v4159_v30 = vld [vmem:[%s9116_s5 + $0x1e8] sm:$0xf] }
 0x266   :  { %1147 = vadd.xlane.f32.xlu0 %v1146_v48  ;;  %v5331_v48 = vld [vmem:[%s9116_s5 + $0x26c] sm:$0xf0]  ;;  %1977 = vmatpush.bf16.msra.mxu1 %v3944_v2  ;;  %v4089_v36 = vld [vmem:[%s9116_s5 + $0x170] sm:$0xf0]  ;;  %v5257_v60 = vld [vmem:[%s9116_s5 + $0x24] sm:$0xf] }
 0x267   :  { %v4216_v57 = vor.u32 %v5331_v48, %v4215_v47  ;;  %1989 = vmatpush.bf16.msra.mxu2 %v4088_v56  ;;  %v5377_v47 = vld [vmem:[%s9116_s5 + $0x3e4] sm:$0xf]  ;;  %v4409_v48 = vld [vmem:[%s9116_s5 + $0x3f0] sm:$0xf0]  ;;  %v4156_v56 = vor.u32 %v5313_v37, %v4153_v40  ;;  %v5316_v31 = vld [vmem:[%s9116_s5 + $0x1f4] sm:$0xf0] }
 0x268   :  { %2015 = vmatpush.bf16.msrb.mxu0 %v4344_v61  ;;  %v4412_v58 = vor.u32 %v5377_v47, %v4409_v48  ;;  %v5309_v61 = vld [vmem:[%s9116_s5 + $0x1c4] sm:$0xf]  ;;  %v3945_v47 = vld [vmem:[%s9116_s5 + $0x50] sm:$0xf0] }
 0x269   :  { %2002 = vmatpush.bf16.msra.mxu3 %v4216_v57  ;;  %v4284_v57 = vor.u32 %v5345_v41, %v4281_v46  ;;  %v5329_v37 = vld [vmem:[%s9116_s5 + $0x264] sm:$0xf] }
 0x26a   :  { %1978 = vmatpush.bf16.msra.mxu1 %v3928_v17  ;;  %v5361_v41 = vld [vmem:[%s9116_s5 + $0x364] sm:$0xf] }
 0x26b   :  { %1990 = vmatpush.bf16.msra.mxu2 %v4072_v3  ;;  %v5373_v3 = vld [vmem:[%s9116_s5 + $0x3c4] sm:$0xf] }
 0x26c   :  { %2016 = vmatpush.bf16.msrb.mxu0 %v4328_v5  ;;  %v5261_v46 = vld [vmem:[%s9116_s5 + $0x44] sm:$0xf] }
 0x26d   :  { %2003 = vmatpush.bf16.msra.mxu3 %v4200_v4  ;;  %v4393_v4 = vld [vmem:[%s9116_s5 + $0x3d0] sm:$0xf0]  ;;  %v5293_v48 = vld [vmem:[%s9116_s5 + $0x144] sm:$0xf] }
 0x26e   :  { %1979 = vmatpush.bf16.msra.mxu1 %v3912_v39  ;;  %v4396_v5 = vor.u32 %v5373_v3, %v4393_v4  ;;  %v5353_v4 = vld [vmem:[%s9116_s5 + $0x324] sm:$0xf] }
 0x26f   :  { %1991 = vmatpush.bf16.msra.mxu2 %v4056_v21  ;;  %v3980_v21 = vor.u32 %v5269_v18, %v3977_v19 }
 0x272   :  { %2024 = vmatpush.bf16.msrb.mxu1 %v4028_v54 }
 0x273   :  { %1992 = vmatpush.bf16.msra.mxu2 %v4040_v45 }
 0x276   :  { %2025 = vmatpush.bf16.msrb.mxu1 %v4012_v50  ;;  %v5289_v50 = vld [vmem:[%s9116_s5 + $0x124] sm:$0xf] }
 0x277   :  { %2037 = vmatpush.bf16.msrb.mxu2 %v4156_v56 }
 0x27a   :  { %2026 = vmatpush.bf16.msrb.mxu1 %v3996_v13  ;;  %v5285_v13 = vld [vmem:[%s9116_s5 + $0x104] sm:$0xf] }
 0x27e   :  { %2027 = vmatpush.bf16.msrb.mxu1 %v3980_v21 }
 0x282   :  { %2028 = vmatpush.bf16.msrb.mxu1 %v3964_v33  ;;  %v4287_v33 = vld [vmem:[%s9116_s5 + $0x2e8] sm:$0xf] }
 0x2d9   :  { %v1148_v0 = vpop.xlane.xlu0 %1147 }
 0x2da   :  { %v1156_v1 = vmul.f32 %v7110_v55, %v1148_v0  ;;  %v4265_v0 = vld [vmem:[%s9116_s5 + $0x2d0] sm:$0xf0] }
 0x2db   :  { %v4268_v2 = vor.u32 %v5341_v63, %v4265_v0  ;;  %v4057_v63 = vld [vmem:[%s9116_s5 + $0x130] sm:$0xf0]  ;;  %v5321_v0 = vld [vmem:[%s9116_s5 + $0x224] sm:$0xf] }
 0x2dc   :  { %v7141_v9 = vsub.f32 %v6961_v34, %v1156_v1  ;;  %v7144_v10 = vsub.f32 %v6963_v35, %v1156_v1  ;;  %v7147_v11 = vsub.f32 %v6971_v43, %v1156_v1  ;;  %v7150_v12 = vsub.f32 %v6969_v42, %v1156_v1  ;;  %v5323_v34 = vld [vmem:[%s9116_s5 + $0x22c] sm:$0xf0]  ;;  %v4311_v35 = vld [vmem:[%s9116_s5 + $0x320] sm:$0xf] }
 0x2dd   :  { %v5355_v42 = vld [vmem:[%s9116_s5 + $0x32c] sm:$0xf0]  ;;  %v4184_v22 = vor.u32 %v5323_v34, %v4183_v14  ;;  %v4140_v1 = vor.u32 %v5309_v61, %v4137_v62  ;;  %v4121_v14 = vld [vmem:[%s9116_s5 + $0x1b0] sm:$0xf0]  ;;  %v5337_v34 = vld [vmem:[%s9116_s5 + $0x2a4] sm:$0xf] }
 0x2de   :  { %v1161_v43 = vmul.f32 %v7141_v9, %v7141_v9  ;;  %v1162_v15 = vmul.f32 %v7144_v10, %v7144_v10  ;;  %v1163_v16 = vmul.f32 %v7147_v11, %v7147_v11  ;;  %v1164_v26 = vmul.f32 %v7150_v12, %v7150_v12  ;;  %v3929_v61 = vld [vmem:[%s9116_s5 + $0x30] sm:$0xf0] }
 0x2df   :  { %v4312_v29 = vor.u32 %v5355_v42, %v4311_v35  ;;  %2004 = vmatpush.bf16.msra.mxu3 %v4184_v22  ;;  %2038 = vmatpush.bf16.msrb.mxu2 %v4140_v1  ;;  %v4249_v35 = vld [vmem:[%s9116_s5 + $0x2b0] sm:$0xf0]  ;;  %v4124_v42 = vor.u32 %v5305_v8, %v4121_v14  ;;  %v3932_v62 = vor.u32 %v5257_v60, %v3929_v61  ;;  %v3999_v61 = vld [vmem:[%s9116_s5 + $0xa8] sm:$0xf] }
 0x2e0   :  { %v1165_v27 = vsel %vm1139_vm3, %v1161_v43, 0.0  ;;  %v1166_v28 = vsel %vm1139_vm3, %v1162_v15, 0.0  ;;  %v1168_v38 = vsel %vm1139_vm3, %v1163_v16, 0.0  ;;  %v1170_v49 = vsel %vm1139_vm3, %v1164_v26, 0.0  ;;  %v5369_v15 = vld [vmem:[%s9116_s5 + $0x3a4] sm:$0xf] }
 0x2e1   :  { %v1167_v32 = vadd.f32 %v1166_v28, %v1165_v27  ;;  %2017 = vmatpush.bf16.msrb.mxu0 %v4312_v29  ;;  %v4252_v43 = vor.u32 %v5337_v34, %v4249_v35  ;;  %v4377_v16 = vld [vmem:[%s9116_s5 + $0x3b0] sm:$0xf0]  ;;  %v4236_v26 = vor.u32 %v5333_v23, %v4233_v24  ;;  %v5365_v27 = vld [vmem:[%s9116_s5 + $0x384] sm:$0xf] }
 0x2e2   :  { %v4380_v17 = vor.u32 %v5369_v15, %v4377_v16  ;;  %v4105_v22 = vld [vmem:[%s9116_s5 + $0x190] sm:$0xf0]  ;;  %v5317_v35 = vld [vmem:[%s9116_s5 + $0x204] sm:$0xf] }
 0x2e3   :  { %v1169_v44 = vadd.f32 %v1168_v38, %v1167_v32  ;;  %2005 = vmatpush.bf16.msra.mxu3 %v4168_v51  ;;  %2039 = vmatpush.bf16.msrb.mxu2 %v4124_v42  ;;  %v4108_v25 = vor.u32 %v5301_v20, %v4105_v22  ;;  %v4361_v28 = vld [vmem:[%s9116_s5 + $0x390] sm:$0xf0]  ;;  %v5297_v32 = vld [vmem:[%s9116_s5 + $0x164] sm:$0xf] }
 0x2e4   :  { %v4364_v29 = vor.u32 %v5365_v27, %v4361_v28  ;;  %v4217_v38 = vld [vmem:[%s9116_s5 + $0x270] sm:$0xf0]  ;;  %v4092_v39 = vor.u32 %v5297_v32, %v4089_v36  ;;  %v5349_v16 = vld [vmem:[%s9116_s5 + $0x304] sm:$0xf]  ;;  %v4031_v28 = vld [vmem:[%s9116_s5 + $0xe8] sm:$0xf] }
 0x2e5   :  { %v1171_v53 = vadd.f32 %v1170_v49, %v1169_v44  ;;  %2018 = vmatpush.bf16.msrb.mxu0 %v4296_v52  ;;  %v4220_v40 = vor.u32 %v5329_v37, %v4217_v38  ;;  %v4345_v44 = vld [vmem:[%s9116_s5 + $0x370] sm:$0xf0]  ;;  %v3948_v49 = vor.u32 %v5261_v46, %v3945_v47  ;;  %v5325_v52 = vld [vmem:[%s9116_s5 + $0x244] sm:$0xf]  ;;  %v4015_v47 = vld [vmem:[%s9116_s5 + $0xc8] sm:$0xf] }
 0x2e6   :  { %v4348_v45 = vor.u32 %v5361_v41, %v4345_v44  ;;  %v4073_v51 = vld [vmem:[%s9116_s5 + $0x150] sm:$0xf0]  ;;  %v4415_v41 = vld [vmem:[%s9116_s5 + $0x3e8] sm:$0xf]  ;;  %v5380_v44 = vld [vmem:[%s9116_s5 + $0x3f4] sm:$0xf0] }
 0x2e7   :  { %1172 = vadd.xlane.f32.xlu0 %v1171_v53  ;;  %2050 = vmatpush.bf16.msrb.mxu3 %v4284_v57  ;;  %v4201_v53 = vld [vmem:[%s9116_s5 + $0x250] sm:$0xf0]  ;;  %v4076_v54 = vor.u32 %v5293_v48, %v4073_v51  ;;  %v5357_v57 = vld [vmem:[%s9116_s5 + $0x344] sm:$0xf]  ;;  %v5280_v48 = vld [vmem:[%s9116_s5 + $0xd4] sm:$0xf0]  ;;  %v4416_v51 = vor.u32 %v5380_v44, %v4415_v41 }
 0x2e8   :  { %2040 = vmatpush.bf16.msrb.mxu2 %v4108_v25  ;;  %v4204_v56 = vor.u32 %v5325_v52, %v4201_v53  ;;  %2029 = vmatpush.bf16.msrb.mxu1 %v3948_v49  ;;  %v4185_v1 = vld [vmem:[%s9116_s5 + $0x230] sm:$0xf0]  ;;  %v4143_v52 = vld [vmem:[%s9116_s5 + $0x1c8] sm:$0xf]  ;;  %v5312_v53 = vld [vmem:[%s9116_s5 + $0x1d4] sm:$0xf0] }
 0x2e9   :  { %2063 = vmatpush.bf16.msra.mxu0 %v4412_v58  ;;  %v4329_v58 = vld [vmem:[%s9116_s5 + $0x350] sm:$0xf0]  ;;  %v4188_v3 = vor.u32 %v5321_v0, %v4185_v1  ;;  %v4144_v60 = vor.u32 %v5312_v53, %v4143_v52  ;;  %v4127_v0 = vld [vmem:[%s9116_s5 + $0x1a8] sm:$0xf]  ;;  %v5308_v1 = vld [vmem:[%s9116_s5 + $0x1b4] sm:$0xf0] }
 0x2ea   :  { %v4332_v59 = vor.u32 %v5357_v57, %v4329_v58  ;;  %v3913_v8 = vld [vmem:[%s9116_s5 + $0x10] sm:$0xf0]  ;;  %v4399_v57 = vld [vmem:[%s9116_s5 + $0x3c8] sm:$0xf]  ;;  %v5376_v58 = vld [vmem:[%s9116_s5 + $0x3d4] sm:$0xf0] }
 0x2eb   :  { %2051 = vmatpush.bf16.msrb.mxu3 %v4268_v2  ;;  %v4060_v2 = vor.u32 %v5289_v50, %v4057_v63  ;;  %v3916_v14 = vor.u32 %v5253_v7, %v3913_v8  ;;  %v4041_v34 = vld [vmem:[%s9116_s5 + $0x110] sm:$0xf0]  ;;  %v5276_v50 = vld [vmem:[%s9116_s5 + $0xb4] sm:$0xf0]  ;;  %v4400_v63 = vor.u32 %v5376_v58, %v4399_v57  ;;  %v4128_v7 = vor.u32 %v5308_v1, %v4127_v0  ;;  %v3983_v8 = vld [vmem:[%s9116_s5 + $0x88] sm:$0xf] }
 0x2ec   :  { %2041 = vmatpush.bf16.msrb.mxu2 %v4092_v39  ;;  %2030 = vmatpush.bf16.msrb.mxu1 %v3932_v62  ;;  %v4169_v42 = vld [vmem:[%s9116_s5 + $0x210] sm:$0xf0]  ;;  %v5328_v41 = vld [vmem:[%s9116_s5 + $0x254] sm:$0xf0]  ;;  %v4335_v44 = vld [vmem:[%s9116_s5 + $0x348] sm:$0xf] }
 0x2ed   :  { %2064 = vmatpush.bf16.msra.mxu0 %v4396_v5  ;;  %v4313_v5 = vld [vmem:[%s9116_s5 + $0x330] sm:$0xf0]  ;;  %v4172_v15 = vor.u32 %v5317_v35, %v4169_v42  ;;  %v4111_v35 = vld [vmem:[%s9116_s5 + $0x188] sm:$0xf]  ;;  %v5304_v42 = vld [vmem:[%s9116_s5 + $0x194] sm:$0xf0] }
 0x2ee   :  { %v4316_v6 = vor.u32 %v5353_v4, %v4313_v5  ;;  %v4383_v4 = vld [vmem:[%s9116_s5 + $0x3a8] sm:$0xf]  ;;  %v5372_v5 = vld [vmem:[%s9116_s5 + $0x3b4] sm:$0xf0] }
 0x2ef   :  { %2052 = vmatpush.bf16.msrb.mxu3 %v4252_v43  ;;  %v4044_v43 = vor.u32 %v5285_v13, %v4041_v34  ;;  %v5272_v13 = vld [vmem:[%s9116_s5 + $0x94] sm:$0xf0]  ;;  %v4384_v34 = vor.u32 %v5372_v5, %v4383_v4  ;;  %v4063_v53 = vld [vmem:[%s9116_s5 + $0x128] sm:$0xf] }
 0x2f0   :  { %2042 = vmatpush.bf16.msrb.mxu2 %v4076_v54  ;;  %2031 = vmatpush.bf16.msrb.mxu1 %v3916_v14  ;;  %v4271_v54 = vld [vmem:[%s9116_s5 + $0x2c8] sm:$0xf]  ;;  %v5324_v57 = vld [vmem:[%s9116_s5 + $0x234] sm:$0xf0] }
 0x2f1   :  { %2065 = vmatpush.bf16.msra.mxu0 %v4380_v17  ;;  %v4297_v17 = vld [vmem:[%s9116_s5 + $0x310] sm:$0xf0]  ;;  %v4319_v58 = vld [vmem:[%s9116_s5 + $0x328] sm:$0xf]  ;;  %v5288_v0 = vld [vmem:[%s9116_s5 + $0x114] sm:$0xf0] }
 0x2f2   :  { %v4300_v18 = vor.u32 %v5349_v16, %v4297_v17  ;;  %v4367_v16 = vld [vmem:[%s9116_s5 + $0x388] sm:$0xf]  ;;  %v5368_v17 = vld [vmem:[%s9116_s5 + $0x394] sm:$0xf0] }
 0x2f3   :  { %2053 = vmatpush.bf16.msrb.mxu3 %v4236_v26  ;;  %v5320_v4 = vld [vmem:[%s9116_s5 + $0x214] sm:$0xf0]  ;;  %v4303_v5 = vld [vmem:[%s9116_s5 + $0x308] sm:$0xf] }
 0x2f4   :  { %2043 = vmatpush.bf16.msrb.mxu2 %v4060_v2  ;;  %v4255_v2 = vld [vmem:[%s9116_s5 + $0x2a8] sm:$0xf] }
 0x2f5   :  { %2066 = vmatpush.bf16.msra.mxu0 %v4364_v29  ;;  %v5284_v29 = vld [vmem:[%s9116_s5 + $0xf4] sm:$0xf0] }
 0x2f7   :  { %2054 = vmatpush.bf16.msrb.mxu3 %v4220_v40  ;;  %v5348_v40 = vld [vmem:[%s9116_s5 + $0x2f4] sm:$0xf0] }
 0x2f8   :  { %2044 = vmatpush.bf16.msrb.mxu2 %v4044_v43  ;;  %v4288_v49 = vor.u32 %v5348_v40, %v4287_v33  ;;  %v4239_v43 = vld [vmem:[%s9116_s5 + $0x288] sm:$0xf]  ;;  %v5264_v33 = vld [vmem:[%s9116_s5 + $0x54] sm:$0xf0] }
 0x2f9   :  { %2067 = vmatpush.bf16.msra.mxu0 %v4348_v45  ;;  %v4032_v45 = vor.u32 %v5284_v29, %v4031_v28  ;;  %v4351_v28 = vld [vmem:[%s9116_s5 + $0x368] sm:$0xf]  ;;  %v5364_v29 = vld [vmem:[%s9116_s5 + $0x374] sm:$0xf0] }
 0x2fa   :  { %v4207_v40 = vld [vmem:[%s9116_s5 + $0x248] sm:$0xf] }
 0x2fb   :  { %2055 = vmatpush.bf16.msrb.mxu3 %v4204_v56  ;;  %v5344_v56 = vld [vmem:[%s9116_s5 + $0x2d4] sm:$0xf0] }
 0x2fc   :  { %v4272_v62 = vor.u32 %v5344_v56, %v4271_v54  ;;  %v5292_v54 = vld [vmem:[%s9116_s5 + $0x134] sm:$0xf0]  ;;  %v4191_v56 = vld [vmem:[%s9116_s5 + $0x228] sm:$0xf] }
 0x2fd   :  { %2068 = vmatpush.bf16.msra.mxu0 %v4332_v59  ;;  %v4016_v59 = vor.u32 %v5280_v48, %v4015_v47  ;;  %v3935_v48 = vld [vmem:[%s9116_s5 + $0x28] sm:$0xf]  ;;  %v4192_v1 = vor.u32 %v5324_v57, %v4191_v56  ;;  %v4113_v56 = vld [vmem:[%s9116_s5 + $0x198] sm:$0xf0]  ;;  %v5334_v57 = vld [vmem:[%s9116_s5 + $0x28c] sm:$0xf] }
 0x2ff   :  { %2056 = vmatpush.bf16.msrb.mxu3 %v4188_v3  ;;  %v5340_v3 = vld [vmem:[%s9116_s5 + $0x2b4] sm:$0xf0] }
 0x300   :  { %v4256_v14 = vor.u32 %v5340_v3, %v4255_v2  ;;  %v4175_v3 = vld [vmem:[%s9116_s5 + $0x208] sm:$0xf] }
 0x301   :  { %2069 = vmatpush.bf16.msra.mxu0 %v4316_v6  ;;  %v4000_v6 = vor.u32 %v5276_v50, %v3999_v61  ;;  %v4064_v50 = vor.u32 %v5292_v54, %v4063_v53  ;;  %v5302_v54 = vld [vmem:[%s9116_s5 + $0x18c] sm:$0xf] }
 0x303   :  { %2057 = vmatpush.bf16.msrb.mxu3 %v4172_v15  ;;  %v5336_v15 = vld [vmem:[%s9116_s5 + $0x294] sm:$0xf0] }
 0x305   :  { %2070 = vmatpush.bf16.msra.mxu0 %v4300_v18  ;;  %v3984_v18 = vor.u32 %v5272_v13, %v3983_v8  ;;  %v4033_v8 = vld [vmem:[%s9116_s5 + $0xf8] sm:$0xf0]  ;;  %v5314_v13 = vld [vmem:[%s9116_s5 + $0x1ec] sm:$0xf] }
 0x35a   :  { %v1173_v19 = vpop.xlane.xlu0 %1172 }
 0x35b   :  { %v1174_v20 = vmul.f32 %v1173_v19, %v7110_v55  ;;  %v4112_v19 = vor.u32 %v5304_v42, %v4111_v35 }
 0x35d   :  { %v1175_v21 = vadd.f32 1e-05, %v1174_v20  ;;  %v3967_v20 = vld [vmem:[%s9116_s5 + $0x68] sm:$0xf] }
 0x35f   :  { %5594 = vrsqrt.f32 %v1175_v21  ;;  %vm1182_vm6 = vweird.f32 %v1175_v21 }
 0x365   :  { %v5595_v22 = vpop.eup %5594 }
 0x366   :  { %v1177_v23 = vmul.f32 %v5595_v22, %v1175_v21  ;;  %vm1183_vm5 = vweird.f32 %v5595_v22  ;;  %v5268_v21 = vld [vmem:[%s9116_s5 + $0x74] sm:$0xf0] }
 0x367   :  { %vm1184_vm7 = vmor %vm1182_vm6, %vm1183_vm5 }
 0x368   :  { %v1178_v24 = vmul.f32 %v5595_v22, %v1177_v23  ;;  %v4368_v23 = vor.u32 %v5368_v17, %v4367_v16  ;;  %v4417_v16 = vld [vmem:[%s9116_s5 + $0x3f8] sm:$0xf0]  ;;  %v4176_v17 = vor.u32 %v5320_v4, %v4175_v3  ;;  %v5330_v4 = vld [vmem:[%s9116_s5 + $0x26c] sm:$0xf] }
 0x369   :  { %v4097_v3 = vld [vmem:[%s9116_s5 + $0x178] sm:$0xf0] }
 0x36a   :  { %v1179_v25 = vmul.f32 0.5, %v1178_v24  ;;  %v4095_v24 = vld [vmem:[%s9116_s5 + $0x168] sm:$0xf] }
 0x36c   :  { %v1180_v26 = vsub.f32 1.5, %v1179_v25  ;;  %v5300_v25 = vld [vmem:[%s9116_s5 + $0x174] sm:$0xf0] }
 0x36e   :  { %v1181_v27 = vmul.f32 %v5595_v22, %v1180_v26  ;;  %v4223_v26 = vld [vmem:[%s9116_s5 + $0x268] sm:$0xf] }
 0x370   :  { %v1185_v32 = vsel %vm1184_vm7, %v5595_v22, %v1181_v27  ;;  %v4240_v22 = vor.u32 %v5336_v15, %v4239_v43  ;;  %v5332_v27 = vld [vmem:[%s9116_s5 + $0x274] sm:$0xf0]  ;;  %v4289_v43 = vld [vmem:[%s9116_s5 + $0x2f8] sm:$0xf0]  ;;  %v5378_v15 = vld [vmem:[%s9116_s5 + $0x3ec] sm:$0xf] }
 0x371   :  { %v1186_v36 = vmul.f32 %v1185_v32, %v7141_v9  ;;  %v1187_v37 = vmul.f32 %v1185_v32, %v7144_v10  ;;  %v1188_v38 = vmul.f32 %v1185_v32, %v7147_v11  ;;  %v1189_v39 = vmul.f32 %v1185_v32, %v7150_v12  ;;  %v3951_v32 = vld [vmem:[%s9116_s5 + $0x48] sm:$0xf] }
 0x372   :  { %v4160_v9 = vor.u32 %v5316_v31, %v4159_v30  ;;  %v3968_v30 = vor.u32 %v5268_v21, %v3967_v20  ;;  %v4096_v31 = vor.u32 %v5300_v25, %v4095_v24  ;;  %v5278_v21 = vld [vmem:[%s9116_s5 + $0xcc] sm:$0xf]  ;;  %v4420_v24 = vor.u32 %v5378_v15, %v4417_v16  ;;  %v4081_v15 = vld [vmem:[%s9116_s5 + $0x158] sm:$0xf0] }
 0x373   :  { %v7424_v46 = vpack.c.bf16 %v1186_v36, %v1186_v36  ;;  %v7426_v10 = vpack.c.bf16 %v1187_v37, %v1187_v37  ;;  %v7428_v11 = vpack.c.bf16 %v1188_v38, %v1188_v38  ;;  %v7430_v12 = vpack.c.bf16 %v1189_v39, %v1189_v39  ;;  %v4079_v38 = vld [vmem:[%s9116_s5 + $0x148] sm:$0xf]  ;;  %v5296_v39 = vld [vmem:[%s9116_s5 + $0x154] sm:$0xf0]  ;;  %v5310_v25 = vld [vmem:[%s9116_s5 + $0x1cc] sm:$0xf] }
 0x374   :  { %v4224_v36 = vor.u32 %v5332_v27, %v4223_v26  ;;  %v4352_v37 = vor.u32 %v5364_v29, %v4351_v28  ;;  %v4080_v47 = vor.u32 %v5296_v39, %v4079_v38  ;;  %v4145_v26 = vld [vmem:[%s9116_s5 + $0x1d8] sm:$0xf0]  ;;  %v5342_v27 = vld [vmem:[%s9116_s5 + $0x2cc] sm:$0xf] }
 0x375   :  { %1980 = vmatmul.bf16.vlgmr.msra.gmra.mxu1 %v7424_v46  ;;  %1993 = vmatmul.bf16.vlgmr.msra.gmra.mxu2 %v7426_v10  ;;  %v4273_v28 = vld [vmem:[%s9116_s5 + $0x2d8] sm:$0xf0]  ;;  %v5374_v29 = vld [vmem:[%s9116_s5 + $0x3cc] sm:$0xf] }
 0x376   :  { %2006 = vmatmul.bf16.vlgmr.msra.gmra.mxu3 %v7428_v11  ;;  %2019 = vmatmul.bf16.vlgmr.msrb.gmra.mxu0 %v7430_v12  ;;  %v5306_v39 = vld [vmem:[%s9116_s5 + $0x1ac] sm:$0xf] }
 0x377   :  { %2076 = vmatpush.bf16.msra.mxu1 %v4032_v45  ;;  %2089 = vmatpush.bf16.msra.mxu2 %v4160_v9  ;;  %v5360_v45 = vld [vmem:[%s9116_s5 + $0x354] sm:$0xf0]  ;;  %v3952_v9 = vor.u32 %v5264_v33, %v3951_v32  ;;  %v4148_v32 = vor.u32 %v5310_v25, %v4145_v26  ;;  %v5274_v33 = vld [vmem:[%s9116_s5 + $0xac] sm:$0xf] }
 0x378   :  { %2102 = vmatpush.bf16.msra.mxu3 %v4288_v49  ;;  %2115 = vmatpush.bf16.msrb.mxu0 %v4416_v51  ;;  %v5260_v49 = vld [vmem:[%s9116_s5 + $0x34] sm:$0xf0]  ;;  %v4208_v51 = vor.u32 %v5328_v41, %v4207_v40  ;;  %v4336_v52 = vor.u32 %v5360_v45, %v4335_v44  ;;  %v4129_v40 = vld [vmem:[%s9116_s5 + $0x1b8] sm:$0xf0]  ;;  %v5338_v41 = vld [vmem:[%s9116_s5 + $0x2ac] sm:$0xf] }
 0x379   :  { %v3936_v61 = vor.u32 %v5260_v49, %v3935_v48  ;;  %v4257_v44 = vld [vmem:[%s9116_s5 + $0x2b8] sm:$0xf0]  ;;  %v5370_v45 = vld [vmem:[%s9116_s5 + $0x3ac] sm:$0xf]  ;;  %v4132_v48 = vor.u32 %v5306_v39, %v4129_v40 }
 0x37a   :  { %v5270_v49 = vld [vmem:[%s9116_s5 + $0x8c] sm:$0xf] }
 0x37b   :  { %2077 = vmatpush.bf16.msra.mxu1 %v4016_v59  ;;  %2090 = vmatpush.bf16.msra.mxu2 %v4144_v60  ;;  %v5356_v59 = vld [vmem:[%s9116_s5 + $0x334] sm:$0xf0]  ;;  %v3919_v60 = vld [vmem:[%s9116_s5 + $0x8] sm:$0xf]  ;;  %v5326_v16 = vld [vmem:[%s9116_s5 + $0x24c] sm:$0xf] }
 0x37c   :  { %2103 = vmatpush.bf16.msra.mxu3 %v4272_v62  ;;  %2116 = vmatpush.bf16.msrb.mxu0 %v4400_v63  ;;  %v5256_v62 = vld [vmem:[%s9116_s5 + $0x14] sm:$0xf0]  ;;  %v4047_v63 = vld [vmem:[%s9116_s5 + $0x108] sm:$0xf]  ;;  %v4320_v2 = vor.u32 %v5356_v59, %v4319_v58  ;;  %v4241_v58 = vld [vmem:[%s9116_s5 + $0x298] sm:$0xf0] }
 0x37d   :  { %v3920_v35 = vor.u32 %v5256_v62, %v3919_v60  ;;  %v4048_v42 = vor.u32 %v5288_v0, %v4047_v63  ;;  %v5366_v59 = vld [vmem:[%s9116_s5 + $0x38c] sm:$0xf]  ;;  %v4369_v60 = vld [vmem:[%s9116_s5 + $0x398] sm:$0xf0]  ;;  %v4244_v0 = vor.u32 %v5334_v57, %v4241_v58 }
 0x37e   :  { %v5266_v62 = vld [vmem:[%s9116_s5 + $0x6c] sm:$0xf]  ;;  %v3969_v63 = vld [vmem:[%s9116_s5 + $0x78] sm:$0xf0] }
 0x37f   :  { %2078 = vmatpush.bf16.msra.mxu1 %v4000_v6  ;;  %2091 = vmatpush.bf16.msra.mxu2 %v4128_v7  ;;  %v5352_v6 = vld [vmem:[%s9116_s5 + $0x314] sm:$0xf0]  ;;  %v5282_v7 = vld [vmem:[%s9116_s5 + $0xec] sm:$0xf] }
 0x380   :  { %2104 = vmatpush.bf16.msra.mxu3 %v4256_v14  ;;  %2117 = vmatpush.bf16.msrb.mxu0 %v4384_v34  ;;  %v4161_v14 = vld [vmem:[%s9116_s5 + $0x1f8] sm:$0xf0]  ;;  %v5346_v34 = vld [vmem:[%s9116_s5 + $0x2ec] sm:$0xf] }
 0x381   :  { %v4164_v20 = vor.u32 %v5314_v13, %v4161_v14  ;;  %v5262_v14 = vld [vmem:[%s9116_s5 + $0x4c] sm:$0xf] }
 0x382   :  { %v5290_v26 = vld [vmem:[%s9116_s5 + $0x12c] sm:$0xf] }
 0x383   :  { %2079 = vmatpush.bf16.msra.mxu1 %v3984_v18  ;;  %2092 = vmatpush.bf16.msra.mxu2 %v4112_v19  ;;  %v4304_v18 = vor.u32 %v5352_v6, %v4303_v5  ;;  %v4036_v19 = vor.u32 %v5282_v7, %v4033_v8  ;;  %v4225_v5 = vld [vmem:[%s9116_s5 + $0x278] sm:$0xf0]  ;;  %v5362_v6 = vld [vmem:[%s9116_s5 + $0x36c] sm:$0xf]  ;;  %v3972_v8 = vor.u32 %v5266_v62, %v3969_v63  ;;  %v5439_v62 = vld [vmem:[%s9118_s7 + $0x1cc] sm:$0xf0] }
 0x384   :  { %2105 = vmatpush.bf16.msra.mxu3 %v4240_v22  ;;  %2118 = vmatpush.bf16.msrb.mxu0 %v4368_v23  ;;  %v4017_v22 = vld [vmem:[%s9116_s5 + $0xd8] sm:$0xf0]  ;;  %v4292_v23 = vor.u32 %v5346_v34, %v4289_v43  ;;  %v5294_v43 = vld [vmem:[%s9116_s5 + $0x14c] sm:$0xf]  ;;  %v4791_v63 = vld [vmem:[%s9118_s7 + $0x2e0] sm:$0xf] }
 0x385   :  { %2032 = vmatmul.bf16.vlgmr.msrb.gmra.mxu1 %v7424_v46  ;;  %2045 = vmatmul.bf16.vlgmr.msrb.gmra.mxu2 %v7426_v10  ;;  %v4353_v7 = vld [vmem:[%s9116_s5 + $0x378] sm:$0xf0] }
 0x386   :  { %2058 = vmatmul.bf16.vlgmr.msrb.gmra.mxu3 %v7428_v11  ;;  %2071 = vmatmul.bf16.vlgmr.msra.gmra.mxu0 %v7430_v12  ;;  %v3953_v34 = vld [vmem:[%s9116_s5 + $0x58] sm:$0xf0] }
 0x387   :  { %2080 = vmatpush.bf16.msra.mxu1 %v3968_v30  ;;  %2093 = vmatpush.bf16.msra.mxu2 %v4096_v31  ;;  %v4401_v30 = vld [vmem:[%s9116_s5 + $0x3d8] sm:$0xf0]  ;;  %v4020_v31 = vor.u32 %v5278_v21, %v4017_v22  ;;  %v4084_v21 = vor.u32 %v5294_v43, %v4081_v15  ;;  %v5258_v22 = vld [vmem:[%s9116_s5 + $0x2c] sm:$0xf]  ;;  %v5467_v43 = vld [vmem:[%s9118_s7 + $0x2ac] sm:$0xf0] }
 0x388   :  { %2106 = vmatpush.bf16.msra.mxu3 %v4224_v36  ;;  %2119 = vmatpush.bf16.msrb.mxu0 %v4352_v37  ;;  %v4001_v36 = vld [vmem:[%s9116_s5 + $0xb8] sm:$0xf0]  ;;  %v4276_v37 = vor.u32 %v5342_v27, %v4273_v28  ;;  %v4404_v38 = vor.u32 %v5374_v29, %v4401_v30  ;;  %v5322_v28 = vld [vmem:[%s9116_s5 + $0x22c] sm:$0xf] }
 0x389   :  { %v4065_v27 = vld [vmem:[%s9116_s5 + $0x138] sm:$0xf0]  ;;  %v5354_v30 = vld [vmem:[%s9116_s5 + $0x32c] sm:$0xf] }
 0x38a   :  { %v4193_v29 = vld [vmem:[%s9116_s5 + $0x238] sm:$0xf0] }
 0x38b   :  { %2081 = vmatpush.bf16.msra.mxu1 %v3952_v9  ;;  %2094 = vmatpush.bf16.msra.mxu2 %v4080_v47  ;;  %v4385_v9 = vld [vmem:[%s9116_s5 + $0x3b8] sm:$0xf0]  ;;  %v4004_v47 = vor.u32 %v5274_v33, %v4001_v36  ;;  %v4068_v33 = vor.u32 %v5290_v26, %v4065_v27  ;;  %v5254_v36 = vld [vmem:[%s9116_s5 + $0xc] sm:$0xf]  ;;  %v4196_v39 = vor.u32 %v5322_v28, %v4193_v29  ;;  %v4583_v26 = vld [vmem:[%s9118_s7 + $0x140] sm:$0xf] }
 0x38c   :  { %2107 = vmatpush.bf16.msra.mxu3 %v4208_v51  ;;  %2120 = vmatpush.bf16.msrb.mxu0 %v4336_v52  ;;  %v3985_v51 = vld [vmem:[%s9116_s5 + $0x98] sm:$0xf0]  ;;  %v4260_v52 = vor.u32 %v5338_v41, %v4257_v44  ;;  %v4388_v53 = vor.u32 %v5370_v45, %v4385_v9  ;;  %v5318_v44 = vld [vmem:[%s9116_s5 + $0x20c] sm:$0xf]  ;;  %v5423_v27 = vld [vmem:[%s9118_s7 + $0x14c] sm:$0xf0] }
 0x38d   :  { %v4049_v41 = vld [vmem:[%s9116_s5 + $0x118] sm:$0xf0]  ;;  %v5350_v9 = vld [vmem:[%s9116_s5 + $0x30c] sm:$0xf]  ;;  %v4439_v29 = vld [vmem:[%s9118_s7 + $0x20] sm:$0xf] }
 0x38e   :  { %v4177_v45 = vld [vmem:[%s9116_s5 + $0x218] sm:$0xf0] }
 0x38f   :  { %2082 = vmatpush.bf16.msra.mxu1 %v3936_v61  ;;  %2095 = vmatpush.bf16.msra.mxu2 %v4064_v50  ;;  %v3988_v61 = vor.u32 %v5270_v49, %v3985_v51  ;;  %v4116_v50 = vor.u32 %v5302_v54, %v4113_v56  ;;  %v5411_v49 = vld [vmem:[%s9118_s7 + $0xec] sm:$0xf0]  ;;  %v4663_v51 = vld [vmem:[%s9118_s7 + $0x1e0] sm:$0xf]  ;;  %v4180_v56 = vor.u32 %v5318_v44, %v4177_v45 }
 0x390   :  { %2108 = vmatpush.bf16.msra.mxu3 %v4192_v1  ;;  %2121 = vmatpush.bf16.msrb.mxu0 %v4320_v2  ;;  %v4372_v1 = vor.u32 %v5366_v59, %v4369_v60  ;;  %v5298_v2 = vld [vmem:[%s9116_s5 + $0x16c] sm:$0xf]  ;;  %v4519_v59 = vld [vmem:[%s9118_s7 + $0xc0] sm:$0xf] }
 0x391   :  { %v4100_v13 = vor.u32 %v5298_v2, %v4097_v3  ;;  %v4503_v3 = vld [vmem:[%s9118_s7 + $0xa0] sm:$0xf] }
 0x393   :  { %2083 = vmatpush.bf16.msra.mxu1 %v3920_v35  ;;  %2096 = vmatpush.bf16.msra.mxu2 %v4048_v42  ;;  %v4228_v35 = vor.u32 %v5330_v4, %v4225_v5  ;;  %v4356_v42 = vor.u32 %v5362_v6, %v4353_v7  ;;  %v5403_v4 = vld [vmem:[%s9118_s7 + $0xac] sm:$0xf0]  ;;  %v4631_v6 = vld [vmem:[%s9118_s7 + $0x1a0] sm:$0xf] }
 0x394   :  { %2109 = vmatpush.bf16.msra.mxu3 %v4176_v17  ;;  %2122 = vmatpush.bf16.msrb.mxu0 %v4304_v18  ;;  %v4209_v17 = vld [vmem:[%s9116_s5 + $0x258] sm:$0xf0]  ;;  %v5358_v18 = vld [vmem:[%s9116_s5 + $0x34c] sm:$0xf]  ;;  %v5435_v7 = vld [vmem:[%s9118_s7 + $0x1ac] sm:$0xf0] }
 0x396   :  { %2084 = vmatmul.bf16.vlgmr.msra.gmra.mxu1 %v7424_v46  ;;  %2097 = vmatmul.bf16.vlgmr.msra.gmra.mxu2 %v7426_v10 }
 0x397   :  { %2128 = vmatpush.bf16.msrb.mxu1 %v4036_v19  ;;  %2141 = vmatpush.bf16.msrb.mxu2 %v4164_v20  ;;  %v4337_v19 = vld [vmem:[%s9116_s5 + $0x358] sm:$0xf0]  ;;  %v3956_v20 = vor.u32 %v5262_v14, %v3953_v34  ;;  %v4487_v14 = vld [vmem:[%s9118_s7 + $0x80] sm:$0xf]  ;;  %v5399_v34 = vld [vmem:[%s9118_s7 + $0x8c] sm:$0xf0] }
 0x398   :  { %2154 = vmatpush.bf16.msrb.mxu3 %v4292_v23  ;;  %2167 = vmatpush.bf16.msra.mxu0 %v4420_v24  ;;  %v3937_v23 = vld [vmem:[%s9116_s5 + $0x38] sm:$0xf0]  ;;  %v4212_v24 = vor.u32 %v5326_v16, %v4209_v17  ;;  %v4340_v25 = vor.u32 %v5358_v18, %v4337_v19  ;;  %v4488_v16 = vor.u32 %v5399_v34, %v4487_v14  ;;  %v4471_v17 = vld [vmem:[%s9118_s7 + $0x60] sm:$0xf]  ;;  %v5395_v19 = vld [vmem:[%s9118_s7 + $0x6c] sm:$0xf0] }
 0x399   :  { %2110 = vmatmul.bf16.vlgmr.msra.gmra.mxu3 %v7428_v11  ;;  %2123 = vmatmul.bf16.vlgmr.msrb.gmra.mxu0 %v7430_v12  ;;  %v4711_v14 = vld [vmem:[%s9118_s7 + $0x240] sm:$0xf]  ;;  %v5455_v34 = vld [vmem:[%s9118_s7 + $0x24c] sm:$0xf0] }
 0x39b   :  { %2129 = vmatpush.bf16.msrb.mxu1 %v4020_v31  ;;  %2142 = vmatpush.bf16.msrb.mxu2 %v4148_v32  ;;  %v4321_v31 = vld [vmem:[%s9116_s5 + $0x338] sm:$0xf0]  ;;  %v3940_v32 = vor.u32 %v5258_v22, %v3937_v23  ;;  %v4472_v22 = vor.u32 %v5395_v19, %v4471_v17  ;;  %v4455_v23 = vld [vmem:[%s9118_s7 + $0x40] sm:$0xf] }
 0x39c   :  { %2155 = vmatpush.bf16.msrb.mxu3 %v4276_v37  ;;  %2168 = vmatpush.bf16.msra.mxu0 %v4404_v38  ;;  %v3921_v37 = vld [vmem:[%s9116_s5 + $0x18] sm:$0xf0]  ;;  %v5286_v38 = vld [vmem:[%s9116_s5 + $0x10c] sm:$0xf]  ;;  %v4324_v40 = vor.u32 %v5354_v30, %v4321_v31  ;;  %v4584_v30 = vor.u32 %v5423_v27, %v4583_v26  ;;  %v5387_v31 = vld [vmem:[%s9118_s7 + $0x2c] sm:$0xf0] }
 0x39d   :  { %v4052_v54 = vor.u32 %v5286_v38, %v4049_v41  ;;  %v4423_v38 = vld [vmem:[%s9118_s7] sm:$0xf]  ;;  %v4537_v41 = vld [vmem:[%s9118_s7 + $0xf0] sm:$0xf0]  ;;  %v5447_v27 = vld [vmem:[%s9118_s7 + $0x20c] sm:$0xf0] }
 0x39e   :  { %v4695_v17 = vld [vmem:[%s9118_s7 + $0x220] sm:$0xf] }
 0x39f   :  { %2130 = vmatpush.bf16.msrb.mxu1 %v4004_v47  ;;  %2143 = vmatpush.bf16.msrb.mxu2 %v4132_v48  ;;  %v4305_v47 = vld [vmem:[%s9116_s5 + $0x318] sm:$0xf0]  ;;  %v4535_v48 = vld [vmem:[%s9118_s7 + $0xe0] sm:$0xf] }
 0x3a0   :  { %2156 = vmatpush.bf16.msrb.mxu3 %v4260_v52  ;;  %2169 = vmatpush.bf16.msra.mxu0 %v4388_v53  ;;  %v5443_v52 = vld [vmem:[%s9118_s7 + $0x1ec] sm:$0xf0]  ;;  %v3924_v53 = vor.u32 %v5254_v36, %v3921_v37  ;;  %v4308_v57 = vor.u32 %v5350_v9, %v4305_v47  ;;  %v4536_v58 = vor.u32 %v5411_v49, %v4535_v48  ;;  %v5405_v9 = vld [vmem:[%s9118_s7 + $0xc4] sm:$0xf]  ;;  %v4521_v47 = vld [vmem:[%s9118_s7 + $0xd0] sm:$0xf0] }
 0x3a1   :  { %v4664_v60 = vor.u32 %v5443_v52, %v4663_v51  ;;  %v4440_v36 = vor.u32 %v5387_v31, %v4439_v29  ;;  %v4524_v48 = vor.u32 %v5405_v9, %v4521_v47  ;;  %v5401_v49 = vld [vmem:[%s9118_s7 + $0xa4] sm:$0xf]  ;;  %v4505_v51 = vld [vmem:[%s9118_s7 + $0xb0] sm:$0xf0]  ;;  %v4551_v52 = vld [vmem:[%s9118_s7 + $0x100] sm:$0xf] }
 0x3a2   :  { %v4679_v26 = vld [vmem:[%s9118_s7 + $0x200] sm:$0xf]  ;;  %v5425_v31 = vld [vmem:[%s9118_s7 + $0x164] sm:$0xf]  ;;  %v4585_v47 = vld [vmem:[%s9118_s7 + $0x150] sm:$0xf0] }
 0x3a3   :  { %2131 = vmatpush.bf16.msrb.mxu1 %v3988_v61  ;;  %2144 = vmatpush.bf16.msrb.mxu2 %v4116_v50  ;;  %v5407_v61 = vld [vmem:[%s9118_s7 + $0xcc] sm:$0xf0]  ;;  %v4647_v50 = vld [vmem:[%s9118_s7 + $0x1c0] sm:$0xf]  ;;  %v4680_v29 = vor.u32 %v5447_v27, %v4679_v26  ;;  %v5421_v9 = vld [vmem:[%s9118_s7 + $0x144] sm:$0xf] }
 0x3a4   :  { %2157 = vmatpush.bf16.msrb.mxu3 %v4244_v0  ;;  %2170 = vmatpush.bf16.msra.mxu0 %v4372_v1  ;;  %v5475_v0 = vld [vmem:[%s9118_s7 + $0x2ec] sm:$0xf0]  ;;  %v4520_v2 = vor.u32 %v5407_v61, %v4519_v59  ;;  %v4648_v5 = vor.u32 %v5439_v62, %v4647_v50  ;;  %v4489_v59 = vld [vmem:[%s9118_s7 + $0x90] sm:$0xf0]  ;;  %v5441_v50 = vld [vmem:[%s9118_s7 + $0x1e4] sm:$0xf] }
 0x3a5   :  { %v4792_v1 = vor.u32 %v5475_v0, %v4791_v63  ;;  %v4665_v62 = vld [vmem:[%s9118_s7 + $0x1f0] sm:$0xf0]  ;;  %v4543_v27 = vld [vmem:[%s9118_s7 + $0xe8] sm:$0xf] }
 0x3a6   :  { %v4668_v63 = vor.u32 %v5441_v50, %v4665_v62  ;;  %v4761_v50 = vld [vmem:[%s9118_s7 + $0x2b0] sm:$0xf0] }
 0x3a7   :  { %2132 = vmatpush.bf16.msrb.mxu1 %v3972_v8  ;;  %2145 = vmatpush.bf16.msrb.mxu2 %v4100_v13  ;;  %v4775_v8 = vld [vmem:[%s9118_s7 + $0x2c0] sm:$0xf]  ;;  %v4504_v13 = vor.u32 %v5403_v4, %v4503_v3  ;;  %v5459_v4 = vld [vmem:[%s9118_s7 + $0x26c] sm:$0xf0] }
 0x3a8   :  { %2158 = vmatpush.bf16.msrb.mxu3 %v4228_v35  ;;  %2171 = vmatpush.bf16.msra.mxu0 %v4356_v42  ;;  %v5431_v35 = vld [vmem:[%s9118_s7 + $0x18c] sm:$0xf0]  ;;  %v4759_v42 = vld [vmem:[%s9118_s7 + $0x2a0] sm:$0xf] }
 0x3a9   :  { %v4760_v15 = vor.u32 %v5467_v43, %v4759_v42  ;;  %v4727_v3 = vld [vmem:[%s9118_s7 + $0x260] sm:$0xf]  ;;  %v5385_v42 = vld [vmem:[%s9118_s7 + $0x24] sm:$0xf]  ;;  %v4633_v43 = vld [vmem:[%s9118_s7 + $0x1b0] sm:$0xf0] }
 0x3ab   :  { %2133 = vmatpush.bf16.msrb.mxu1 %v3956_v20  ;;  %2146 = vmatpush.bf16.msrb.mxu2 %v4084_v21  ;;  %v4599_v20 = vld [vmem:[%s9118_s7 + $0x160] sm:$0xf]  ;;  %v5427_v21 = vld [vmem:[%s9118_s7 + $0x16c] sm:$0xf0] }
 0x3ac   :  { %2159 = vmatpush.bf16.msrb.mxu3 %v4212_v24  ;;  %2172 = vmatpush.bf16.msra.mxu0 %v4340_v25  ;;  %v4600_v24 = vor.u32 %v5427_v21, %v4599_v20  ;;  %v5391_v25 = vld [vmem:[%s9118_s7 + $0x4c] sm:$0xf0]  ;;  %v5429_v20 = vld [vmem:[%s9118_s7 + $0x184] sm:$0xf] }
 0x3ad   :  { %v4456_v28 = vor.u32 %v5391_v25, %v4455_v23  ;;  %v4425_v23 = vld [vmem:[%s9118_s7 + $0x10] sm:$0xf0] }
 0x3af   :  { %2134 = vmatpush.bf16.msrb.mxu1 %v3940_v32  ;;  %2147 = vmatpush.bf16.msrb.mxu2 %v4068_v33  ;;  %v4567_v32 = vld [vmem:[%s9118_s7 + $0x120] sm:$0xf]  ;;  %v5419_v33 = vld [vmem:[%s9118_s7 + $0x12c] sm:$0xf0] }
 0x3b0   :  { %2160 = vmatpush.bf16.msrb.mxu3 %v4196_v39  ;;  %2173 = vmatpush.bf16.msra.mxu0 %v4324_v40  ;;  %v4568_v37 = vor.u32 %v5419_v33, %v4567_v32  ;;  %v5383_v39 = vld [vmem:[%s9118_s7 + $0xc] sm:$0xf0]  ;;  %v5409_v40 = vld [vmem:[%s9118_s7 + $0xe4] sm:$0xf]  ;;  %v4601_v32 = vld [vmem:[%s9118_s7 + $0x170] sm:$0xf0] }
 0x3b1   :  { %v4424_v44 = vor.u32 %v5383_v39, %v4423_v38  ;;  %v4540_v45 = vor.u32 %v5409_v40, %v4537_v41  ;;  %v4793_v38 = vld [vmem:[%s9118_s7 + $0x2f0] sm:$0xf0]  ;;  %v4903_v41 = vld [vmem:[%s9118_s7 + $0x3c0] sm:$0xf] }
 0x3b3   :  { %2135 = vmatpush.bf16.msrb.mxu1 %v3924_v53  ;;  %2148 = vmatpush.bf16.msrb.mxu2 %v4052_v54  ;;  %v4508_v53 = vor.u32 %v5401_v49, %v4505_v51  ;;  %v5415_v54 = vld [vmem:[%s9118_s7 + $0x10c] sm:$0xf0]  ;;  %v4588_v49 = vor.u32 %v5421_v9, %v4585_v47  ;;  %v4777_v51 = vld [vmem:[%s9118_s7 + $0x2d0] sm:$0xf0] }
 0x3b4   :  { %2161 = vmatpush.bf16.msrb.mxu3 %v4180_v56  ;;  %2174 = vmatpush.bf16.msra.mxu0 %v4308_v57  ;;  %v4743_v56 = vld [vmem:[%s9118_s7 + $0x280] sm:$0xf]  ;;  %v5463_v57 = vld [vmem:[%s9118_s7 + $0x28c] sm:$0xf0] }
 0x3b5   :  { %v4744_v61 = vor.u32 %v5463_v57, %v4743_v56  ;;  %v5499_v56 = vld [vmem:[%s9118_s7 + $0x3ac] sm:$0xf0] }
 0x3b6   :  { %2136 = vmatmul.bf16.vlgmr.msrb.gmra.mxu1 %v7424_v46  ;;  %2149 = vmatmul.bf16.vlgmr.msrb.gmra.mxu2 %v7426_v10  ;;  %v5471_v46 = vld [vmem:[%s9118_s7 + $0x2cc] sm:$0xf0] }
 0x3b7   :  { %2966 = vmatpush.bf16.msra.mxu1 %v4536_v58  ;;  %2979 = vmatpush.bf16.msra.mxu2 %v4664_v60  ;;  %v4776_v10 = vor.u32 %v5471_v46, %v4775_v8  ;;  %v5397_v58 = vld [vmem:[%s9118_s7 + $0x84] sm:$0xf]  ;;  %v4552_v60 = vor.u32 %v5415_v54, %v4551_v52  ;;  %v4649_v8 = vld [vmem:[%s9118_s7 + $0x1d0] sm:$0xf0]  ;;  %v4887_v54 = vld [vmem:[%s9118_s7 + $0x3a0] sm:$0xf] }
 0x3b8   :  { %2162 = vmatmul.bf16.vlgmr.msrb.gmra.mxu3 %v7428_v11  ;;  %2175 = vmatmul.bf16.vlgmr.msra.gmra.mxu0 %v7430_v12  ;;  %v4632_v11 = vor.u32 %v5435_v7, %v4631_v6  ;;  %v4615_v12 = vld [vmem:[%s9118_s7 + $0x180] sm:$0xf]  ;;  %v4492_v0 = vor.u32 %v5397_v58, %v4489_v59  ;;  %v5437_v6 = vld [vmem:[%s9118_s7 + $0x1c4] sm:$0xf]  ;;  %v4888_v57 = vor.u32 %v5499_v56, %v4887_v54  ;;  %v4569_v59 = vld [vmem:[%s9118_s7 + $0x130] sm:$0xf0] }
 0x3b9   :  { %2992 = vmatpush.bf16.msra.mxu3 %v4792_v1  ;;  %v4616_v18 = vor.u32 %v5431_v35, %v4615_v12  ;;  %v5393_v1 = vld [vmem:[%s9118_s7 + $0x64] sm:$0xf]  ;;  %v4681_v56 = vld [vmem:[%s9118_s7 + $0x210] sm:$0xf0] }
 0x3ba   :  { %v5389_v46 = vld [vmem:[%s9118_s7 + $0x44] sm:$0xf] }
 0x3bb   :  { %2967 = vmatpush.bf16.msra.mxu1 %v4520_v2  ;;  %2980 = vmatpush.bf16.msra.mxu2 %v4648_v5  ;;  %v4473_v2 = vld [vmem:[%s9118_s7 + $0x70] sm:$0xf0]  ;;  %v4728_v5 = vor.u32 %v5459_v4, %v4727_v3  ;;  %v5433_v12 = vld [vmem:[%s9118_s7 + $0x1a4] sm:$0xf] }
 0x3bc   :  { %v4476_v7 = vor.u32 %v5393_v1, %v4473_v2  ;;  %v5417_v58 = vld [vmem:[%s9118_s7 + $0x124] sm:$0xf] }
 0x3bd   :  { %2993 = vmatpush.bf16.msra.mxu3 %v4776_v10  ;;  %v4457_v10 = vld [vmem:[%s9118_s7 + $0x50] sm:$0xf0]  ;;  %v5445_v54 = vld [vmem:[%s9118_s7 + $0x204] sm:$0xf] }
 0x3be   :  { %v4460_v35 = vor.u32 %v5389_v46, %v4457_v10  ;;  %v4745_v46 = vld [vmem:[%s9118_s7 + $0x290] sm:$0xf0] }
 0x3bf   :  { %2968 = vmatpush.bf16.msra.mxu1 %v4504_v13  ;;  %2981 = vmatpush.bf16.msra.mxu2 %v4632_v11  ;;  %v4652_v13 = vor.u32 %v5437_v6, %v4649_v8  ;;  %v4712_v11 = vor.u32 %v5455_v34, %v4711_v14  ;;  %v4553_v6 = vld [vmem:[%s9118_s7 + $0x110] sm:$0xf0]  ;;  %v5491_v14 = vld [vmem:[%s9118_s7 + $0x36c] sm:$0xf0]  ;;  %v5457_v34 = vld [vmem:[%s9118_s7 + $0x264] sm:$0xf] }
 0x3c1   :  { %2994 = vmatpush.bf16.msra.mxu3 %v4760_v15  ;;  %v4441_v15 = vld [vmem:[%s9118_s7 + $0x30] sm:$0xf0] }
 0x3c2   :  { %v4444_v21 = vor.u32 %v5385_v42, %v4441_v15 }
 0x3c3   :  { %2969 = vmatpush.bf16.msra.mxu1 %v4488_v16  ;;  %2982 = vmatpush.bf16.msra.mxu2 %v4616_v18  ;;  %v4636_v16 = vor.u32 %v5433_v12, %v4633_v43  ;;  %v5451_v18 = vld [vmem:[%s9118_s7 + $0x22c] sm:$0xf0] }
 0x3c4   :  { %v4696_v19 = vor.u32 %v5451_v18, %v4695_v17  ;;  %v4839_v18 = vld [vmem:[%s9118_s7 + $0x340] sm:$0xf] }
 0x3c5   :  { %2995 = vmatpush.bf16.msra.mxu3 %v4744_v61  ;;  %v4572_v61 = vor.u32 %v5417_v58, %v4569_v59  ;;  %v4684_v59 = vor.u32 %v5445_v54, %v4681_v56  ;;  %v5384_v56 = vld [vmem:[%s9118_s7 + $0x14] sm:$0xf0] }
 0x3c7   :  { %2970 = vmatpush.bf16.msra.mxu1 %v4472_v22  ;;  %2983 = vmatpush.bf16.msra.mxu2 %v4600_v24  ;;  %v5381_v22 = vld [vmem:[%s9118_s7 + $0x4] sm:$0xf]  ;;  %v4617_v24 = vld [vmem:[%s9118_s7 + $0x190] sm:$0xf0] }
 0x3c8   :  { %v4620_v25 = vor.u32 %v5429_v20, %v4617_v24  ;;  %v4428_v39 = vor.u32 %v5381_v22, %v4425_v23  ;;  %v5453_v23 = vld [vmem:[%s9118_s7 + $0x244] sm:$0xf]  ;;  %v4713_v24 = vld [vmem:[%s9118_s7 + $0x250] sm:$0xf0] }
 0x3c9   :  { %2996 = vmatpush.bf16.msra.mxu3 %v4728_v5  ;;  %v5413_v5 = vld [vmem:[%s9118_s7 + $0x104] sm:$0xf] }
 0x3ca   :  { %v4556_v8 = vor.u32 %v5413_v5, %v4553_v6 }
 0x3cb   :  { %2971 = vmatpush.bf16.msra.mxu1 %v4456_v28  ;;  %2984 = vmatpush.bf16.msra.mxu2 %v4584_v30  ;;  %v4919_v28 = vld [vmem:[%s9118_s7 + $0x3e0] sm:$0xf]  ;;  %v5507_v30 = vld [vmem:[%s9118_s7 + $0x3ec] sm:$0xf0] }
 0x3cc   :  { %v4920_v33 = vor.u32 %v5507_v30, %v4919_v28  ;;  %v5412_v28 = vld [vmem:[%s9118_s7 + $0xf4] sm:$0xf0]  ;;  %v5483_v30 = vld [vmem:[%s9118_s7 + $0x32c] sm:$0xf0] }
 0x3cd   :  { %2997 = vmatpush.bf16.msra.mxu3 %v4712_v11  ;;  %v4729_v11 = vld [vmem:[%s9118_s7 + $0x270] sm:$0xf0] }
 0x3ce   :  { %3005 = vmatpush.bf16.msrb.mxu0 %v4920_v33  ;;  %v4732_v42 = vor.u32 %v5457_v34, %v4729_v11  ;;  %v5449_v33 = vld [vmem:[%s9118_s7 + $0x224] sm:$0xf] }
 0x3cf   :  { %2972 = vmatpush.bf16.msra.mxu1 %v4440_v36  ;;  %2985 = vmatpush.bf16.msra.mxu2 %v4568_v37  ;;  %v4604_v36 = vor.u32 %v5425_v31, %v4601_v32  ;;  %v5473_v37 = vld [vmem:[%s9118_s7 + $0x2e4] sm:$0xf] }
 0x3d0   :  { %v4796_v40 = vor.u32 %v5473_v37, %v4793_v38  ;;  %v4544_v38 = vor.u32 %v5412_v28, %v4543_v27  ;;  %v4655_v27 = vld [vmem:[%s9118_s7 + $0x1c8] sm:$0xf]  ;;  %v5440_v28 = vld [vmem:[%s9118_s7 + $0x1d4] sm:$0xf0] }
 0x3d1   :  { %2998 = vmatpush.bf16.msra.mxu3 %v4696_v19  ;;  %v5487_v19 = vld [vmem:[%s9118_s7 + $0x34c] sm:$0xf0] }
 0x3d2   :  { %v4840_v22 = vor.u32 %v5487_v19, %v4839_v18  ;;  %v5493_v18 = vld [vmem:[%s9118_s7 + $0x384] sm:$0xf]  ;;  %v4873_v19 = vld [vmem:[%s9118_s7 + $0x390] sm:$0xf0] }
 0x3d3   :  { %2973 = vmatpush.bf16.msra.mxu1 %v4424_v44  ;;  %2986 = vmatpush.bf16.msra.mxu2 %v4552_v60  ;;  %v5503_v44 = vld [vmem:[%s9118_s7 + $0x3cc] sm:$0xf0]  ;;  %v5465_v60 = vld [vmem:[%s9118_s7 + $0x2a4] sm:$0xf] }
 0x3d4   :  { %v4764_v62 = vor.u32 %v5465_v60, %v4761_v50  ;;  %v4921_v60 = vld [vmem:[%s9118_s7 + $0x3f0] sm:$0xf0]  ;;  %v5404_v50 = vld [vmem:[%s9118_s7 + $0xb4] sm:$0xf0] }
 0x3d5   :  { %2999 = vmatpush.bf16.msra.mxu3 %v4680_v29  ;;  %v4823_v29 = vld [vmem:[%s9118_s7 + $0x320] sm:$0xf] }
 0x3d6   :  { %v4824_v32 = vor.u32 %v5483_v30, %v4823_v29  ;;  %v4876_v29 = vor.u32 %v5493_v18, %v4873_v19  ;;  %v5489_v30 = vld [vmem:[%s9118_s7 + $0x364] sm:$0xf]  ;;  %v5424_v18 = vld [vmem:[%s9118_s7 + $0x154] sm:$0xf0] }
 0x3d7   :  { %3018 = vmatpush.bf16.msrb.mxu1 %v4540_v45  ;;  %3031 = vmatpush.bf16.msrb.mxu2 %v4668_v63  ;;  %v4904_v45 = vor.u32 %v5503_v44, %v4903_v41  ;;  %v4871_v63 = vld [vmem:[%s9118_s7 + $0x380] sm:$0xf]  ;;  %v4527_v44 = vld [vmem:[%s9118_s7 + $0xc8] sm:$0xf] }
 0x3d9   :  { %3044 = vmatpush.bf16.msrb.mxu3 %v4796_v40  ;;  %3006 = vmatpush.bf16.msrb.mxu0 %v4904_v45  ;;  %v5408_v45 = vld [vmem:[%s9118_s7 + $0xd4] sm:$0xf0] }
 0x3da   :  { %v4528_v58 = vor.u32 %v5408_v45, %v4527_v44  ;;  %v4639_v44 = vld [vmem:[%s9118_s7 + $0x1a8] sm:$0xf]  ;;  %v5436_v45 = vld [vmem:[%s9118_s7 + $0x1b4] sm:$0xf0] }
 0x3db   :  { %3019 = vmatpush.bf16.msrb.mxu1 %v4524_v48  ;;  %3032 = vmatpush.bf16.msrb.mxu2 %v4652_v13  ;;  %v5469_v48 = vld [vmem:[%s9118_s7 + $0x2c4] sm:$0xf]  ;;  %v4855_v13 = vld [vmem:[%s9118_s7 + $0x360] sm:$0xf] }
 0x3dc   :  { %v4780_v52 = vor.u32 %v5469_v48, %v4777_v51  ;;  %v4807_v48 = vld [vmem:[%s9118_s7 + $0x300] sm:$0xf] }
 0x3dd   :  { %3007 = vmatpush.bf16.msrb.mxu0 %v4888_v57  ;;  %v5505_v57 = vld [vmem:[%s9118_s7 + $0x3e4] sm:$0xf] }
 0x3de   :  { %3045 = vmatpush.bf16.msrb.mxu3 %v4780_v52 }
 0x3df   :  { %3020 = vmatpush.bf16.msrb.mxu1 %v4508_v53  ;;  %3033 = vmatpush.bf16.msrb.mxu2 %v4636_v16  ;;  %v8063_v53 = vld [vmem:[%s9117_s6] sm:$0xf] }
 0x3e0   :  { %v1324_v1 = vperm.slane %v8063_v53, 0  ;;  %v1325_v9 = vperm.slane %v8063_v53, 1 }
 0x3e2   :  { %3046 = vmatpush.bf16.msrb.mxu3 %v4764_v62  ;;  %v4924_v62 = vor.u32 %v5505_v57, %v4921_v60  ;;  %v4623_v57 = vld [vmem:[%s9118_s7 + $0x188] sm:$0xf] }
 0x3e3   :  { %3021 = vmatpush.bf16.msrb.mxu1 %v4492_v0  ;;  %3034 = vmatpush.bf16.msrb.mxu2 %v4620_v25  ;;  %v5495_v0 = vld [vmem:[%s9118_s7 + $0x38c] sm:$0xf0]  ;;  %v4716_v25 = vor.u32 %v5453_v23, %v4713_v24  ;;  %v4463_v23 = vld [vmem:[%s9118_s7 + $0x48] sm:$0xf] }
 0x3e4   :  { %v4872_v3 = vor.u32 %v5495_v0, %v4871_v63  ;;  %v5501_v63 = vld [vmem:[%s9118_s7 + $0x3c4] sm:$0xf]  ;;  %v4905_v0 = vld [vmem:[%s9118_s7 + $0x3d0] sm:$0xf0] }
 0x3e6   :  { %3008 = vmatpush.bf16.msrb.mxu0 %v4872_v3 }
 0x3e7   :  { %3022 = vmatpush.bf16.msrb.mxu1 %v4476_v7  ;;  %3035 = vmatpush.bf16.msrb.mxu2 %v4604_v36  ;;  %v5461_v7 = vld [vmem:[%s9118_s7 + $0x284] sm:$0xf]  ;;  %v4697_v36 = vld [vmem:[%s9118_s7 + $0x230] sm:$0xf0] }
 0x3e8   :  { %v4748_v10 = vor.u32 %v5461_v7, %v4745_v46  ;;  %v4495_v7 = vld [vmem:[%s9118_s7 + $0x88] sm:$0xf] }
 0x3ea   :  { %3047 = vmatpush.bf16.msrb.mxu3 %v4748_v10  ;;  %v5497_v10 = vld [vmem:[%s9118_s7 + $0x3a4] sm:$0xf] }
 0x3eb   :  { %3023 = vmatpush.bf16.msrb.mxu1 %v4460_v35  ;;  %3036 = vmatpush.bf16.msrb.mxu2 %v4588_v49  ;;  %v4856_v35 = vor.u32 %v5491_v14, %v4855_v13  ;;  %v5479_v49 = vld [vmem:[%s9118_s7 + $0x30c] sm:$0xf0]  ;;  %v4889_v13 = vld [vmem:[%s9118_s7 + $0x3b0] sm:$0xf0] }
 0x3ec   :  { %v4808_v52 = vor.u32 %v5479_v49, %v4807_v48  ;;  %v4892_v11 = vor.u32 %v5497_v10, %v4889_v13  ;;  %v4841_v48 = vld [vmem:[%s9118_s7 + $0x350] sm:$0xf0]  ;;  %v4799_v13 = vld [vmem:[%s9118_s7 + $0x2e8] sm:$0xf] }
 0x3ed   :  { %3009 = vmatpush.bf16.msrb.mxu0 %v4856_v35  ;;  %v4479_v35 = vld [vmem:[%s9118_s7 + $0x68] sm:$0xf] }
 0x3ee   :  { %3048 = vmatpush.bf16.msrb.mxu3 %v4732_v42 }
 0x3ef   :  { %3024 = vmatpush.bf16.msrb.mxu1 %v4444_v21  ;;  %3037 = vmatpush.bf16.msrb.mxu2 %v4572_v61  ;;  %v4511_v61 = vld [vmem:[%s9118_s7 + $0xa8] sm:$0xf] }
 0x3f1   :  { %3010 = vmatpush.bf16.msrb.mxu0 %v4840_v22 }
 0x3f2   :  { %v1981_v2 = vpop.f32.mrf.mxu1  ;;  %3049 = vmatpush.bf16.msrb.mxu3 %v4716_v25 }
 0x3f3   :  { %3025 = vmatpush.bf16.msrb.mxu1 %v4428_v39  ;;  %v2020_v4 = vpop.f32.mrf.mxu0  ;;  %v1982_v12 = vadd.f32 %v1981_v2, %v1324_v1  ;;  %3038 = vmatpush.bf16.msrb.mxu2 %v4556_v8  ;;  %v4700_v39 = vor.u32 %v5449_v33, %v4697_v36  ;;  %v4908_v2 = vor.u32 %v5501_v63, %v4905_v0  ;;  %v5400_v8 = vld [vmem:[%s9118_s7 + $0x94] sm:$0xf0]  ;;  %v5481_v0 = vld [vmem:[%s9118_s7 + $0x324] sm:$0xf] }
 0x3f5   :  { %3011 = vmatpush.bf16.msrb.mxu0 %v4824_v32  ;;  %v1326_v32 = vperm.slane %v8063_v53, 2 }
 0x3f6   :  { %3050 = vmatpush.bf16.msrb.mxu3 %v4700_v39 }
 0x3f8   :  { %v1994_v43 = vpop.f32.mrf.mxu2 }
 0x3f9   :  { %v1995_v15 = vadd.f32 %v1994_v43, %v1982_v12  ;;  %v2007_v16 = vpop.f32.mrf.mxu3  ;;  %3012 = vmatpush.bf16.msrb.mxu0 %v4808_v52  ;;  %v4496_v12 = vor.u32 %v5400_v8, %v4495_v7  ;;  %v5396_v43 = vld [vmem:[%s9118_s7 + $0x74] sm:$0xf0]  ;;  %v4431_v52 = vld [vmem:[%s9118_s7 + $0x8] sm:$0xf] }
 0x3fa   :  { %v1983_v17 = vpop.f32.mrf.mxu1  ;;  %3051 = vmatpush.bf16.msrb.mxu3 %v4684_v59  ;;  %v4607_v8 = vld [vmem:[%s9118_s7 + $0x168] sm:$0xf] }
 0x3fb   :  { %v2008_v20 = vadd.f32 %v2007_v16, %v1995_v15  ;;  %v2022_v21 = vpop.f32.mrf.mxu0  ;;  %v4671_v15 = vld [vmem:[%s9118_s7 + $0x1e8] sm:$0xf]  ;;  %v5444_v16 = vld [vmem:[%s9118_s7 + $0x1f4] sm:$0xf0] }
 0x3fc   :  { %v4480_v21 = vor.u32 %v5396_v43, %v4479_v35  ;;  %v4672_v22 = vor.u32 %v5444_v16, %v4671_v15  ;;  %v5477_v35 = vld [vmem:[%s9118_s7 + $0x304] sm:$0xf] }
 0x3fd   :  { %v2021_v26 = vadd.f32 %v2020_v4, %v2008_v20  ;;  %3057 = vmatpush.bf16.msra.mxu0 %v4924_v62  ;;  %v4512_v4 = vor.u32 %v5404_v50, %v4511_v61  ;;  %v5410_v61 = vld [vmem:[%s9118_s7 + $0xec] sm:$0xf]  ;;  %v4545_v50 = vld [vmem:[%s9118_s7 + $0xf8] sm:$0xf0] }
 0x3fe   :  { %v4548_v7 = vor.u32 %v5410_v61, %v4545_v50  ;;  %v4735_v61 = vld [vmem:[%s9118_s7 + $0x268] sm:$0xf]  ;;  %v5390_v50 = vld [vmem:[%s9118_s7 + $0x4c] sm:$0xf] }
 0x3ff   :  { %v2180_v31 = vmax.f32 %v2021_v26, 0.0  ;;  %v5392_v26 = vld [vmem:[%s9118_s7 + $0x54] sm:$0xf0] }
 0x400   :  { %v1996_v37 = vpop.f32.mrf.mxu2  ;;  %v4464_v36 = vor.u32 %v5392_v26, %v4463_v23 }
 0x401   :  { %v8144_v40 = vpack.c.bf16 %v2180_v31, %v2180_v31  ;;  %v2009_v41 = vpop.f32.mrf.mxu3  ;;  %3058 = vmatpush.bf16.msra.mxu0 %v4908_v2  ;;  %v4857_v31 = vld [vmem:[%s9118_s7 + $0x370] sm:$0xf0]  ;;  %v4656_v37 = vor.u32 %v5440_v28, %v4655_v27  ;;  %v4783_v27 = vld [vmem:[%s9118_s7 + $0x2c8] sm:$0xf]  ;;  %v5472_v28 = vld [vmem:[%s9118_s7 + $0x2d4] sm:$0xf0] }
 0x402   :  { %v2033_v47 = vpop.f32.mrf.mxu1  ;;  %v5388_v41 = vld [vmem:[%s9118_s7 + $0x34] sm:$0xf0] }
 0x403   :  { %v2072_v51 = vpop.f32.mrf.mxu0  ;;  %2974 = vmatmul.bf16.vlgmr.msra.gmra.mxu1 %v8144_v40  ;;  %v2034_v1 = vadd.f32 %v2033_v47, %v1325_v9  ;;  %v4860_v9 = vor.u32 %v5489_v30, %v4857_v31  ;;  %v5485_v47 = vld [vmem:[%s9118_s7 + $0x344] sm:$0xf]  ;;  %v4575_v31 = vld [vmem:[%s9118_s7 + $0x128] sm:$0xf] }
 0x404   :  { %3070 = vmatpush.bf16.msra.mxu1 %v4544_v38  ;;  %v4447_v38 = vld [vmem:[%s9118_s7 + $0x28] sm:$0xf]  ;;  %v4844_v59 = vor.u32 %v5485_v47, %v4841_v48  ;;  %v5394_v47 = vld [vmem:[%s9118_s7 + $0x6c] sm:$0xf] }
 0x405   :  { %3059 = vmatpush.bf16.msra.mxu0 %v4892_v11  ;;  %v4448_v49 = vor.u32 %v5388_v41, %v4447_v38  ;;  %v4767_v38 = vld [vmem:[%s9118_s7 + $0x2a8] sm:$0xf] }
 0x408   :  { %3071 = vmatpush.bf16.msra.mxu1 %v4528_v58  ;;  %v2046_v3 = vpop.f32.mrf.mxu2  ;;  %v5432_v58 = vld [vmem:[%s9118_s7 + $0x194] sm:$0xf0] }
 0x409   :  { %v2047_v5 = vadd.f32 %v2046_v3, %v2034_v1  ;;  %v2059_v6 = vpop.f32.mrf.mxu3  ;;  %3060 = vmatpush.bf16.msra.mxu0 %v4876_v29  ;;  %v4825_v1 = vld [vmem:[%s9118_s7 + $0x330] sm:$0xf0]  ;;  %v4432_v3 = vor.u32 %v5384_v56, %v4431_v52  ;;  %v4673_v52 = vld [vmem:[%s9118_s7 + $0x1f8] sm:$0xf0]  ;;  %v5464_v56 = vld [vmem:[%s9118_s7 + $0x294] sm:$0xf0] }
 0x40a   :  { %v2035_v46 = vpop.f32.mrf.mxu1  ;;  %v4828_v10 = vor.u32 %v5481_v0, %v4825_v1  ;;  %v5438_v0 = vld [vmem:[%s9118_s7 + $0x1cc] sm:$0xf]  ;;  %v4657_v1 = vld [vmem:[%s9118_s7 + $0x1d8] sm:$0xf0] }
 0x40b   :  { %v2060_v14 = vadd.f32 %v2059_v6, %v2047_v5  ;;  %v2074_v34 = vpop.f32.mrf.mxu0  ;;  %v5428_v46 = vld [vmem:[%s9118_s7 + $0x174] sm:$0xf0] }
 0x40c   :  { %3072 = vmatpush.bf16.msra.mxu1 %v4512_v4  ;;  %v4624_v4 = vor.u32 %v5432_v58, %v4623_v57  ;;  %v4529_v34 = vld [vmem:[%s9118_s7 + $0xd8] sm:$0xf0]  ;;  %v4608_v43 = vor.u32 %v5428_v46, %v4607_v8  ;;  %v4719_v8 = vld [vmem:[%s9118_s7 + $0x248] sm:$0xf]  ;;  %v5386_v46 = vld [vmem:[%s9118_s7 + $0x2c] sm:$0xf] }
 0x40d   :  { %v2073_v42 = vadd.f32 %v2072_v51, %v2060_v14  ;;  %v4640_v51 = vor.u32 %v5436_v45, %v4639_v44  ;;  %3061 = vmatpush.bf16.msra.mxu0 %v4860_v9  ;;  %v5406_v14 = vld [vmem:[%s9118_s7 + $0xcc] sm:$0xf]  ;;  %v4559_v45 = vld [vmem:[%s9118_s7 + $0x108] sm:$0xf]  ;;  %v5416_v9 = vld [vmem:[%s9118_s7 + $0x114] sm:$0xf0] }
 0x40e   :  { %v4532_v16 = vor.u32 %v5406_v14, %v4529_v34  ;;  %v4560_v57 = vor.u32 %v5416_v9, %v4559_v45  ;;  %v4641_v14 = vld [vmem:[%s9118_s7 + $0x1b8] sm:$0xf0] }
 0x40f   :  { %v2181_v17 = vmax.f32 %v2073_v42, 0.0  ;;  %v4809_v42 = vld [vmem:[%s9118_s7 + $0x310] sm:$0xf0] }
 0x410   :  { %3073 = vmatpush.bf16.msra.mxu1 %v4496_v12  ;;  %v2048_v20 = vpop.f32.mrf.mxu2  ;;  %v5476_v12 = vld [vmem:[%s9118_s7 + $0x2f4] sm:$0xf0]  ;;  %v4812_v23 = vor.u32 %v5477_v35, %v4809_v42  ;;  %v4703_v42 = vld [vmem:[%s9118_s7 + $0x228] sm:$0xf] }
 0x411   :  { %v8217_v24 = vpack.c.bf16 %v2181_v17, %v2181_v17  ;;  %v2061_v25 = vpop.f32.mrf.mxu3  ;;  %3062 = vmatpush.bf16.msra.mxu0 %v4844_v59  ;;  %v4591_v17 = vld [vmem:[%s9118_s7 + $0x148] sm:$0xf]  ;;  %v4800_v20 = vor.u32 %v5476_v12, %v4799_v13  ;;  %v5434_v13 = vld [vmem:[%s9118_s7 + $0x1ac] sm:$0xf] }
 0x412   :  { %v4592_v29 = vor.u32 %v5424_v18, %v4591_v17  ;;  %v4644_v35 = vor.u32 %v5434_v13, %v4641_v14  ;;  %v5452_v17 = vld [vmem:[%s9118_s7 + $0x234] sm:$0xf0]  ;;  %v5430_v18 = vld [vmem:[%s9118_s7 + $0x18c] sm:$0xf]  ;;  %v4753_v13 = vld [vmem:[%s9118_s7 + $0x298] sm:$0xf0] }
 0x413   :  { %2987 = vmatmul.bf16.vlgmr.msra.gmra.mxu2 %v8217_v24  ;;  %3026 = vmatmul.bf16.vlgmr.msrb.gmra.mxu1 %v8144_v40  ;;  %v2085_v33 = vpop.f32.mrf.mxu1 }
 0x414   :  { %3074 = vmatpush.bf16.msra.mxu1 %v4480_v21  ;;  %3083 = vmatpush.bf16.msra.mxu2 %v4672_v22  ;;  %v2086_v54 = vadd.f32 %v2085_v33, %v1326_v32  ;;  %v5402_v21 = vld [vmem:[%s9118_s7 + $0xac] sm:$0xf]  ;;  %v4513_v22 = vld [vmem:[%s9118_s7 + $0xb8] sm:$0xf0]  ;;  %v5420_v32 = vld [vmem:[%s9118_s7 + $0x134] sm:$0xf0]  ;;  %v4784_v33 = vor.u32 %v5472_v28, %v4783_v27  ;;  %v4704_v28 = vor.u32 %v5452_v17, %v4703_v42 }
 0x415   :  { %3063 = vmatpush.bf16.msra.mxu0 %v4828_v10  ;;  %v4516_v30 = vor.u32 %v5402_v21, %v4513_v22  ;;  %v4576_v41 = vor.u32 %v5420_v32, %v4575_v31  ;;  %v5456_v10 = vld [vmem:[%s9118_s7 + $0x254] sm:$0xf0]  ;;  %v4927_v32 = vld [vmem:[%s9118_s7 + $0x3e8] sm:$0xf]  ;;  %v5458_v42 = vld [vmem:[%s9118_s7 + $0x26c] sm:$0xf] }
 0x416   :  { %v2124_v39 = vpop.f32.mrf.mxu0  ;;  %v4720_v12 = vor.u32 %v5456_v10, %v4719_v8  ;;  %v5448_v31 = vld [vmem:[%s9118_s7 + $0x214] sm:$0xf0]  ;;  %v5462_v10 = vld [vmem:[%s9118_s7 + $0x28c] sm:$0xf]  ;;  %v4847_v17 = vld [vmem:[%s9118_s7 + $0x348] sm:$0xf] }
 0x417   :  { %v5496_v8 = vld [vmem:[%s9118_s7 + $0x394] sm:$0xf0] }
 0x418   :  { %3075 = vmatpush.bf16.msra.mxu1 %v4464_v36  ;;  %3084 = vmatpush.bf16.msra.mxu2 %v4656_v37  ;;  %v5398_v36 = vld [vmem:[%s9118_s7 + $0x8c] sm:$0xf]  ;;  %v4497_v37 = vld [vmem:[%s9118_s7 + $0x98] sm:$0xf0] }
 0x419   :  { %v2098_v60 = vpop.f32.mrf.mxu2  ;;  %3064 = vmatpush.bf16.msra.mxu0 %v4812_v23  ;;  %v4500_v44 = vor.u32 %v5398_v36, %v4497_v37  ;;  %v5508_v36 = vld [vmem:[%s9118_s7 + $0x3f4] sm:$0xf0]  ;;  %v5426_v37 = vld [vmem:[%s9118_s7 + $0x16c] sm:$0xf] }
 0x41a   :  { %v2099_v62 = vadd.f32 %v2098_v60, %v2086_v54  ;;  %v4751_v54 = vld [vmem:[%s9118_s7 + $0x288] sm:$0xf] }
 0x41b   :  { %v2087_v2 = vpop.f32.mrf.mxu1  ;;  %v4752_v60 = vor.u32 %v5464_v56, %v4751_v54  ;;  %v5504_v56 = vld [vmem:[%s9118_s7 + $0x3d4] sm:$0xf0] }
 0x41c   :  { %v2111_v63 = vpop.f32.mrf.mxu3  ;;  %3076 = vmatpush.bf16.msra.mxu1 %v4448_v49  ;;  %3085 = vmatpush.bf16.msra.mxu2 %v4640_v51  ;;  %v4481_v49 = vld [vmem:[%s9118_s7 + $0x78] sm:$0xf0]  ;;  %v5442_v51 = vld [vmem:[%s9118_s7 + $0x1ec] sm:$0xf]  ;;  %v1327_v2 = vperm.slane %v8063_v53, 3 }
 0x41d   :  { %v2112_v5 = vadd.f32 %v2111_v63, %v2099_v62  ;;  %v4484_v58 = vor.u32 %v5394_v47, %v4481_v49  ;;  %v4676_v59 = vor.u32 %v5442_v51, %v4673_v52  ;;  %v4465_v62 = vld [vmem:[%s9118_s7 + $0x58] sm:$0xf0]  ;;  %v5460_v63 = vld [vmem:[%s9118_s7 + $0x274] sm:$0xf0]  ;;  %v4928_v47 = vor.u32 %v5508_v36, %v4927_v32  ;;  %v4911_v49 = vld [vmem:[%s9118_s7 + $0x3c8] sm:$0xf] }
 0x41e   :  { %v2126_v6 = vpop.f32.mrf.mxu0  ;;  %v4449_v53 = vld [vmem:[%s9118_s7 + $0x38] sm:$0xf0]  ;;  %v5446_v32 = vld [vmem:[%s9118_s7 + $0x20c] sm:$0xf] }
 0x41f   :  { %v2125_v11 = vadd.f32 %v2124_v39, %v2112_v5  ;;  %v5468_v39 = vld [vmem:[%s9118_s7 + $0x2b4] sm:$0xf0]  ;;  %v4736_v6 = vor.u32 %v5460_v63, %v4735_v61  ;;  %v4452_v34 = vor.u32 %v5386_v46, %v4449_v53  ;;  %v5414_v46 = vld [vmem:[%s9118_s7 + $0x10c] sm:$0xf]  ;;  %v4561_v53 = vld [vmem:[%s9118_s7 + $0x118] sm:$0xf0] }
 0x420   :  { %3077 = vmatpush.bf16.msra.mxu1 %v4432_v3  ;;  %3086 = vmatpush.bf16.msra.mxu2 %v4624_v4  ;;  %v4768_v48 = vor.u32 %v5468_v39, %v4767_v38  ;;  %v4468_v4 = vor.u32 %v5390_v50, %v4465_v62  ;;  %v4609_v38 = vld [vmem:[%s9118_s7 + $0x178] sm:$0xf0]  ;;  %v5474_v39 = vld [vmem:[%s9118_s7 + $0x2ec] sm:$0xf]  ;;  %v4895_v50 = vld [vmem:[%s9118_s7 + $0x3a8] sm:$0xf] }
 0x421   :  { %v2182_v15 = vmax.f32 %v2125_v11, 0.0  ;;  %v2100_v19 = vpop.f32.mrf.mxu2  ;;  %v5500_v63 = vld [vmem:[%s9118_s7 + $0x3b4] sm:$0xf0]  ;;  %v5506_v36 = vld [vmem:[%s9118_s7 + $0x3ec] sm:$0xf] }
 0x422   :  { %v4625_v19 = vld [vmem:[%s9118_s7 + $0x198] sm:$0xf0] }
 0x423   :  { %v8315_v25 = vpack.c.bf16 %v2182_v15, %v2182_v15  ;;  %3039 = vmatmul.bf16.vlgmr.msrb.gmra.mxu2 %v8217_v24  ;;  %3078 = vmatmul.bf16.vlgmr.msra.gmra.mxu1 %v8144_v40  ;;  %v4433_v15 = vld [vmem:[%s9118_s7 + $0x18] sm:$0xf0] }
 0x424   :  { %3122 = vmatpush.bf16.msrb.mxu1 %v4548_v7  ;;  %v2113_v26 = vpop.f32.mrf.mxu3  ;;  %3087 = vmatpush.bf16.msra.mxu2 %v4608_v43  ;;  %v4660_v7 = vor.u32 %v5438_v0, %v4657_v1  ;;  %v5382_v43 = vld [vmem:[%s9118_s7 + $0xc] sm:$0xf]  ;;  %v4577_v1 = vld [vmem:[%s9118_s7 + $0x138] sm:$0xf0] }
 0x425   :  { %3000 = vmatmul.bf16.vlgmr.msra.gmra.mxu3 %v8315_v25  ;;  %v4436_v23 = vor.u32 %v5382_v43, %v4433_v15  ;;  %v5418_v0 = vld [vmem:[%s9118_s7 + $0x12c] sm:$0xf]  ;;  %v4737_v43 = vld [vmem:[%s9118_s7 + $0x278] sm:$0xf0] }
 0x426   :  { %3096 = vmatpush.bf16.msra.mxu3 %v4800_v20 }
 0x428   :  { %3123 = vmatpush.bf16.msrb.mxu1 %v4532_v16  ;;  %3088 = vmatpush.bf16.msra.mxu2 %v4592_v29  ;;  %v4628_v29 = vor.u32 %v5430_v18, %v4625_v19  ;;  %v5488_v18 = vld [vmem:[%s9118_s7 + $0x354] sm:$0xf0]  ;;  %v5454_v19 = vld [vmem:[%s9118_s7 + $0x24c] sm:$0xf] }
 0x42a   :  { %3097 = vmatpush.bf16.msra.mxu3 %v4784_v33 }
 0x42c   :  { %3124 = vmatpush.bf16.msrb.mxu1 %v4516_v30  ;;  %3089 = vmatpush.bf16.msra.mxu2 %v4576_v41  ;;  %v4687_v30 = vld [vmem:[%s9118_s7 + $0x208] sm:$0xf]  ;;  %v4801_v41 = vld [vmem:[%s9118_s7 + $0x2f8] sm:$0xf0] }
 0x42d   :  { %v4688_v45 = vor.u32 %v5448_v31, %v4687_v30  ;;  %v4804_v54 = vor.u32 %v5474_v39, %v4801_v41  ;;  %v4815_v30 = vld [vmem:[%s9118_s7 + $0x308] sm:$0xf]  ;;  %v5480_v31 = vld [vmem:[%s9118_s7 + $0x314] sm:$0xf0] }
 0x42e   :  { %3098 = vmatpush.bf16.msra.mxu3 %v4768_v48  ;;  %v4612_v48 = vor.u32 %v5426_v37, %v4609_v38  ;;  %v4929_v37 = vld [vmem:[%s9118_s7 + $0x3f8] sm:$0xf0]  ;;  %v4816_v38 = vor.u32 %v5480_v31, %v4815_v30 }
 0x42f   :  { %v4932_v41 = vor.u32 %v5506_v36, %v4929_v37 }
 0x430   :  { %3125 = vmatpush.bf16.msrb.mxu1 %v4500_v44  ;;  %3090 = vmatpush.bf16.msra.mxu2 %v4560_v57  ;;  %v5422_v57 = vld [vmem:[%s9118_s7 + $0x14c] sm:$0xf] }
 0x432   :  { %3099 = vmatpush.bf16.msra.mxu3 %v4752_v60  ;;  %v4912_v60 = vor.u32 %v5504_v56, %v4911_v49 }
 0x433   :  { %v2137_v3 = vpop.f32.mrf.mxu1  ;;  %3091 = vmatmul.bf16.vlgmr.msra.gmra.mxu2 %v8217_v24 }
 0x434   :  { %3126 = vmatpush.bf16.msrb.mxu1 %v4484_v58  ;;  %3135 = vmatpush.bf16.msrb.mxu2 %v4676_v59  ;;  %v2138_v11 = vadd.f32 %v2137_v3, %v1327_v2  ;;  %v4593_v58 = vld [vmem:[%s9118_s7 + $0x158] sm:$0xf0]  ;;  %v5470_v59 = vld [vmem:[%s9118_s7 + $0x2cc] sm:$0xf] }
 0x435   :  { %v2176_v5 = vpop.f32.mrf.mxu0  ;;  %3052 = vmatmul.bf16.vlgmr.msrb.gmra.mxu3 %v8315_v25  ;;  %v4596_v61 = vor.u32 %v5422_v57, %v4593_v58  ;;  %v5466_v2 = vld [vmem:[%s9118_s7 + $0x2ac] sm:$0xf]  ;;  %v4769_v3 = vld [vmem:[%s9118_s7 + $0x2b8] sm:$0xf0] }
 0x436   :  { %3100 = vmatpush.bf16.msra.mxu3 %v4736_v6  ;;  %v4879_v6 = vld [vmem:[%s9118_s7 + $0x388] sm:$0xf]  ;;  %v5490_v57 = vld [vmem:[%s9118_s7 + $0x36c] sm:$0xf] }
 0x437   :  { %v4880_v14 = vor.u32 %v5496_v8, %v4879_v6 }
 0x438   :  { %3127 = vmatpush.bf16.msrb.mxu1 %v4468_v4  ;;  %3136 = vmatpush.bf16.msrb.mxu2 %v4660_v7  ;;  %v4896_v4 = vor.u32 %v5500_v63, %v4895_v50  ;;  %v4772_v7 = vor.u32 %v5466_v2, %v4769_v3  ;;  %v4833_v50 = vld [vmem:[%s9118_s7 + $0x338] sm:$0xf0]  ;;  %v5478_v63 = vld [vmem:[%s9118_s7 + $0x30c] sm:$0xf] }
 0x439   :  { %v2150_v16 = vpop.f32.mrf.mxu2 }
 0x43a   :  { %v2151_v20 = vadd.f32 %v2150_v16, %v2138_v11  ;;  %3101 = vmatpush.bf16.msra.mxu3 %v4720_v12  ;;  %v4756_v11 = vor.u32 %v5462_v10, %v4753_v13  ;;  %v4863_v12 = vld [vmem:[%s9118_s7 + $0x368] sm:$0xf]  ;;  %v4740_v16 = vor.u32 %v5458_v42, %v4737_v43 }
 0x43b   :  { %v2163_v21 = vpop.f32.mrf.mxu3  ;;  %v2139_v22 = vpop.f32.mrf.mxu1 }
 0x43c   :  { %3128 = vmatpush.bf16.msrb.mxu1 %v4452_v34  ;;  %v2164_v26 = vadd.f32 %v2163_v21, %v2151_v20  ;;  %3137 = vmatpush.bf16.msrb.mxu2 %v4644_v35  ;;  %v4564_v34 = vor.u32 %v5414_v46, %v4561_v53  ;;  %v5492_v35 = vld [vmem:[%s9118_s7 + $0x374] sm:$0xf0]  ;;  %v4721_v20 = vld [vmem:[%s9118_s7 + $0x258] sm:$0xf0]  ;;  %v4848_v21 = vor.u32 %v5488_v18, %v4847_v17 }
 0x43d   :  { %v2178_v27 = vpop.f32.mrf.mxu0  ;;  %v4864_v15 = vor.u32 %v5492_v35, %v4863_v12  ;;  %v4724_v22 = vor.u32 %v5454_v19, %v4721_v20 }
 0x43e   :  { %v2177_v33 = vadd.f32 %v2176_v5, %v2164_v26  ;;  %3102 = vmatpush.bf16.msra.mxu3 %v4704_v28  ;;  %v4580_v5 = vor.u32 %v5418_v0, %v4577_v1  ;;  %v5484_v26 = vld [vmem:[%s9118_s7 + $0x334] sm:$0xf0]  ;;  %v5450_v27 = vld [vmem:[%s9118_s7 + $0x22c] sm:$0xf]  ;;  %v4817_v0 = vld [vmem:[%s9118_s7 + $0x318] sm:$0xf0] }
 0x43f   :  { %v4820_v1 = vor.u32 %v5478_v63, %v4817_v0 }
 0x440   :  { %3129 = vmatpush.bf16.msrb.mxu1 %v4436_v23  ;;  %v2183_v44 = vmax.f32 %v2177_v33, 0.0  ;;  %3138 = vmatpush.bf16.msrb.mxu2 %v4628_v29  ;;  %v4831_v23 = vld [vmem:[%s9118_s7 + $0x328] sm:$0xf]  ;;  %v4689_v33 = vld [vmem:[%s9118_s7 + $0x218] sm:$0xf0] }
 0x441   :  { %v2152_v9 = vpop.f32.mrf.mxu2  ;;  %v4832_v28 = vor.u32 %v5484_v26, %v4831_v23  ;;  %v4692_v39 = vor.u32 %v5446_v32, %v4689_v33 }
 0x442   :  { %v8452_v51 = vpack.c.bf16 %v2183_v44, %v2183_v44  ;;  %3103 = vmatpush.bf16.msra.mxu3 %v4688_v45  ;;  %v5502_v44 = vld [vmem:[%s9118_s7 + $0x3cc] sm:$0xf]  ;;  %v4913_v45 = vld [vmem:[%s9118_s7 + $0x3d8] sm:$0xf0] }
 0x443   :  { %v2165_v52 = vpop.f32.mrf.mxu3  ;;  %3130 = vmatmul.bf16.vlgmr.msrb.gmra.mxu1 %v8144_v40  ;;  %v4785_v40 = vld [vmem:[%s9118_s7 + $0x2d8] sm:$0xf0]  ;;  %v4916_v9 = vor.u32 %v5502_v44, %v4913_v45 }
 0x444   :  { %3013 = vmatmul.bf16.vlgmr.msrb.gmra.mxu0 %v8452_v51  ;;  %3139 = vmatpush.bf16.msrb.mxu2 %v4612_v48  ;;  %v4788_v62 = vor.u32 %v5470_v59, %v4785_v40  ;;  %v4897_v48 = vld [vmem:[%s9118_s7 + $0x3b8] sm:$0xf0]  ;;  %v5494_v52 = vld [vmem:[%s9118_s7 + $0x38c] sm:$0xf] }
 0x445   :  { %3109 = vmatpush.bf16.msrb.mxu0 %v4928_v47  ;;  %3104 = vmatmul.bf16.vlgmr.msra.gmra.mxu3 %v8315_v25  ;;  %v5498_v47 = vld [vmem:[%s9118_s7 + $0x3ac] sm:$0xf]  ;;  %v4849_v40 = vld [vmem:[%s9118_s7 + $0x358] sm:$0xf0] }
 0x446   :  { %3148 = vmatpush.bf16.msrb.mxu3 %v4804_v54  ;;  %v4900_v49 = vor.u32 %v5498_v47, %v4897_v48  ;;  %v4881_v54 = vld [vmem:[%s9118_s7 + $0x398] sm:$0xf0]  ;;  %v5486_v59 = vld [vmem:[%s9118_s7 + $0x34c] sm:$0xf] }
 0x447   :  { %v4884_v56 = vor.u32 %v5494_v52, %v4881_v54 }
 0x448   :  { %3140 = vmatpush.bf16.msrb.mxu2 %v4596_v61  ;;  %v5482_v61 = vld [vmem:[%s9118_s7 + $0x32c] sm:$0xf] }
 0x449   :  { %3110 = vmatpush.bf16.msrb.mxu0 %v4912_v60  ;;  %v4852_v60 = vor.u32 %v5486_v59, %v4849_v40 }
 0x44a   :  { %3149 = vmatpush.bf16.msrb.mxu3 %v4788_v62  ;;  %v4836_v62 = vor.u32 %v5482_v61, %v4833_v50 }
 0x44c   :  { %3141 = vmatpush.bf16.msrb.mxu2 %v4580_v5 }
 0x44d   :  { %3111 = vmatpush.bf16.msrb.mxu0 %v4896_v4  ;;  %v2316_v4 = vld [vmem:[%s9119_s8] sm:$0xf] }
 0x44e   :  { %3150 = vmatpush.bf16.msrb.mxu3 %v4772_v7  ;;  %v2318_v6 = vperm.slane %v2316_v4, 0  ;;  %v2321_v44 = vperm.slane %v2316_v4, 3 }
 0x450   :  { %3142 = vmatpush.bf16.msrb.mxu2 %v4564_v34 }
 0x451   :  { %3112 = vmatpush.bf16.msrb.mxu0 %v4880_v14  ;;  %v2319_v14 = vperm.slane %v2316_v4, 1 }
 0x452   :  { %3151 = vmatpush.bf16.msrb.mxu3 %v4756_v11 }
 0x453   :  { %3143 = vmatmul.bf16.vlgmr.msrb.gmra.mxu2 %v8217_v24  ;;  %v4705_v24 = vld [vmem:[%s9118_s7 + $0x238] sm:$0xf0] }
 0x454   :  { %3065 = vmatmul.bf16.vlgmr.msra.gmra.mxu0 %v8452_v51  ;;  %v4708_v29 = vor.u32 %v5450_v27, %v4705_v24 }
 0x455   :  { %3113 = vmatpush.bf16.msrb.mxu0 %v4864_v15 }
 0x456   :  { %3152 = vmatpush.bf16.msrb.mxu3 %v4740_v16  ;;  %v2320_v16 = vperm.slane %v2316_v4, 2  ;;  %v5524_v4 = vld [vmem:[%s9120_s9 + $0x74] sm:$0xf0] }
 0x459   :  { %3114 = vmatpush.bf16.msrb.mxu0 %v4848_v21 }
 0x45a   :  { %3153 = vmatpush.bf16.msrb.mxu3 %v4724_v22 }
 0x45d   :  { %3115 = vmatpush.bf16.msrb.mxu0 %v4832_v28 }
 0x45e   :  { %3154 = vmatpush.bf16.msrb.mxu3 %v4708_v29 }
 0x461   :  { %3116 = vmatpush.bf16.msrb.mxu0 %v4816_v38 }
 0x462   :  { %3155 = vmatpush.bf16.msrb.mxu3 %v4692_v39 }
 0x464   :  { %3117 = vmatmul.bf16.vlgmr.msrb.gmra.mxu0 %v8452_v51 }
 0x465   :  { %3161 = vmatpush.bf16.msra.mxu0 %v4932_v41  ;;  %3156 = vmatmul.bf16.vlgmr.msrb.gmra.mxu3 %v8315_v25  ;;  %v4865_v25 = vld [vmem:[%s9118_s7 + $0x378] sm:$0xf0] }
 0x466   :  { %v4868_v58 = vor.u32 %v5490_v57, %v4865_v25 }
 0x469   :  { %3162 = vmatpush.bf16.msra.mxu0 %v4916_v9 }
 0x46d   :  { %3163 = vmatpush.bf16.msra.mxu0 %v4900_v49 }
 0x471   :  { %3164 = vmatpush.bf16.msra.mxu0 %v4884_v56 }
 0x475   :  { %3165 = vmatpush.bf16.msra.mxu0 %v4868_v58 }
 0x479   :  { %3166 = vmatpush.bf16.msra.mxu0 %v4852_v60 }
 0x47d   :  { %3167 = vmatpush.bf16.msra.mxu0 %v4836_v62 }
 0x480   :  { %v2975_v2 = vpop.f32.mrf.mxu1 }
 0x481   :  { %3168 = vmatpush.bf16.msra.mxu0 %v4820_v1  ;;  %v2976_v7 = vadd.f32 %v2975_v2, %v2318_v6 }
 0x484   :  { %3169 = vmatmul.bf16.vlgmr.msra.gmra.mxu0 %v8452_v51 }
 0x488   :  { %v2977_v3 = vpop.f32.mrf.mxu1 }
 0x489   :  { %v4991_v3 = vld [vmem:[%s9120_s9 + $0x70] sm:$0xf] }
 0x48a   :  { %v4992_v6 = vor.u32 %v5524_v4, %v4991_v3  ;;  %v5564_v3 = vld [vmem:[%s9120_s9 + $0x1b4] sm:$0xf0] }
 0x48c   :  { %3615 = vmatpush.bf16.msra.mxu1 %v4992_v6 }
 0x490   :  { %v3027_v5 = vpop.f32.mrf.mxu1 }
 0x491   :  { %v3028_v34 = vadd.f32 %v3027_v5, %v2319_v14  ;;  %v5055_v5 = vld [vmem:[%s9120_s9 + $0xf0] sm:$0xf]  ;;  %v5572_v14 = vld [vmem:[%s9120_s9 + $0x1f4] sm:$0xf0] }
 0x496   :  { %v2988_v8 = vpop.f32.mrf.mxu2 }
 0x497   :  { %v2989_v46 = vadd.f32 %v2988_v8, %v2976_v7  ;;  %v5540_v7 = vld [vmem:[%s9120_s9 + $0xf4] sm:$0xf0]  ;;  %v5119_v8 = vld [vmem:[%s9120_s9 + $0x170] sm:$0xf] }
 0x498   :  { %v3029_v53 = vpop.f32.mrf.mxu1 }
 0x499   :  { %v5056_v53 = vor.u32 %v5540_v7, %v5055_v5 }
 0x49b   :  { %3628 = vmatpush.bf16.msra.mxu2 %v5056_v53 }
 0x49e   :  { %v2990_v10 = vpop.f32.mrf.mxu2 }
 0x4a0   :  { %v3079_v13 = vpop.f32.mrf.mxu1 }
 0x4a1   :  { %v3080_v17 = vadd.f32 %v3079_v13, %v2320_v16  ;;  %v5183_v13 = vld [vmem:[%s9120_s9 + $0x1f0] sm:$0xf]  ;;  %v5554_v16 = vld [vmem:[%s9120_s9 + $0x164] sm:$0xf0] }
 0x4a6   :  { %v3040_v11 = vpop.f32.mrf.mxu2 }
 0x4a7   :  { %v3041_v12 = vadd.f32 %v3040_v11, %v3028_v34  ;;  %v4983_v34 = vld [vmem:[%s9120_s9 + $0x60] sm:$0xf]  ;;  %v5184_v11 = vor.u32 %v5572_v14, %v5183_v13 }
 0x4a8   :  { %v3001_v35 = vpop.f32.mrf.mxu3  ;;  %v3081_v51 = vpop.f32.mrf.mxu1 }
 0x4a9   :  { %v3002_v42 = vadd.f32 %v3001_v35, %v2989_v46  ;;  %v5556_v46 = vld [vmem:[%s9120_s9 + $0x174] sm:$0xf0]  ;;  %v5047_v35 = vld [vmem:[%s9120_s9 + $0xe0] sm:$0xf]  ;;  %v5538_v51 = vld [vmem:[%s9120_s9 + $0xe4] sm:$0xf0]  ;;  %3654 = vmatpush.bf16.msrb.mxu0 %v5184_v11 }
 0x4aa   :  { %v5120_v10 = vor.u32 %v5556_v46, %v5119_v8 }
 0x4ac   :  { %3641 = vmatpush.bf16.msra.mxu3 %v5120_v10 }
 0x4ae   :  { %v3042_v43 = vpop.f32.mrf.mxu2 }
 0x4af   :  { %v5048_v43 = vor.u32 %v5538_v51, %v5047_v35  ;;  %v4951_v35 = vld [vmem:[%s9120_s9 + $0x20] sm:$0xf]  ;;  %v5514_v51 = vld [vmem:[%s9120_s9 + $0x24] sm:$0xf0] }
 0x4b0   :  { %v3003_v15 = vpop.f32.mrf.mxu3 }
 0x4b1   :  { %v5111_v15 = vld [vmem:[%s9120_s9 + $0x160] sm:$0xf]  ;;  %3629 = vmatpush.bf16.msra.mxu2 %v5048_v43  ;;  %v4952_v43 = vor.u32 %v5514_v51, %v4951_v35  ;;  %v5519_v51 = vld [vmem:[%s9120_s9 + $0x54] sm:$0xf] }
 0x4b6   :  { %v3092_v18 = vpop.f32.mrf.mxu2 }
 0x4b7   :  { %v3093_v19 = vadd.f32 %v3092_v18, %v3080_v17  ;;  %v5175_v17 = vld [vmem:[%s9120_s9 + $0x1e0] sm:$0xf]  ;;  %v5112_v18 = vor.u32 %v5554_v16, %v5111_v15  ;;  %v5530_v15 = vld [vmem:[%s9120_s9 + $0xa4] sm:$0xf0] }
 0x4b8   :  { %v3053_v20 = vpop.f32.mrf.mxu3  ;;  %v5079_v16 = vld [vmem:[%s9120_s9 + $0x120] sm:$0xf] }
 0x4b9   :  { %v3054_v41 = vadd.f32 %v3053_v20, %v3041_v12  ;;  %v5522_v12 = vld [vmem:[%s9120_s9 + $0x64] sm:$0xf0]  ;;  %v4975_v20 = vld [vmem:[%s9120_s9 + $0x50] sm:$0xf]  ;;  %3642 = vmatpush.bf16.msra.mxu3 %v5112_v18 }
 0x4be   :  { %v3094_v22 = vpop.f32.mrf.mxu2 }
 0x4c0   :  { %v3131_v21 = vpop.f32.mrf.mxu1  ;;  %v3055_v26 = vpop.f32.mrf.mxu3 }
 0x4c1   :  { %v3014_v23 = vpop.f32.mrf.mxu0  ;;  %v3132_v49 = vadd.f32 %v3131_v21, %v2321_v44  ;;  %v5520_v21 = vld [vmem:[%s9120_s9 + $0x54] sm:$0xf0]  ;;  %v5550_v44 = vld [vmem:[%s9120_s9 + $0x144] sm:$0xf0] }
 0x4c2   :  { %v8614_v47 = vadd.f32 %v3014_v23, %v3002_v42  ;;  %v4984_v42 = vor.u32 %v5522_v12, %v4983_v34  ;;  %v5039_v23 = vld [vmem:[%s9120_s9 + $0xd0] sm:$0xf]  ;;  %v5536_v26 = vld [vmem:[%s9120_s9 + $0xd4] sm:$0xf0] }
 0x4c4   :  { %v3174_v54 = vmax.f32 %v8614_v47, 0.0  ;;  %3616 = vmatpush.bf16.msra.mxu1 %v4984_v42  ;;  %v5015_v42 = vld [vmem:[%s9120_s9 + $0xa0] sm:$0xf] }
 0x4c5   :  { %v5016_v18 = vor.u32 %v5530_v15, %v5015_v42  ;;  %v4977_v42 = vld [vmem:[%s9120_s9 + $0x58] sm:$0xf0] }
 0x4c6   :  { %v3178_v40 = vsel %vm1139_vm3, %v3174_v54, 0.0  ;;  %v4980_v15 = vor.u32 %v5519_v51, %v4977_v42  ;;  %v4937_v42 = vld [vmem:[%s9120_s9 + $0x8] sm:$0xf0] }
 0x4c8   :  { %v3133_v27 = vpop.f32.mrf.mxu1  ;;  %v3105_v28 = vpop.f32.mrf.mxu3 }
 0x4c9   :  { %v3016_v24 = vpop.f32.mrf.mxu0  ;;  %v3106_v45 = vadd.f32 %v3105_v28, %v3093_v19  ;;  %v5570_v19 = vld [vmem:[%s9120_s9 + $0x1e4] sm:$0xf0]  ;;  %v5103_v27 = vld [vmem:[%s9120_s9 + $0x150] sm:$0xf]  ;;  %v5552_v28 = vld [vmem:[%s9120_s9 + $0x154] sm:$0xf0] }
 0x4ca   :  { %v5176_v22 = vor.u32 %v5570_v19, %v5175_v17  ;;  %v4976_v24 = vor.u32 %v5520_v21, %v4975_v20  ;;  %v5546_v17 = vld [vmem:[%s9120_s9 + $0x124] sm:$0xf0]  ;;  %v5143_v20 = vld [vmem:[%s9120_s9 + $0x1a0] sm:$0xf] }
 0x4cb   :  { %v5080_v19 = vor.u32 %v5546_v17, %v5079_v16  ;;  %v5562_v21 = vld [vmem:[%s9120_s9 + $0x1a4] sm:$0xf0]  ;;  %v5041_v16 = vld [vmem:[%s9120_s9 + $0xd8] sm:$0xf0]  ;;  %v5551_v17 = vld [vmem:[%s9120_s9 + $0x154] sm:$0xf] }
 0x4cc   :  { %3655 = vmatpush.bf16.msrb.mxu0 %v5176_v22  ;;  %3617 = vmatpush.bf16.msra.mxu1 %v4976_v24  ;;  %v5144_v22 = vor.u32 %v5562_v21, %v5143_v20  ;;  %v5567_v21 = vld [vmem:[%s9120_s9 + $0x1d4] sm:$0xf] }
 0x4d0   :  { %v3107_v30 = vpop.f32.mrf.mxu3 }
 0x4d1   :  { %v3066_v29 = vpop.f32.mrf.mxu0  ;;  %v5568_v30 = vld [vmem:[%s9120_s9 + $0x1d4] sm:$0xf0] }
 0x4d2   :  { %v8612_v9 = vadd.f32 %v3066_v29, %v3054_v41  ;;  %v5167_v29 = vld [vmem:[%s9120_s9 + $0x1d0] sm:$0xf]  ;;  %v5095_v41 = vld [vmem:[%s9120_s9 + $0x140] sm:$0xf] }
 0x4d4   :  { %v3175_v52 = vmax.f32 %v8612_v9, 0.0 }
 0x4d6   :  { %v3144_v31 = vpop.f32.mrf.mxu2  ;;  %v3179_v25 = vsel %vm1139_vm3, %v3175_v52, 0.0 }
 0x4d7   :  { %v3145_v56 = vadd.f32 %v3144_v31, %v3132_v49  ;;  %v3180_v50 = vadd.f32 %v3179_v25, %v3178_v40  ;;  %v5040_v31 = vor.u32 %v5536_v26, %v5039_v23  ;;  %v5566_v49 = vld [vmem:[%s9120_s9 + $0x1c4] sm:$0xf0]  ;;  %v5516_v40 = vld [vmem:[%s9120_s9 + $0x34] sm:$0xf0]  ;;  %v4943_v23 = vld [vmem:[%s9120_s9 + $0x10] sm:$0xf] }
 0x4d8   :  { %v5512_v26 = vld [vmem:[%s9120_s9 + $0x14] sm:$0xf0] }
 0x4d9   :  { %v3068_v32 = vpop.f32.mrf.mxu0  ;;  %3630 = vmatpush.bf16.msra.mxu2 %v5040_v31  ;;  %v4944_v24 = vor.u32 %v5512_v26, %v4943_v23  ;;  %v5517_v26 = vld [vmem:[%s9120_s9 + $0x44] sm:$0xf] }
 0x4da   :  { %v5104_v32 = vor.u32 %v5552_v28, %v5103_v27  ;;  %v5007_v27 = vld [vmem:[%s9120_s9 + $0x90] sm:$0xf]  ;;  %v5528_v28 = vld [vmem:[%s9120_s9 + $0x94] sm:$0xf0] }
 0x4db   :  { %v5008_v31 = vor.u32 %v5528_v28, %v5007_v27  ;;  %v4969_v27 = vld [vmem:[%s9120_s9 + $0x48] sm:$0xf0] }
 0x4dc   :  { %3643 = vmatpush.bf16.msra.mxu3 %v5104_v32  ;;  %v4972_v28 = vor.u32 %v5517_v26, %v4969_v27 }
 0x4de   :  { %v3146_v33 = vpop.f32.mrf.mxu2 }
 0x4df   :  { %v4967_v33 = vld [vmem:[%s9120_s9 + $0x40] sm:$0xf] }
 0x4e1   :  { %v3118_v36 = vpop.f32.mrf.mxu0 }
 0x4e2   :  { %v8616_v48 = vadd.f32 %v3118_v36, %v3106_v45  ;;  %v5518_v36 = vld [vmem:[%s9120_s9 + $0x44] sm:$0xf0]  ;;  %v5159_v45 = vld [vmem:[%s9120_s9 + $0x1c0] sm:$0xf] }
 0x4e4   :  { %v3176_v57 = vmax.f32 %v8616_v48, 0.0 }
 0x4e6   :  { %v3181_v61 = vsel %vm1139_vm3, %v3176_v57, 0.0 }
 0x4e7   :  { %v3182_v63 = vadd.f32 %v3181_v61, %v3180_v50  ;;  %v5023_v61 = vld [vmem:[%s9120_s9 + $0xb0] sm:$0xf]  ;;  %v5160_v50 = vor.u32 %v5566_v49, %v5159_v45  ;;  %v5526_v45 = vld [vmem:[%s9120_s9 + $0x84] sm:$0xf0]  ;;  %v5063_v49 = vld [vmem:[%s9120_s9 + $0x100] sm:$0xf] }
 0x4e8   :  { %v3157_v37 = vpop.f32.mrf.mxu3 }
 0x4e9   :  { %v3120_v38 = vpop.f32.mrf.mxu0  ;;  %v3158_v58 = vadd.f32 %v3157_v37, %v3145_v56  ;;  %v5031_v37 = vld [vmem:[%s9120_s9 + $0xc0] sm:$0xf]  ;;  %v4968_v56 = vor.u32 %v5518_v36, %v4967_v33  ;;  %v5135_v33 = vld [vmem:[%s9120_s9 + $0x190] sm:$0xf]  ;;  %v5560_v36 = vld [vmem:[%s9120_s9 + $0x194] sm:$0xf0] }
 0x4ea   :  { %v5168_v38 = vor.u32 %v5568_v30, %v5167_v29  ;;  %v5071_v29 = vld [vmem:[%s9120_s9 + $0x110] sm:$0xf]  ;;  %v5544_v30 = vld [vmem:[%s9120_s9 + $0x114] sm:$0xf0] }
 0x4eb   :  { %3618 = vmatpush.bf16.msra.mxu1 %v4968_v56  ;;  %v5072_v32 = vor.u32 %v5544_v30, %v5071_v29  ;;  %v5542_v56 = vld [vmem:[%s9120_s9 + $0x104] sm:$0xf0]  ;;  %v5033_v29 = vld [vmem:[%s9120_s9 + $0xc8] sm:$0xf0]  ;;  %v5549_v30 = vld [vmem:[%s9120_s9 + $0x144] sm:$0xf] }
 0x4ec   :  { %3656 = vmatpush.bf16.msrb.mxu0 %v5168_v38  ;;  %v4935_v38 = vld [vmem:[%s9120_s9] sm:$0xf] }
 0x4f0   :  { %v3159_v39 = vpop.f32.mrf.mxu3  ;;  %3657 = vmatpush.bf16.msrb.mxu0 %v5160_v50 }
 0x4f1   :  { %v5534_v39 = vld [vmem:[%s9120_s9 + $0xc4] sm:$0xf0] }
 0x4f2   :  { %v5032_v25 = vor.u32 %v5534_v39, %v5031_v37  ;;  %v5136_v37 = vor.u32 %v5560_v36, %v5135_v33  ;;  %v5510_v39 = vld [vmem:[%s9120_s9 + $0x4] sm:$0xf0]  ;;  %v5565_v36 = vld [vmem:[%s9120_s9 + $0x1c4] sm:$0xf] }
 0x4f4   :  { %3631 = vmatpush.bf16.msra.mxu2 %v5032_v25 }
 0x501   :  { %v3170_v59 = vpop.f32.mrf.mxu0 }
 0x502   :  { %v8627_v60 = vadd.f32 %v3170_v59, %v3158_v58  ;;  %v5096_v58 = vor.u32 %v5550_v44, %v5095_v41  ;;  %v4959_v59 = vld [vmem:[%s9120_s9 + $0x30] sm:$0xf]  ;;  %v4999_v41 = vld [vmem:[%s9120_s9 + $0x80] sm:$0xf]  ;;  %v4936_v44 = vor.u32 %v5510_v39, %v4935_v38  ;;  %v5515_v39 = vld [vmem:[%s9120_s9 + $0x34] sm:$0xf] }
 0x503   :  { %v4960_v4 = vor.u32 %v5516_v40, %v4959_v59  ;;  %v5000_v25 = vor.u32 %v5526_v45, %v4999_v41  ;;  %v5127_v59 = vld [vmem:[%s9120_s9 + $0x180] sm:$0xf]  ;;  %v5558_v40 = vld [vmem:[%s9120_s9 + $0x184] sm:$0xf0]  ;;  %v4961_v41 = vld [vmem:[%s9120_s9 + $0x38] sm:$0xf0] }
 0x504   :  { %v3177_v62 = vmax.f32 %v8627_v60, 0.0  ;;  %3644 = vmatpush.bf16.msra.mxu3 %v5096_v58  ;;  %v5064_v58 = vor.u32 %v5542_v56, %v5063_v49  ;;  %v5128_v50 = vor.u32 %v5558_v40, %v5127_v59  ;;  %v4964_v45 = vor.u32 %v5515_v39, %v4961_v41  ;;  %v5025_v49 = vld [vmem:[%s9120_s9 + $0xb8] sm:$0xf0]  ;;  %v5547_v56 = vld [vmem:[%s9120_s9 + $0x134] sm:$0xf] }
 0x505   :  { %3619 = vmatpush.bf16.msra.mxu1 %v4960_v4  ;;  %v5555_v4 = vld [vmem:[%s9120_s9 + $0x174] sm:$0xf] }
 0x506   :  { %v3183_v0 = vsel %vm1139_vm3, %v3177_v62, 0.0  ;;  %v5563_v40 = vld [vmem:[%s9120_s9 + $0x1b4] sm:$0xf] }
 0x507   :  { %v3184_v1 = vadd.f32 %v3183_v0, %v3182_v63  ;;  %v5532_v63 = vld [vmem:[%s9120_s9 + $0xb4] sm:$0xf0]  ;;  %v5087_v0 = vld [vmem:[%s9120_s9 + $0x130] sm:$0xf] }
 0x508   :  { %v5024_v5 = vor.u32 %v5532_v63, %v5023_v61  ;;  %v5523_v61 = vld [vmem:[%s9120_s9 + $0x74] sm:$0xf]  ;;  %v4993_v63 = vld [vmem:[%s9120_s9 + $0x78] sm:$0xf0] }
 0x509   :  { %v3172_v2 = vpop.f32.mrf.mxu0  ;;  %3185 = vadd.xlane.f32.xlu1 %v3184_v1  ;;  %v5548_v1 = vld [vmem:[%s9120_s9 + $0x134] sm:$0xf0]  ;;  %3620 = vmatpush.bf16.msra.mxu1 %v4952_v43  ;;  %v5535_v43 = vld [vmem:[%s9120_s9 + $0xd4] sm:$0xf] }
 0x50a   :  { %v5151_v2 = vld [vmem:[%s9120_s9 + $0x1b0] sm:$0xf]  ;;  %v5088_v6 = vor.u32 %v5548_v1, %v5087_v0  ;;  %3632 = vmatpush.bf16.msra.mxu2 %v5024_v5  ;;  %v5539_v0 = vld [vmem:[%s9120_s9 + $0xf4] sm:$0xf]  ;;  %v5057_v1 = vld [vmem:[%s9120_s9 + $0xf8] sm:$0xf0] }
 0x50b   :  { %v5152_v7 = vor.u32 %v5564_v3, %v5151_v2  ;;  %v4996_v2 = vor.u32 %v5523_v61, %v4993_v63  ;;  %v5060_v3 = vor.u32 %v5539_v0, %v5057_v1  ;;  %v5121_v5 = vld [vmem:[%s9120_s9 + $0x178] sm:$0xf0]  ;;  %v4953_v0 = vld [vmem:[%s9120_s9 + $0x28] sm:$0xf0]  ;;  %v5529_v1 = vld [vmem:[%s9120_s9 + $0xa4] sm:$0xf] }
 0x50c   :  { %3645 = vmatpush.bf16.msra.mxu3 %v5088_v6  ;;  %v5571_v6 = vld [vmem:[%s9120_s9 + $0x1f4] sm:$0xf]  ;;  %v5153_v61 = vld [vmem:[%s9120_s9 + $0x1b8] sm:$0xf0] }
 0x50d   :  { %3658 = vmatpush.bf16.msrb.mxu0 %v5152_v7  ;;  %3621 = vmatpush.bf16.msra.mxu1 %v4944_v24  ;;  %v5124_v7 = vor.u32 %v5555_v4, %v5121_v5  ;;  %v5533_v24 = vld [vmem:[%s9120_s9 + $0xc4] sm:$0xf]  ;;  %v5156_v63 = vor.u32 %v5563_v40, %v5153_v61  ;;  %v5587_v40 = vld [vmem:[%s9122_s11 + $0x70] sm:$0xff]  ;;  %v5574_v61 = vld [vmem:[%s9122_s11 + $0x8] sm:$0xff] }
 0x50e   :  { %3633 = vmatpush.bf16.msra.mxu2 %v5016_v18  ;;  %v5105_v18 = vld [vmem:[%s9120_s9 + $0x158] sm:$0xf0]  ;;  %v5545_v5 = vld [vmem:[%s9120_s9 + $0x124] sm:$0xf] }
 0x50f   :  { %v5108_v20 = vor.u32 %v5551_v17, %v5105_v18  ;;  %v5001_v17 = vld [vmem:[%s9120_s9 + $0x88] sm:$0xf0] }
 0x510   :  { %3646 = vmatpush.bf16.msra.mxu3 %v5080_v19  ;;  %v5044_v19 = vor.u32 %v5535_v43, %v5041_v16  ;;  %v5525_v16 = vld [vmem:[%s9120_s9 + $0x84] sm:$0xf] }
 0x511   :  { %3659 = vmatpush.bf16.msrb.mxu0 %v5144_v22  ;;  %3622 = vmatpush.bf16.msra.mxu1 %v4936_v44  ;;  %v5169_v22 = vld [vmem:[%s9120_s9 + $0x1d8] sm:$0xf0]  ;;  %v5531_v44 = vld [vmem:[%s9120_s9 + $0xb4] sm:$0xf]  ;;  %v5004_v26 = vor.u32 %v5525_v16, %v5001_v17 }
 0x512   :  { %3634 = vmatpush.bf16.msra.mxu2 %v5008_v31  ;;  %v5172_v23 = vor.u32 %v5567_v21, %v5169_v22  ;;  %v5097_v31 = vld [vmem:[%s9120_s9 + $0x148] sm:$0xf0]  ;;  %v5557_v21 = vld [vmem:[%s9120_s9 + $0x184] sm:$0xf] }
 0x513   :  { %v5100_v33 = vor.u32 %v5549_v30, %v5097_v31  ;;  %v5129_v22 = vld [vmem:[%s9120_s9 + $0x188] sm:$0xf0] }
 0x514   :  { %3647 = vmatpush.bf16.msra.mxu3 %v5072_v32  ;;  %v5036_v32 = vor.u32 %v5533_v24, %v5033_v29  ;;  %v5132_v24 = vor.u32 %v5557_v21, %v5129_v22 }
 0x515   :  { %3660 = vmatpush.bf16.msrb.mxu0 %v5136_v37  ;;  %3667 = vmatpush.bf16.msrb.mxu1 %v4996_v2  ;;  %v5161_v37 = vld [vmem:[%s9120_s9 + $0x1c8] sm:$0xf0] }
 0x516   :  { %3635 = vmatpush.bf16.msra.mxu2 %v5000_v25  ;;  %v5164_v38 = vor.u32 %v5565_v36, %v5161_v37  ;;  %v5089_v25 = vld [vmem:[%s9120_s9 + $0x138] sm:$0xf0]  ;;  %v5017_v2 = vld [vmem:[%s9120_s9 + $0xa8] sm:$0xf0] }
 0x517   :  { %v5092_v59 = vor.u32 %v5547_v56, %v5089_v25  ;;  %v5020_v4 = vor.u32 %v5529_v1, %v5017_v2  ;;  %v5580_v25 = vld [vmem:[%s9122_s11 + $0x38] sm:$0xff]  ;;  %v5583_v2 = vld [vmem:[%s9122_s11 + $0x50] sm:$0xff] }
 0x518   :  { %3648 = vmatpush.bf16.msra.mxu3 %v5064_v58  ;;  %v5028_v58 = vor.u32 %v5531_v44, %v5025_v49  ;;  %v5584_v1 = vld [vmem:[%s9122_s11 + $0x58] sm:$0xff] }
 0x519   :  { %3661 = vmatpush.bf16.msrb.mxu0 %v5128_v50  ;;  %v5513_v50 = vld [vmem:[%s9120_s9 + $0x24] sm:$0xf] }
 0x51a   :  { %3680 = vmatpush.bf16.msrb.mxu2 %v5060_v3  ;;  %v4956_v3 = vor.u32 %v5513_v50, %v4953_v0  ;;  %v5586_v50 = vld [vmem:[%s9122_s11 + $0x68] sm:$0xff]  ;;  %v5585_v0 = vld [vmem:[%s9122_s11 + $0x60] sm:$0xff] }
 0x51c   :  { %3693 = vmatpush.bf16.msrb.mxu3 %v5124_v7  ;;  %v5561_v7 = vld [vmem:[%s9120_s9 + $0x1a4] sm:$0xf] }
 0x57c   :  { %v3186_v8 = vpop.xlane.xlu1 %3185 }
 0x57d   :  { %v3187_v46 = vmul.f32 %v3186_v8, %v7110_v55  ;;  %v5185_v8 = vld [vmem:[%s9120_s9 + $0x1f8] sm:$0xf0] }
 0x57f   :  { %v8759_v53 = vsub.f32 %v3174_v54, %v3187_v46  ;;  %v8763_v10 = vsub.f32 %v3175_v52, %v3187_v46  ;;  %v8767_v13 = vsub.f32 %v3176_v57, %v3187_v46  ;;  %v8771_v14 = vsub.f32 %v3177_v62, %v3187_v46  ;;  %v5521_v46 = vld [vmem:[%s9120_s9 + $0x64] sm:$0xf] }
 0x581   :  { %v3192_v34 = vmul.f32 %v8759_v53, %v8759_v53  ;;  %v3193_v47 = vmul.f32 %v8763_v10, %v8763_v10  ;;  %v3194_v9 = vmul.f32 %v8767_v13, %v8767_v13  ;;  %v3195_v52 = vmul.f32 %v8771_v14, %v8771_v14 }
 0x583   :  { %v3196_v48 = vsel %vm1139_vm3, %v3192_v34, 0.0  ;;  %v3197_v54 = vsel %vm1139_vm3, %v3193_v47, 0.0  ;;  %v3199_v60 = vsel %vm1139_vm3, %v3194_v9, 0.0  ;;  %v3201_v11 = vsel %vm1139_vm3, %v3195_v52, 0.0  ;;  %v4985_v34 = vld [vmem:[%s9120_s9 + $0x68] sm:$0xf0] }
 0x584   :  { %v3198_v57 = vadd.f32 %v3197_v54, %v3196_v48  ;;  %v5188_v47 = vor.u32 %v5571_v6, %v5185_v8  ;;  %v4988_v9 = vor.u32 %v5521_v46, %v4985_v34  ;;  %v5537_v52 = vld [vmem:[%s9120_s9 + $0xe4] sm:$0xf]  ;;  %v5049_v48 = vld [vmem:[%s9120_s9 + $0xe8] sm:$0xf0]  ;;  %v5511_v34 = vld [vmem:[%s9120_s9 + $0x14] sm:$0xf] }
 0x585   :  { %v5553_v54 = vld [vmem:[%s9120_s9 + $0x164] sm:$0xf]  ;;  %v5081_v6 = vld [vmem:[%s9120_s9 + $0x128] sm:$0xf0] }
 0x586   :  { %v3200_v62 = vadd.f32 %v3199_v60, %v3198_v57  ;;  %v5052_v57 = vor.u32 %v5537_v52, %v5049_v48  ;;  %v5113_v60 = vld [vmem:[%s9120_s9 + $0x168] sm:$0xf0]  ;;  %3706 = vmatpush.bf16.msra.mxu0 %v5188_v47  ;;  %3668 = vmatpush.bf16.msrb.mxu1 %v4988_v9  ;;  %v5084_v8 = vor.u32 %v5545_v5, %v5081_v6  ;;  %v4945_v47 = vld [vmem:[%s9120_s9 + $0x18] sm:$0xf0]  ;;  %v5527_v48 = vld [vmem:[%s9120_s9 + $0x94] sm:$0xf] }
 0x587   :  { %v5145_v46 = vld [vmem:[%s9120_s9 + $0x1a8] sm:$0xf0]  ;;  %v3289_v5 = vld [vmem:[%s9121_s10] sm:$0x3] }
 0x588   :  { %v3202_v12 = vadd.f32 %v3201_v11, %v3200_v62  ;;  %v5569_v62 = vld [vmem:[%s9120_s9 + $0x1e4] sm:$0xf]  ;;  %v5177_v11 = vld [vmem:[%s9120_s9 + $0x1e8] sm:$0xf0]  ;;  %3681 = vmatpush.bf16.msrb.mxu2 %v5052_v57  ;;  %v5148_v52 = vor.u32 %v5561_v7, %v5145_v46  ;;  %v5543_v57 = vld [vmem:[%s9120_s9 + $0x114] sm:$0xf] }
 0x589   :  { %v5180_v35 = vor.u32 %v5569_v62, %v5177_v11  ;;  %v5073_v62 = vld [vmem:[%s9120_s9 + $0x118] sm:$0xf0]  ;;  %v5559_v11 = vld [vmem:[%s9120_s9 + $0x194] sm:$0xf]  ;;  %v3291_v7 = vperm.slane %v3289_v5, 0 }
 0x58a   :  { %3203 = vadd.xlane.f32.xlu1 %v3202_v12  ;;  %v5116_v12 = vor.u32 %v5553_v54, %v5113_v60  ;;  %3669 = vmatpush.bf16.msrb.mxu1 %v4980_v15  ;;  %v5009_v54 = vld [vmem:[%s9120_s9 + $0x98] sm:$0xf0]  ;;  %v5076_v15 = vor.u32 %v5543_v57, %v5073_v62 }
 0x58b   :  { %3707 = vmatpush.bf16.msra.mxu0 %v5180_v35  ;;  %v4948_v35 = vor.u32 %v5511_v34, %v4945_v47  ;;  %v5012_v51 = vor.u32 %v5527_v48, %v5009_v54 }
 0x58c   :  { %3694 = vmatpush.bf16.msrb.mxu3 %v5116_v12  ;;  %3682 = vmatpush.bf16.msrb.mxu2 %v5044_v19  ;;  %v5137_v12 = vld [vmem:[%s9120_s9 + $0x198] sm:$0xf0]  ;;  %v5541_v19 = vld [vmem:[%s9120_s9 + $0x104] sm:$0xf] }
 0x58d   :  { %v5140_v18 = vor.u32 %v5559_v11, %v5137_v12 }
 0x58e   :  { %3670 = vmatpush.bf16.msrb.mxu1 %v4972_v28 }
 0x58f   :  { %3708 = vmatpush.bf16.msra.mxu0 %v5172_v23 }
 0x590   :  { %3695 = vmatpush.bf16.msrb.mxu3 %v5108_v20  ;;  %3683 = vmatpush.bf16.msrb.mxu2 %v5036_v32  ;;  %v5065_v20 = vld [vmem:[%s9120_s9 + $0x108] sm:$0xf0] }
 0x591   :  { %v5068_v27 = vor.u32 %v5541_v19, %v5065_v20 }
 0x592   :  { %3671 = vmatpush.bf16.msrb.mxu1 %v4964_v45 }
 0x593   :  { %3709 = vmatpush.bf16.msra.mxu0 %v5164_v38 }
 0x594   :  { %3696 = vmatpush.bf16.msrb.mxu3 %v5100_v33  ;;  %3684 = vmatpush.bf16.msrb.mxu2 %v5028_v58  ;;  %v5588_v58 = vld [vmem:[%s9122_s11 + $0x78] sm:$0xff] }
 0x596   :  { %3672 = vmatpush.bf16.msrb.mxu1 %v4956_v3  ;;  %v5582_v3 = vld [vmem:[%s9122_s11 + $0x48] sm:$0xff] }
 0x597   :  { %3710 = vmatpush.bf16.msra.mxu0 %v5156_v63  ;;  %v5573_v63 = vld [vmem:[%s9122_s11] sm:$0xff] }
 0x598   :  { %3697 = vmatpush.bf16.msrb.mxu3 %v5092_v59  ;;  %3685 = vmatpush.bf16.msrb.mxu2 %v5020_v4  ;;  %v5575_v59 = vld [vmem:[%s9122_s11 + $0x10] sm:$0xff]  ;;  %v5581_v4 = vld [vmem:[%s9122_s11 + $0x40] sm:$0xff] }
 0x59a   :  { %3673 = vmatpush.bf16.msrb.mxu1 %v4948_v35 }
 0x59b   :  { %3711 = vmatpush.bf16.msra.mxu0 %v5148_v52 }
 0x59c   :  { %3698 = vmatpush.bf16.msrb.mxu3 %v5084_v8  ;;  %3686 = vmatpush.bf16.msrb.mxu2 %v5012_v51  ;;  %v3292_v51 = vperm.slane %v3289_v5, 1 }
 0x59f   :  { %3712 = vmatpush.bf16.msra.mxu0 %v5140_v18 }
 0x5a0   :  { %3699 = vmatpush.bf16.msrb.mxu3 %v5076_v15  ;;  %3687 = vmatpush.bf16.msrb.mxu2 %v5004_v26 }
 0x5a3   :  { %3713 = vmatpush.bf16.msra.mxu0 %v5132_v24 }
 0x5a4   :  { %3700 = vmatpush.bf16.msrb.mxu3 %v5068_v27 }
 0x5fd   :  { %v3204_v9 = vpop.xlane.xlu1 %3203 }
 0x5fe   :  { %v3205_v60 = vmul.f32 %v3204_v9, %v7110_v55  ;;  %v5509_v55 = vld [vmem:[%s9120_s9 + $0x4] sm:$0xf] }
 0x5ff   :  { %v4940_v23 = vor.u32 %v5509_v55, %v4937_v42 }
 0x600   :  { %v3206_v43 = vadd.f32 1e-05, %v3205_v60 }
 0x601   :  { %3674 = vmatpush.bf16.msrb.mxu1 %v4940_v23 }
 0x602   :  { %5596 = vrsqrt.f32 %v3206_v43  ;;  %vm3213_vm9 = vweird.f32 %v3206_v43 }
 0x608   :  { %v5597_v28 = vpop.eup %5596 }
 0x609   :  { %v3208_v29 = vmul.f32 %v5597_v28, %v3206_v43  ;;  %vm3214_vm8 = vweird.f32 %v5597_v28 }
 0x60a   :  { %vm3215_vm10 = vmor %vm3213_vm9, %vm3214_vm8 }
 0x60b   :  { %v3209_v30 = vmul.f32 %v5597_v28, %v3208_v29 }
 0x60d   :  { %v3210_v31 = vmul.f32 0.5, %v3209_v30 }
 0x60f   :  { %v3211_v32 = vsub.f32 1.5, %v3210_v31 }
 0x611   :  { %v3212_v33 = vmul.f32 %v5597_v28, %v3211_v32 }
 0x613   :  { %v3216_v36 = vsel %vm3215_vm10, %v5597_v28, %v3212_v33  ;;  %v5591_v28 = vld [vmem:[%s9123_s12] ss:$0 sm:$0xff] }
 0x614   :  { %v3217_v37 = vmul.f32 %v3216_v36, %v8759_v53  ;;  %v3218_v38 = vmul.f32 %v3216_v36, %v8763_v10  ;;  %v3219_v39 = vmul.f32 %v3216_v36, %v8767_v13  ;;  %v3220_v41 = vmul.f32 %v3216_v36, %v8771_v14  ;;  %v5579_v53 = vld [vmem:[%s9122_s11 + $0x30] sm:$0xff]  ;;  %v5578_v10 = vld [vmem:[%s9122_s11 + $0x28] sm:$0xff]  ;;  %v5577_v13 = vld [vmem:[%s9122_s11 + $0x20] sm:$0xff] }
 0x615   :  { %v5576_v14 = vld [vmem:[%s9122_s11 + $0x18] sm:$0xff] }
 0x616   :  { %v3221_v44 = vpack.c.bf16 %v3217_v37, %v3217_v37  ;;  %v3222_v45 = vpack.c.bf16 %v3218_v38, %v3218_v38  ;;  %v3223_v49 = vpack.c.bf16 %v3219_v39, %v3219_v39  ;;  %v3224_v56 = vpack.c.bf16 %v3220_v41, %v3220_v41 }
 0x618   :  { %3623 = vmatmul.bf16.vlgmr.msra.gmra.mxu1 %v3221_v44  ;;  %3636 = vmatmul.bf16.vlgmr.msra.gmra.mxu2 %v3222_v45 }
 0x619   :  { %3649 = vmatmul.bf16.vlgmr.msra.gmra.mxu3 %v3223_v49  ;;  %3662 = vmatmul.bf16.vlgmr.msrb.gmra.mxu0 %v3224_v56 }
 0x61a   :  { %3855 = vmatpush.bf16.msra.mxu1 %v5580_v25  ;;  %3868 = vmatpush.bf16.msra.mxu2 %v5588_v58 }
 0x61e   :  { %3856 = vmatpush.bf16.msra.mxu1 %v5579_v53  ;;  %3869 = vmatpush.bf16.msra.mxu2 %v5587_v40 }
 0x622   :  { %3857 = vmatpush.bf16.msra.mxu1 %v5578_v10  ;;  %3870 = vmatpush.bf16.msra.mxu2 %v5586_v50 }
 0x626   :  { %3858 = vmatpush.bf16.msra.mxu1 %v5577_v13  ;;  %3871 = vmatpush.bf16.msra.mxu2 %v5585_v0 }
 0x628   :  { %3675 = vmatmul.bf16.vlgmr.msrb.gmra.mxu1 %v3221_v44  ;;  %3688 = vmatmul.bf16.vlgmr.msrb.gmra.mxu2 %v3222_v45 }
 0x629   :  { %3701 = vmatmul.bf16.vlgmr.msrb.gmra.mxu3 %v3223_v49  ;;  %3714 = vmatmul.bf16.vlgmr.msra.gmra.mxu0 %v3224_v56 }
 0x62a   :  { %3859 = vmatpush.bf16.msra.mxu1 %v5576_v14  ;;  %3872 = vmatpush.bf16.msra.mxu2 %v5584_v1 }
 0x62e   :  { %3860 = vmatpush.bf16.msra.mxu1 %v5575_v59  ;;  %3873 = vmatpush.bf16.msra.mxu2 %v5583_v2 }
 0x632   :  { %3861 = vmatpush.bf16.msra.mxu1 %v5574_v61  ;;  %3874 = vmatpush.bf16.msra.mxu2 %v5582_v3 }
 0x636   :  { %3862 = vmatpush.bf16.msra.mxu1 %v5573_v63  ;;  %3875 = vmatpush.bf16.msra.mxu2 %v5581_v4 }
 0x695   :  { %v3624_v6 = vpop.f32.mrf.mxu1 }
 0x696   :  { %v3663_v8 = vpop.f32.mrf.mxu0  ;;  %v3625_v46 = vadd.f32 %v3624_v6, %v3291_v7 }
 0x69b   :  { %v3637_v34 = vpop.f32.mrf.mxu2 }
 0x69c   :  { %v3638_v47 = vadd.f32 %v3637_v34, %v3625_v46  ;;  %v3650_v9 = vpop.f32.mrf.mxu3 }
 0x69d   :  { %v3626_v52 = vpop.f32.mrf.mxu1 }
 0x69e   :  { %v3651_v48 = vadd.f32 %v3650_v9, %v3638_v47  ;;  %v3665_v54 = vpop.f32.mrf.mxu0 }
 0x6a0   :  { %v3664_v57 = vadd.f32 %v3663_v8, %v3651_v48 }
 0x6a2   :  { %v3719_v60 = vmax.f32 %v3664_v57, 0.0 }
 0x6a3   :  { %v3639_v62 = vpop.f32.mrf.mxu2 }
 0x6a4   :  { %v3721_v11 = vpack.c.bf16 %v3719_v60, %v3719_v60  ;;  %v3652_v12 = vpop.f32.mrf.mxu3 }
 0x6a5   :  { %v3676_v35 = vpop.f32.mrf.mxu1 }
 0x6a6   :  { %v3715_v55 = vpop.f32.mrf.mxu0  ;;  %3863 = vmatmul.bf16.vlgmr.msra.gmra.mxu1 %v3721_v11  ;;  %v3677_v42 = vadd.f32 %v3676_v35, %v3292_v51 }
 0x6ab   :  { %v3689_v43 = vpop.f32.mrf.mxu2 }
 0x6ac   :  { %v3690_v15 = vadd.f32 %v3689_v43, %v3677_v42  ;;  %v3702_v16 = vpop.f32.mrf.mxu3 }
 0x6ad   :  { %v3678_v17 = vpop.f32.mrf.mxu1 }
 0x6ae   :  { %v3703_v18 = vadd.f32 %v3702_v16, %v3690_v15  ;;  %v3717_v19 = vpop.f32.mrf.mxu0 }
 0x6b0   :  { %v3716_v20 = vadd.f32 %v3715_v55, %v3703_v18 }
 0x6b2   :  { %v3720_v21 = vmax.f32 %v3716_v20, 0.0 }
 0x6b3   :  { %v3691_v22 = vpop.f32.mrf.mxu2 }
 0x6b4   :  { %v3722_v23 = vpack.c.bf16 %v3720_v21, %v3720_v21  ;;  %v3704_v26 = vpop.f32.mrf.mxu3 }
 0x6b6   :  { %3876 = vmatmul.bf16.vlgmr.msra.gmra.mxu2 %v3722_v23 }
 0x723   :  { %v3864_v27 = vpop.f32.mrf.mxu1 }
 0x724   :  { %v3865_v29 = vadd.f32 %v5591_v28, %v3864_v27 }
 0x72b   :  { %v3866_v24 = vpop.f32.mrf.mxu1 }
 0x739   :  { %v3877_v30 = vpop.f32.mrf.mxu2 }
 0x73a   :  { %v3878_v31 = vadd.f32 %v3877_v30, %v3865_v29 }
 0x73c   :  { %3882 = vst.msk [vmem:[#allocation2] sm:$0x3] %vm3881_vm11, %v3878_v31 }
 0x73d   :  { %3893 = dma.vmem_to_hbm [thread:$0]  %s3889_s1, 32, %s3891_s17, [#allocation3]  }
 0x741   :  { %v3879_v32 = vpop.f32.mrf.mxu2 }
 0x742   :  { %5622 = dma.done.wait [#allocation3], 32  }
 0x743   :  { %5623 = vsyncadd [#allocation3], 4294967264 }
 0x744   :  { %3898 = vsyncpa [#allocation3], 1 }

</bundles_post_ra>
